<compile_context>
chip_gen: v5e
topology: v5e:2x2
jax: 0.10.0
libtpu: 0.0.40
codegen_flags: <defaults>
</compile_context>

<pallas_src>
import functools

import jax
import jax.numpy as jnp
from jax.experimental import pallas as pl
from jax.experimental.pallas import tpu as pltpu

TILE = 128                      # node-dimension tile (rows / source cols)
LANE = 128                      # feature-dimension padding target
VMEM_LIMIT = 32 * 1024 * 1024   # explicit scoped-VMEM limit (safe on v5e/v6e/v7x)
NEG_SLOPE = 0.2                 # GATConv LeakyReLU slope
MASK_VAL = -1e30                # additive mask for non-edges


def _round_up(x, m):
    return ((x + m - 1) // m) * m


def _full_spec(arr):
    nd = arr.ndim
    return pl.BlockSpec(arr.shape, lambda *_: (0,) * nd)


# ----------------------------------------------------------------------------
# GCN layer (fused):  out = relu( (Ahat @ X) @ W + b )
#   grid = (row blocks i, node blocks k);  f32 accumulator for Ahat @ X.
# ----------------------------------------------------------------------------
def _gcn_kernel(ahat_ref, x_ref, w_ref, b_ref, out_ref, acc_ref):
    k = pl.program_id(1)

    @pl.when(k == 0)
    def _():
        acc_ref[...] = jnp.zeros_like(acc_ref)

    acc_ref[...] += jnp.dot(ahat_ref[...],                        # bf16
                            x_ref[...].astype(jnp.bfloat16),
                            preferred_element_type=jnp.float32)

    @pl.when(k == pl.num_programs(1) - 1)
    def _():
        z = jnp.dot(acc_ref[...].astype(jnp.bfloat16),
                    w_ref[...].astype(jnp.bfloat16),
                    preferred_element_type=jnp.float32)
        out_ref[...] = jnp.maximum(z + b_ref[...], 0.0)


def gcn_relu(ahat, x, w, b, *, tm=TILE, tk=TILE):
    n_pad, f_pad = x.shape
    h_pad = w.shape[1]
    grid = (n_pad // tm, n_pad // tk)
    return pl.pallas_call(
        _gcn_kernel,
        out_shape=jax.ShapeDtypeStruct((n_pad, h_pad), jnp.float32),
        grid_spec=pltpu.PrefetchScalarGridSpec(
            num_scalar_prefetch=0,
            grid=grid,
            in_specs=[
                pl.BlockSpec((tm, tk), lambda i, k: (i, k)),        # Ahat (bf16)
                pl.BlockSpec((tk, f_pad), lambda i, k: (k, 0)),     # X rows
                pl.BlockSpec((f_pad, h_pad), lambda i, k: (0, 0)),  # W
                pl.BlockSpec((1, h_pad), lambda i, k: (0, 0)),      # b
            ],
            out_specs=pl.BlockSpec((tm, h_pad), lambda i, k: (i, 0)),
            scratch_shapes=[pltpu.VMEM((tm, f_pad), jnp.float32)],
        ),
        compiler_params=pltpu.CompilerParams(
            dimension_semantics=("parallel", "arbitrary"),
            vmem_limit_bytes=VMEM_LIMIT),
    )(ahat, x, w, b)


# ----------------------------------------------------------------------------
# Per-head feature transform for GAT:  h[h, n, :] = X[n, :] @ W[h]
#   output layout (heads, N, D) so the attention kernel needs no transposes.
# ----------------------------------------------------------------------------
def _heads_linear_kernel(x_ref, w_ref, out_ref):
    out_ref[0] = jnp.dot(x_ref[...].astype(jnp.bfloat16),
                         w_ref[0].astype(jnp.bfloat16),
                         preferred_element_type=jnp.float32)


def heads_linear(x, w3, *, tm=TILE):
    n_pad, f_pad = x.shape
    heads, _, d_pad = w3.shape
    grid = (n_pad // tm, heads)
    return pl.pallas_call(
        _heads_linear_kernel,
        out_shape=jax.ShapeDtypeStruct((heads, n_pad, d_pad), jnp.float32),
        grid_spec=pltpu.PrefetchScalarGridSpec(
            num_scalar_prefetch=0,
            grid=grid,
            in_specs=[
                pl.BlockSpec((tm, f_pad), lambda i, h: (i, 0)),
                pl.BlockSpec((1, f_pad, d_pad), lambda i, h: (h, 0, 0)),
            ],
            out_specs=pl.BlockSpec((1, tm, d_pad), lambda i, h: (h, i, 0)),
        ),
        compiler_params=pltpu.CompilerParams(
            dimension_semantics=("parallel", "parallel"),
            vmem_limit_bytes=VMEM_LIMIT),
    )(x, w3)


# ----------------------------------------------------------------------------
# GAT attention (heads vectorized, flash-style online softmax over sources):
#   e[h,i,j] = LeakyReLU(a_dst[h].h_i + a_src[h].h_j) + mask_bias[i,j],
#   alpha = softmax_j, out = mean_h(alpha_h @ h_h) + b, ReLU.
# ----------------------------------------------------------------------------
def _gat_kernel(bias_ref, hq_ref, hk_ref, asrc_ref, adst_ref, b_ref, out_ref,
                m_sc, l_sc, acc_sc, *, heads):
    kb = pl.program_id(1)

    @pl.when(kb == 0)
    def _():
        m_sc[...] = jnp.full_like(m_sc, MASK_VAL)
        l_sc[...] = jnp.zeros_like(l_sc)
        acc_sc[...] = jnp.zeros_like(acc_sc)

    hq = hq_ref[...]                                      # (H, TM, D) f32
    hk = hk_ref[...]                                      # (H, TK, D) f32
    a_d = jnp.sum(hq * adst_ref[...][:, None, :], axis=-1, keepdims=True)  # (H,TM,1)
    a_s = jnp.sum(hk * asrc_ref[...][:, None, :], axis=-1)                 # (H,TK)

    e = a_d + a_s[:, None, :]                             # (H, TM, TK)
    e = jnp.where(e >= 0, e, NEG_SLOPE * e)               # LeakyReLU(0.2), f32
    e = e + bias_ref[...][None, :, :]                     # additive -1e30 mask

    m_prev = m_sc[...]
    m_new = jnp.maximum(m_prev, jnp.max(e, axis=-1, keepdims=True))
    corr = jnp.exp(m_prev - m_new)
    p = jnp.exp(e - m_new)                                # (H, TM, TK)
    l_sc[...] = corr * l_sc[...] + jnp.sum(p, axis=-1, keepdims=True)
    acc_sc[...] = corr * acc_sc[...] + jnp.einsum(
        'hqk,hkd->hqd', p.astype(jnp.bfloat16), hk.astype(jnp.bfloat16),
        preferred_element_type=jnp.float32)
    m_sc[...] = m_new

    @pl.when(kb == pl.num_programs(1) - 1)
    def _():
        inv_l = pl.reciprocal(l_sc[...], approx=True)     # (H, TM, 1)
        merged = jnp.sum(acc_sc[...] * inv_l, axis=0) * (1.0 / heads)  # (TM, D)
        out_ref[...] = jnp.maximum(merged + b_ref[...], 0.0)


def gat_relu(adj_bias, h_heads, asrc, adst, b, *, heads, tm=TILE, tk=TILE):
    _, n_pad, d_pad = h_heads.shape
    grid = (n_pad // tm, n_pad // tk)
    return pl.pallas_call(
        functools.partial(_gat_kernel, heads=heads),
        out_shape=jax.ShapeDtypeStruct((n_pad, d_pad), jnp.float32),
        grid_spec=pltpu.PrefetchScalarGridSpec(
            num_scalar_prefetch=0,
            grid=grid,
            in_specs=[
                pl.BlockSpec((tm, tk), lambda i, k: (i, k)),               # mask bias (f32)
                pl.BlockSpec((heads, tm, d_pad), lambda i, k: (0, i, 0)),  # h (query rows)
                pl.BlockSpec((heads, tk, d_pad), lambda i, k: (0, k, 0)),  # h (source rows)
                pl.BlockSpec((heads, d_pad), lambda i, k: (0, 0)),         # a_src
                pl.BlockSpec((heads, d_pad), lambda i, k: (0, 0)),         # a_dst
                pl.BlockSpec((1, d_pad), lambda i, k: (0, 0)),             # bias
            ],
            out_specs=pl.BlockSpec((tm, d_pad), lambda i, k: (i, 0)),
            scratch_shapes=[
                pltpu.VMEM((heads, tm, 1), jnp.float32),      # running max
                pltpu.VMEM((heads, tm, 1), jnp.float32),      # running denom
                pltpu.VMEM((heads, tm, d_pad), jnp.float32),  # per-head accum
            ],
        ),
        compiler_params=pltpu.CompilerParams(
            dimension_semantics=("parallel", "arbitrary"),
            vmem_limit_bytes=VMEM_LIMIT),
    )(adj_bias, h_heads, h_heads, asrc, adst, b)


# ----------------------------------------------------------------------------
# SpatialAttentionLayer (degenerate einsums of the reference, kept for parity)
# + final Linear, fused and row-tiled.  Per-head sums/broadcasts use a single
# (hidden, hidden) head-indicator matmul `hb` (hb[d,d'] = 1 iff same head).
# ----------------------------------------------------------------------------
def _spatial_lin_kernel(x_ref, wq_ref, bq_ref, wk_ref, bk_ref, wv_ref, bv_ref,
                        hb_ref, wl_ref, bl_ref, out_ref, *, scale):
    xb = x_ref[...].astype(jnp.bfloat16)
    q = jnp.dot(xb, wq_ref[...].astype(jnp.bfloat16),
                preferred_element_type=jnp.float32) + bq_ref[...]
    k = jnp.dot(xb, wk_ref[...].astype(jnp.bfloat16),
                preferred_element_type=jnp.float32) + bk_ref[...]
    v = jnp.dot(xb, wv_ref[...].astype(jnp.bfloat16),
                preferred_element_type=jnp.float32) + bv_ref[...]
    hb = hb_ref[...]
    # score = einsum('bhq,bhk->bhk', q, k) * scale  ==  k * per-head-sum(q)
    score = k * jnp.dot(q, hb, preferred_element_type=jnp.float32) * scale
    score = score - jnp.max(score, axis=-1, keepdims=True)   # per-row shift (softmax-invariant)
    p = jnp.exp(score)
    denom = jnp.maximum(jnp.dot(p, hb, preferred_element_type=jnp.float32), 1e-30)
    attn = p * pl.reciprocal(denom, approx=True)
    # out = einsum('bhk,bhv->bhv', attn, v)  ==  v * per-head-sum(attn)
    feat = v * jnp.dot(attn, hb, preferred_element_type=jnp.float32)
    out_ref[...] = (jnp.dot(feat.astype(jnp.bfloat16),
                            wl_ref[...].astype(jnp.bfloat16),
                            preferred_element_type=jnp.float32) + bl_ref[...])


def spatial_attention_linear(x, wq, bq, wk, bk, wv, bv, hb, wl, bl, *,
                             sa_head_dim, tm=TILE):
    n_pad, h_pad = x.shape
    c_pad = wl.shape[1]
    grid = (n_pad // tm,)
    in_specs = ([pl.BlockSpec((tm, h_pad), lambda i: (i, 0))]
                + [_full_spec(a) for a in (wq, bq, wk, bk, wv, bv, hb, wl, bl)])
    return pl.pallas_call(
        functools.partial(_spatial_lin_kernel, scale=float(sa_head_dim) ** -0.5),
        out_shape=jax.ShapeDtypeStruct((n_pad, c_pad), jnp.float32),
        grid_spec=pltpu.PrefetchScalarGridSpec(
            num_scalar_prefetch=0,
            grid=grid,
            in_specs=in_specs,
            out_specs=pl.BlockSpec((tm, c_pad), lambda i: (i, 0)),
        ),
        compiler_params=pltpu.CompilerParams(
            dimension_semantics=("parallel",),
            vmem_limit_bytes=VMEM_LIMIT),
    )(x, wq, bq, wk, bk, wv, bv, hb, wl, bl)


# ----------------------------------------------------------------------------
# Graph preprocessing (plain-JAX glue) and parameter construction
# ----------------------------------------------------------------------------
def build_dense_graph(edge_index, n_pad):
    src, tgt = edge_index[0], edge_index[1]
    a = jnp.zeros((n_pad, n_pad), jnp.float32).at[tgt, src].set(1.0)
    a = jnp.maximum(a, jnp.eye(n_pad, dtype=jnp.float32))   # self-loops (all rows)
    deg = jnp.sum(a, axis=1)
    dinv = jax.lax.rsqrt(deg)
    ahat = (dinv[:, None] * a * dinv[None, :]).astype(jnp.bfloat16)  # D^-1/2 (A+I) D^-1/2
    adj_bias = jnp.where(a > 0, 0.0, MASK_VAL).astype(jnp.float32)   # GAT additive mask
    return ahat, adj_bias


def init_params(key, num_node_features, num_classes, hidden, num_gcn, num_gat,
                gat_heads, sa_heads):
    assert hidden % sa_heads == 0
    f_pad = _round_up(num_node_features, LANE)
    h_pad = _round_up(hidden, LANE)
    c_pad = _round_up(num_classes, LANE)

    def pad2(w, rp, cp):
        return jnp.zeros((rp, cp), jnp.float32).at[:w.shape[0], :w.shape[1]].set(w)

    def dense(k, fi, fo):
        return jax.random.normal(k, (fi, fo), jnp.float32) / jnp.sqrt(float(fi))

    weights = {"gcn": [], "gat": []}
    for i in range(num_gcn):
        fi = num_node_features if i == 0 else hidden
        fi_p = f_pad if i == 0 else h_pad
        key, k1, k2 = jax.random.split(key, 3)
        w = pad2(dense(k1, fi, hidden), fi_p, h_pad)
        b = pad2(0.01 * jax.random.normal(k2, (1, hidden), jnp.float32), 1, h_pad)
        weights["gcn"].append((w, b))
    for i in range(num_gat):
        fi = num_node_features if (i == 0 and num_gcn == 0) else hidden
        fi_p = f_pad if (i == 0 and num_gcn == 0) else h_pad
        key, k1, k2, k3, k4 = jax.random.split(key, 5)
        w3 = jnp.zeros((gat_heads, fi_p, h_pad), jnp.float32).at[:, :fi, :hidden].set(
            jax.random.normal(k1, (gat_heads, fi, hidden), jnp.float32)
            / jnp.sqrt(float(fi)))
        asrc = jnp.zeros((gat_heads, h_pad), jnp.float32).at[:, :hidden].set(
            0.1 * jax.random.normal(k2, (gat_heads, hidden), jnp.float32))
        adst = jnp.zeros((gat_heads, h_pad), jnp.float32).at[:, :hidden].set(
            0.1 * jax.random.normal(k3, (gat_heads, hidden), jnp.float32))
        b = pad2(0.01 * jax.random.normal(k4, (1, hidden), jnp.float32), 1, h_pad)
        weights["gat"].append((w3, asrc, adst, b))

    key, kq, kbq, kk, kbk, kv, kbv, kl, kbl = jax.random.split(key, 9)
    wq = pad2(dense(kq, hidden, hidden), h_pad, hidden)
    bq = 0.01 * jax.random.normal(kbq, (1, hidden), jnp.float32)
    wk = pad2(dense(kk, hidden, hidden), h_pad, hidden)
    bk = 0.01 * jax.random.normal(kbk, (1, hidden), jnp.float32)
    wv = pad2(dense(kv, hidden, hidden), h_pad, hidden)
    bv = 0.01 * jax.random.normal(kbv, (1, hidden), jnp.float32)
    sa_dim = hidden // sa_heads
    head_id = jnp.arange(hidden) // sa_dim
    hb = (head_id[:, None] == head_id[None, :]).astype(jnp.float32)   # (hidden, hidden)
    wl = pad2(dense(kl, hidden, num_classes), hidden, c_pad)
    bl = pad2(0.01 * jax.random.normal(kbl, (1, num_classes), jnp.float32), 1, c_pad)
    weights["spatial"] = (wq, bq, wk, bk, wv, bv, hb)
    weights["lin"] = (wl, bl)
    cfg = dict(gat_heads=gat_heads, sa_heads=sa_heads, hidden=hidden,
               num_classes=num_classes, f_pad=f_pad, h_pad=h_pad, c_pad=c_pad,
               sa_head_dim=sa_dim)
    return weights, cfg


def make_forward(cfg):
    gat_heads = cfg["gat_heads"]
    sa_head_dim = cfg["sa_head_dim"]
    num_classes = cfg["num_classes"]
    f_pad = cfg["f_pad"]

    @jax.jit
    def forward(weights, x, edge_index):
        n, f_in = x.shape
        n_pad = _round_up(max(n, TILE), TILE)
        x_p = jnp.zeros((n_pad, f_pad), jnp.float32).at[:n, :f_in].set(x)
        ahat, adj_bias = build_dense_graph(edge_index, n_pad)

        h = x_p
        for (w, b) in weights["gcn"]:
            h = gcn_relu(ahat, h, w, b)
        for (w3, asrc, adst, b) in weights["gat"]:
            hh = heads_linear(h, w3)                               # (H, N_pad, D_pad)
            h = gat_relu(adj_bias, hh, asrc, adst, b, heads=gat_heads)
        wq, bq, wk, bk, wv, bv, hb = weights["spatial"]
        wl, bl = weights["lin"]
        out_p = spatial_attention_linear(h, wq, bq, wk, bk, wv, bv, hb, wl, bl,
                                         sa_head_dim=sa_head_dim)
        return out_p[:n, :num_classes]

    return forward


# ----------------------------------------------------------------------------
# Pure-JAX (f32, dense) reference mirroring the same math, for validation.
# ----------------------------------------------------------------------------
def reference_forward(weights, cfg, x, edge_index):
    n, f_in = x.shape
    n_pad = _round_up(max(n, TILE), TILE)
    x_p = jnp.zeros((n_pad, cfg["f_pad"]), jnp.float32).at[:n, :f_in].set(x)
    ahat, adj_bias = build_dense_graph(edge_index, n_pad)
    ahat = ahat.astype(jnp.float32)

    h = x_p
    for (w, b) in weights["gcn"]:
        h = jnp.maximum((ahat @ h) @ w + b, 0.0)
    for (w3, asrc, adst, b) in weights["gat"]:
        hh = jnp.einsum('nf,hfd->hnd', h, w3)
        a_d = jnp.einsum('hnd,hd->hn', hh, adst)
        a_s = jnp.einsum('hnd,hd->hn', hh, asrc)
        e = a_d[:, :, None] + a_s[:, None, :]
        e = jnp.where(e >= 0, e, NEG_SLOPE * e)
        e = e + adj_bias[None, :, :]
        e = e - jnp.max(e, axis=-1, keepdims=True)
        p = jnp.exp(e)
        alpha = p / jnp.sum(p, axis=-1, keepdims=True)
        out = jnp.einsum('hij,hjd->hid', alpha, hh)
        h = jnp.maximum(jnp.mean(out, axis=0) + b, 0.0)
    wq, bq, wk, bk, wv, bv, hb = weights["spatial"]
    scale = float(cfg["sa_head_dim"]) ** -0.5
    q = h @ wq + bq
    k = h @ wk + bk
    v = h @ wv + bv
    score = k * (q @ hb) * scale
    score = score - jnp.max(score, axis=-1, keepdims=True)
    p = jnp.exp(score)
    attn = p / jnp.maximum(p @ hb, 1e-30)
    feat = v * (attn @ hb)
    wl, bl = weights["lin"]
    out = feat @ wl + bl
    return out[:n, :cfg["num_classes"]]


if __name__ == "__main__":
    # 8 nodes, 16 node features, hidden=32, 4 classes,
    # 2 GCN layers, 2 GAT layers (2 heads, concat=False), spatial attn (2 heads).
    N, F_IN, HIDDEN, NUM_CLASSES = 8, 16, 32, 4
    key = jax.random.PRNGKey(0)
    kx, kp = jax.random.split(key)
    x = jax.random.normal(kx, (N, F_IN), jnp.float32)

    # undirected ring graph (both directions), edge_index shape (2, 16)
    src = jnp.concatenate([jnp.arange(N), (jnp.arange(N) + 1) % N]).astype(jnp.int32)
    tgt = jnp.concatenate([(jnp.arange(N) + 1) % N, jnp.arange(N)]).astype(jnp.int32)
    edge_index = jnp.stack([src, tgt], axis=0)

    weights, cfg = init_params(kp, F_IN, NUM_CLASSES, HIDDEN,
                               num_gcn=2, num_gat=2, gat_heads=2, sa_heads=2)

    forward = make_forward(cfg)
    out = jax.block_until_ready(forward(weights, x, edge_index))
    assert out.shape == (N, NUM_CLASSES)
    assert bool(jnp.all(jnp.isfinite(out)))

    ref = reference_forward(weights, cfg, x, edge_index)
    max_diff = float(jnp.max(jnp.abs(out - ref)))
    assert max_diff < 5e-2, f"mismatch vs reference: {max_diff}"
    print("KERNEL_OK")
</pallas_src>

<mosaic_0001>
module attributes {stable_mosaic.version = 11 : i64} {
  func.func @_heads_linear_kernel(%arg0: i32, %arg1: i32, %arg2: memref<128x128xf32, #tpu.memory_space<vmem>>, %arg3: memref<1x128x128xf32, #tpu.memory_space<vmem>>, %arg4: memref<1x128x128xf32, #tpu.memory_space<vmem>>) attributes {dimension_semantics = [#tpu.dimension_semantics<parallel>, #tpu.dimension_semantics<parallel>], iteration_bounds = array<i64: 1, 2>, scalar_prefetch = 0 : i64, scratch_operands = 0 : i64, tpu.core_type = #tpu.core_type<tc>, window_params = [{transform_indices = @transform_0, window_bounds = array<i64: 128, 128>}, {transform_indices = @transform_1, window_bounds = array<i64: 1, 128, 128>}, {transform_indices = @transform_2, window_bounds = array<i64: 1, 128, 128>}]} {
    %c0 = arith.constant 0 : index
    %c0_0 = arith.constant 0 : index
    %0 = vector.load %arg2[%c0, %c0_0] : memref<128x128xf32, #tpu.memory_space<vmem>>, vector<128x128xf32>
    %1 = arith.truncf %0 : vector<128x128xf32> to vector<128x128xbf16>
    %c0_1 = arith.constant 0 : index
    %c0_2 = arith.constant 0 : index
    %c0_3 = arith.constant 0 : index
    %2 = vector.load %arg3[%c0_1, %c0_2, %c0_3] : memref<1x128x128xf32, #tpu.memory_space<vmem>>, vector<1x128x128xf32>
    %3 = vector.shape_cast %2 : vector<1x128x128xf32> to vector<128x128xf32>
    %4 = arith.truncf %3 : vector<128x128xf32> to vector<128x128xbf16>
    %cst = arith.constant dense<0.000000e+00> : vector<128x128xf32>
    %5 = tpu.matmul %1, %4, %cst {dimension_numbers = #tpu.dot_dimension_numbers<[1], [0], [0], [1], [0, 0, 1, 1], [], []>} : vector<128x128xbf16>, vector<128x128xbf16>, vector<128x128xf32> -> vector<128x128xf32>
    %c0_4 = arith.constant 0 : index
    %c0_5 = arith.constant 0 : index
    %c0_6 = arith.constant 0 : index
    %6 = vector.load %arg4[%c0_4, %c0_5, %c0_6] : memref<1x128x128xf32, #tpu.memory_space<vmem>>, vector<1x128x128xf32>
    %7 = vector.shape_cast %6 : vector<1x128x128xf32> to vector<128x128xf32>
    %8 = vector.shape_cast %5 : vector<128x128xf32> to vector<1x128x128xf32>
    tpu.vector_store %arg4[%c0_4, %c0_5, %c0_6], %8 {strides = array<i32>} : memref<1x128x128xf32, #tpu.memory_space<vmem>>, vector<1x128x128xf32>,
    return
  }
  func.func @transform_0(%arg0: i32, %arg1: i32) -> (i32, i32) {
    %c0_i32 = arith.constant 0 : i32
    %c0_i32_0 = arith.constant 0 : i32
    return %arg0, %c0_i32 : i32, i32
  }
  func.func @transform_1(%arg0: i32, %arg1: i32) -> (i32, i32, i32) {
    %c0_i32 = arith.constant 0 : i32
    %c0_i32_0 = arith.constant 0 : i32
    %c0_i32_1 = arith.constant 0 : i32
    return %arg1, %c0_i32, %c0_i32_0 : i32, i32, i32
  }
  func.func @transform_2(%arg0: i32, %arg1: i32) -> (i32, i32, i32) {
    %c0_i32 = arith.constant 0 : i32
    %c0_i32_0 = arith.constant 0 : i32
    return %arg1, %arg0, %c0_i32 : i32, i32, i32
  }
}

module attributes {stable_mosaic.version = 11 : i64} {
  func.func @_gcn_kernel(%arg0: i32, %arg1: i32, %arg2: memref<128x128xbf16, #tpu.memory_space<vmem>>, %arg3: memref<128x128xf32, #tpu.memory_space<vmem>>, %arg4: memref<128x128xf32, #tpu.memory_space<vmem>>, %arg5: memref<1x128xf32, #tpu.memory_space<vmem>>, %arg6: memref<128x128xf32, #tpu.memory_space<vmem>>, %arg7: memref<128x128xf32, #tpu.memory_space<vmem>>) attributes {dimension_semantics = [#tpu.dimension_semantics<parallel>, #tpu.dimension_semantics<arbitrary>], iteration_bounds = array<i64: 1, 1>, scalar_prefetch = 0 : i64, scratch_operands = 1 : i64, tpu.core_type = #tpu.core_type<tc>, window_params = [{transform_indices = @transform_0, window_bounds = array<i64: 128, 128>}, {transform_indices = @transform_1, window_bounds = array<i64: 128, 128>}, {pipeline_mode = #tpu.pipeline_mode<synchronous>, transform_indices = @transform_2, window_bounds = array<i64: 128, 128>}, {pipeline_mode = #tpu.pipeline_mode<synchronous>, transform_indices = @transform_3, window_bounds = array<i64: 1, 128>}, {transform_indices = @transform_4, window_bounds = array<i64: 128, 128>}]} {
    %c0_i32 = arith.constant 0 : i32
    %0 = arith.cmpi eq, %arg1, %c0_i32 : i32
    %1 = arith.extui %0 : i1 to i32
    %c0_i32_0 = arith.constant 0 : i32
    %2 = arith.cmpi ne, %1, %c0_i32_0 : i32
    scf.if %2 {
      %cst_10 = arith.constant 0.000000e+00 : f32
      %13 = vector.broadcast %cst_10 : f32 to vector<128x128xf32>
      %c0_11 = arith.constant 0 : index
      %c0_12 = arith.constant 0 : index
      %14 = vector.load %arg7[%c0_11, %c0_12] : memref<128x128xf32, #tpu.memory_space<vmem>>, vector<128x128xf32>
      tpu.vector_store %arg7[%c0_11, %c0_12], %13 {strides = array<i32>} : memref<128x128xf32, #tpu.memory_space<vmem>>, vector<128x128xf32>,
    } else {
    }
    %c0 = arith.constant 0 : index
    %c0_1 = arith.constant 0 : index
    %3 = vector.load %arg7[%c0, %c0_1] : memref<128x128xf32, #tpu.memory_space<vmem>>, vector<128x128xf32>
    %c0_2 = arith.constant 0 : index
    %c0_3 = arith.constant 0 : index
    %4 = vector.load %arg2[%c0_2, %c0_3] : memref<128x128xbf16, #tpu.memory_space<vmem>>, vector<128x128xbf16>
    %c0_4 = arith.constant 0 : index
    %c0_5 = arith.constant 0 : index
    %5 = vector.load %arg3[%c0_4, %c0_5] : memref<128x128xf32, #tpu.memory_space<vmem>>, vector<128x128xf32>
    %6 = arith.truncf %5 : vector<128x128xf32> to vector<128x128xbf16>
    %cst = arith.constant dense<0.000000e+00> : vector<128x128xf32>
    %7 = tpu.matmul %4, %6, %cst {dimension_numbers = #tpu.dot_dimension_numbers<[1], [0], [0], [1], [0, 0, 1, 1], [], []>} : vector<128x128xbf16>, vector<128x128xbf16>, vector<128x128xf32> -> vector<128x128xf32>
    %8 = arith.addf %3, %7 : vector<128x128xf32>
    %c0_6 = arith.constant 0 : index
    %c0_7 = arith.constant 0 : index
    %9 = vector.load %arg7[%c0_6, %c0_7] : memref<128x128xf32, #tpu.memory_space<vmem>>, vector<128x128xf32>
    tpu.vector_store %arg7[%c0_6, %c0_7], %8 {strides = array<i32>} : memref<128x128xf32, #tpu.memory_space<vmem>>, vector<128x128xf32>,
    %c0_i32_8 = arith.constant 0 : i32
    %10 = arith.cmpi eq, %arg1, %c0_i32_8 : i32
    %11 = arith.extui %10 : i1 to i32
    %c0_i32_9 = arith.constant 0 : i32
    %12 = arith.cmpi ne, %11, %c0_i32_9 : i32
    scf.if %12 {
      %c0_10 = arith.constant 0 : index
      %c0_11 = arith.constant 0 : index
      %13 = vector.load %arg7[%c0_10, %c0_11] : memref<128x128xf32, #tpu.memory_space<vmem>>, vector<128x128xf32>
      %14 = arith.truncf %13 : vector<128x128xf32> to vector<128x128xbf16>
      %c0_12 = arith.constant 0 : index
      %c0_13 = arith.constant 0 : index
      %15 = vector.load %arg4[%c0_12, %c0_13] : memref<128x128xf32, #tpu.memory_space<vmem>>, vector<128x128xf32>
      %16 = arith.truncf %15 : vector<128x128xf32> to vector<128x128xbf16>
      %cst_14 = arith.constant dense<0.000000e+00> : vector<128x128xf32>
      %17 = tpu.matmul %14, %16, %cst_14 {dimension_numbers = #tpu.dot_dimension_numbers<[1], [0], [0], [1], [0, 0, 1, 1], [], []>} : vector<128x128xbf16>, vector<128x128xbf16>, vector<128x128xf32> -> vector<128x128xf32>
      %c0_15 = arith.constant 0 : index
      %c0_16 = arith.constant 0 : index
      %18 = vector.load %arg5[%c0_15, %c0_16] : memref<1x128xf32, #tpu.memory_space<vmem>>, vector<1x128xf32>
      %19 = vector.broadcast %18 : vector<1x128xf32> to vector<128x128xf32>
      %20 = arith.addf %17, %19 : vector<128x128xf32>
      %cst_17 = arith.constant 0.000000e+00 : f32
      %21 = vector.broadcast %cst_17 : f32 to vector<128x128xf32>
      %22 = arith.maximumf %20, %21 : vector<128x128xf32>
      %c0_18 = arith.constant 0 : index
      %c0_19 = arith.constant 0 : index
      %23 = vector.load %arg6[%c0_18, %c0_19] : memref<128x128xf32, #tpu.memory_space<vmem>>, vector<128x128xf32>
      tpu.vector_store %arg6[%c0_18, %c0_19], %22 {strides = array<i32>} : memref<128x128xf32, #tpu.memory_space<vmem>>, vector<128x128xf32>,
    } else {
    }
    return
  }
  func.func @transform_0(%arg0: i32, %arg1: i32) -> (i32, i32) {
    %c0_i32 = arith.constant 0 : i32
    return %arg0, %arg1 : i32, i32
  }
  func.func @transform_1(%arg0: i32, %arg1: i32) -> (i32, i32) {
    %c0_i32 = arith.constant 0 : i32
    %c0_i32_0 = arith.constant 0 : i32
    return %arg1, %c0_i32 : i32, i32
  }
  func.func @transform_2(%arg0: i32, %arg1: i32) -> (i32, i32) {
    %c0_i32 = arith.constant 0 : i32
    %c0_i32_0 = arith.constant 0 : i32
    %c0_i32_1 = arith.constant 0 : i32
    return %c0_i32, %c0_i32_0 : i32, i32
  }
  func.func @transform_3(%arg0: i32, %arg1: i32) -> (i32, i32) {
    %c0_i32 = arith.constant 0 : i32
    %c0_i32_0 = arith.constant 0 : i32
    %c0_i32_1 = arith.constant 0 : i32
    return %c0_i32, %c0_i32_0 : i32, i32
  }
  func.func @transform_4(%arg0: i32, %arg1: i32) -> (i32, i32) {
    %c0_i32 = arith.constant 0 : i32
    %c0_i32_0 = arith.constant 0 : i32
    return %arg0, %c0_i32 : i32, i32
  }
}

module attributes {stable_mosaic.version = 11 : i64} {
  func.func @_gat_kernel(%arg0: i32, %arg1: i32, %arg2: memref<128x128xf32, #tpu.memory_space<vmem>>, %arg3: memref<2x128x128xf32, #tpu.memory_space<vmem>>, %arg4: memref<2x128x128xf32, #tpu.memory_space<vmem>>, %arg5: memref<2x128xf32, #tpu.memory_space<vmem>>, %arg6: memref<2x128xf32, #tpu.memory_space<vmem>>, %arg7: memref<1x128xf32, #tpu.memory_space<vmem>>, %arg8: memref<128x128xf32, #tpu.memory_space<vmem>>, %arg9: memref<2x128x1xf32, #tpu.memory_space<vmem>>, %arg10: memref<2x128x1xf32, #tpu.memory_space<vmem>>, %arg11: memref<2x128x128xf32, #tpu.memory_space<vmem>>) attributes {dimension_semantics = [#tpu.dimension_semantics<parallel>, #tpu.dimension_semantics<arbitrary>], iteration_bounds = array<i64: 1, 1>, scalar_prefetch = 0 : i64, scratch_operands = 3 : i64, tpu.core_type = #tpu.core_type<tc>, window_params = [{transform_indices = @transform_0, window_bounds = array<i64: 128, 128>}, {transform_indices = @transform_1, window_bounds = array<i64: 2, 128, 128>}, {transform_indices = @transform_2, window_bounds = array<i64: 2, 128, 128>}, {pipeline_mode = #tpu.pipeline_mode<synchronous>, transform_indices = @transform_3, window_bounds = array<i64: 2, 128>}, {pipeline_mode = #tpu.pipeline_mode<synchronous>, transform_indices = @transform_4, window_bounds = array<i64: 2, 128>}, {pipeline_mode = #tpu.pipeline_mode<synchronous>, transform_indices = @transform_5, window_bounds = array<i64: 1, 128>}, {transform_indices = @transform_6, window_bounds = array<i64: 128, 128>}]} {
    %c0_i32 = arith.constant 0 : i32
    %0 = arith.cmpi eq, %arg1, %c0_i32 : i32
    %1 = arith.extui %0 : i1 to i32
    %c0_i32_0 = arith.constant 0 : i32
    %2 = arith.cmpi ne, %1, %c0_i32_0 : i32
    scf.if %2 {
      %cst_38 = arith.constant -1.000000e+30 : f32
      %56 = vector.broadcast %cst_38 : f32 to vector<2x128x1xf32>
      %c0_39 = arith.constant 0 : index
      %c0_40 = arith.constant 0 : index
      %c0_41 = arith.constant 0 : index
      %57 = vector.load %arg9[%c0_39, %c0_40, %c0_41] : memref<2x128x1xf32, #tpu.memory_space<vmem>>, vector<2x128x1xf32>
      tpu.vector_store %arg9[%c0_39, %c0_40, %c0_41], %56 {strides = array<i32>} : memref<2x128x1xf32, #tpu.memory_space<vmem>>, vector<2x128x1xf32>,
      %cst_42 = arith.constant 0.000000e+00 : f32
      %58 = vector.broadcast %cst_42 : f32 to vector<2x128x1xf32>
      %c0_43 = arith.constant 0 : index
      %c0_44 = arith.constant 0 : index
      %c0_45 = arith.constant 0 : index
      %59 = vector.load %arg10[%c0_43, %c0_44, %c0_45] : memref<2x128x1xf32, #tpu.memory_space<vmem>>, vector<2x128x1xf32>
      tpu.vector_store %arg10[%c0_43, %c0_44, %c0_45], %58 {strides = array<i32>} : memref<2x128x1xf32, #tpu.memory_space<vmem>>, vector<2x128x1xf32>,
      %cst_46 = arith.constant 0.000000e+00 : f32
      %60 = vector.broadcast %cst_46 : f32 to vector<2x128x128xf32>
      %c0_47 = arith.constant 0 : index
      %c0_48 = arith.constant 0 : index
      %c0_49 = arith.constant 0 : index
      %61 = vector.load %arg11[%c0_47, %c0_48, %c0_49] : memref<2x128x128xf32, #tpu.memory_space<vmem>>, vector<2x128x128xf32>
      tpu.vector_store %arg11[%c0_47, %c0_48, %c0_49], %60 {strides = array<i32>} : memref<2x128x128xf32, #tpu.memory_space<vmem>>, vector<2x128x128xf32>,
    } else {
    }
    %c0 = arith.constant 0 : index
    %c0_1 = arith.constant 0 : index
    %c0_2 = arith.constant 0 : index
    %3 = vector.load %arg3[%c0, %c0_1, %c0_2] : memref<2x128x128xf32, #tpu.memory_space<vmem>>, vector<2x128x128xf32>
    %c0_3 = arith.constant 0 : index
    %c0_4 = arith.constant 0 : index
    %c0_5 = arith.constant 0 : index
    %4 = vector.load %arg4[%c0_3, %c0_4, %c0_5] : memref<2x128x128xf32, #tpu.memory_space<vmem>>, vector<2x128x128xf32>
    %c0_6 = arith.constant 0 : index
    %c0_7 = arith.constant 0 : index
    %5 = vector.load %arg6[%c0_6, %c0_7] : memref<2x128xf32, #tpu.memory_space<vmem>>, vector<2x128xf32>
    %6 = vector.shape_cast %5 : vector<2x128xf32> to vector<2x1x128xf32>
    %7 = vector.broadcast %6 : vector<2x1x128xf32> to vector<2x128x128xf32>
    %8 = arith.mulf %3, %7 : vector<2x128x128xf32>
    %cst = arith.constant dense<0.000000e+00> : vector<2x128xf32>
    %9 = vector.multi_reduction <add>, %8, %cst [2] : vector<2x128x128xf32> to vector<2x128xf32>
    %10 = vector.shape_cast %9 : vector<2x128xf32> to vector<2x128x1xf32>
    %c0_8 = arith.constant 0 : index
    %c0_9 = arith.constant 0 : index
    %11 = vector.load %arg5[%c0_8, %c0_9] : memref<2x128xf32, #tpu.memory_space<vmem>>, vector<2x128xf32>
    %12 = vector.shape_cast %11 : vector<2x128xf32> to vector<2x1x128xf32>
    %13 = vector.broadcast %12 : vector<2x1x128xf32> to vector<2x128x128xf32>
    %14 = arith.mulf %4, %13 : vector<2x128x128xf32>
    %cst_10 = arith.constant dense<0.000000e+00> : vector<2x128xf32>
    %15 = vector.multi_reduction <add>, %14, %cst_10 [2] : vector<2x128x128xf32> to vector<2x128xf32>
    %16 = vector.shape_cast %15 : vector<2x128xf32> to vector<2x1x128xf32>
    %17 = vector.broadcast %10 : vector<2x128x1xf32> to vector<2x128x128xf32>
    %18 = vector.broadcast %16 : vector<2x1x128xf32> to vector<2x128x128xf32>
    %19 = arith.addf %17, %18 : vector<2x128x128xf32>
    %cst_11 = arith.constant 0.000000e+00 : f32
    %20 = vector.broadcast %cst_11 : f32 to vector<2x128x128xf32>
    %21 = arith.cmpf oge, %19, %20 : vector<2x128x128xf32>
    %cst_12 = arith.constant 2.000000e-01 : f32
    %22 = vector.broadcast %cst_12 : f32 to vector<2x128x128xf32>
    %23 = arith.mulf %22, %19 : vector<2x128x128xf32>
    %24 = arith.select %21, %19, %23 : vector<2x128x128xi1>, vector<2x128x128xf32>
    %c0_13 = arith.constant 0 : index
    %c0_14 = arith.constant 0 : index
    %25 = vector.load %arg2[%c0_13, %c0_14] : memref<128x128xf32, #tpu.memory_space<vmem>>, vector<128x128xf32>
    %26 = vector.shape_cast %25 : vector<128x128xf32> to vector<1x128x128xf32>
    %27 = vector.broadcast %26 : vector<1x128x128xf32> to vector<2x128x128xf32>
    %28 = arith.addf %24, %27 : vector<2x128x128xf32>
    %c0_15 = arith.constant 0 : index
    %c0_16 = arith.constant 0 : index
    %c0_17 = arith.constant 0 : index
    %29 = vector.load %arg9[%c0_15, %c0_16, %c0_17] : memref<2x128x1xf32, #tpu.memory_space<vmem>>, vector<2x128x1xf32>
    %cst_18 = arith.constant dense<0xFF800000> : vector<2x128xf32>
    %30 = vector.multi_reduction <maximumf>, %28, %cst_18 [2] : vector<2x128x128xf32> to vector<2x128xf32>
    %31 = vector.shape_cast %30 : vector<2x128xf32> to vector<2x128x1xf32>
    %32 = arith.maximumf %29, %31 : vector<2x128x1xf32>
    %33 = arith.subf %29, %32 : vector<2x128x1xf32>
    %34 = math.exp %33 : vector<2x128x1xf32>
    %35 = vector.broadcast %32 : vector<2x128x1xf32> to vector<2x128x128xf32>
    %36 = arith.subf %28, %35 : vector<2x128x128xf32>
    %37 = math.exp %36 : vector<2x128x128xf32>
    %c0_19 = arith.constant 0 : index
    %c0_20 = arith.constant 0 : index
    %c0_21 = arith.constant 0 : index
    %38 = vector.load %arg10[%c0_19, %c0_20, %c0_21] : memref<2x128x1xf32, #tpu.memory_space<vmem>>, vector<2x128x1xf32>
    %39 = arith.mulf %34, %38 : vector<2x128x1xf32>
    %cst_22 = arith.constant dense<0.000000e+00> : vector<2x128xf32>
    %40 = vector.multi_reduction <add>, %37, %cst_22 [2] : vector<2x128x128xf32> to vector<2x128xf32>
    %41 = vector.shape_cast %40 : vector<2x128xf32> to vector<2x128x1xf32>
    %42 = arith.addf %39, %41 : vector<2x128x1xf32>
    %c0_23 = arith.constant 0 : index
    %c0_24 = arith.constant 0 : index
    %c0_25 = arith.constant 0 : index
    %43 = vector.load %arg10[%c0_23, %c0_24, %c0_25] : memref<2x128x1xf32, #tpu.memory_space<vmem>>, vector<2x128x1xf32>
    tpu.vector_store %arg10[%c0_23, %c0_24, %c0_25], %42 {strides = array<i32>} : memref<2x128x1xf32, #tpu.memory_space<vmem>>, vector<2x128x1xf32>,
    %c0_26 = arith.constant 0 : index
    %c0_27 = arith.constant 0 : index
    %c0_28 = arith.constant 0 : index
    %44 = vector.load %arg11[%c0_26, %c0_27, %c0_28] : memref<2x128x128xf32, #tpu.memory_space<vmem>>, vector<2x128x128xf32>
    %45 = vector.broadcast %34 : vector<2x128x1xf32> to vector<2x128x128xf32>
    %46 = arith.mulf %45, %44 : vector<2x128x128xf32>
    %47 = arith.truncf %37 : vector<2x128x128xf32> to vector<2x128x128xbf16>
    %48 = arith.truncf %4 : vector<2x128x128xf32> to vector<2x128x128xbf16>
    "tpu.trace_start"() <{level = 10 : i32, message = "hqk,hkd->hqd"}> : () -> ()
    %cst_29 = arith.constant dense<0.000000e+00> : vector<2x128x128xf32>
    %49 = tpu.matmul %47, %48, %cst_29 {dimension_numbers = #tpu.dot_dimension_numbers<[2], [1], [1], [2], [0, 0, 0, 1, 1, 2], [0], [0]>} : vector<2x128x128xbf16>, vector<2x128x128xbf16>, vector<2x128x128xf32> -> vector<2x128x128xf32>
    "tpu.trace_stop"() : () -> ()
    %50 = arith.addf %46, %49 : vector<2x128x128xf32>
    %c0_30 = arith.constant 0 : index
    %c0_31 = arith.constant 0 : index
    %c0_32 = arith.constant 0 : index
    %51 = vector.load %arg11[%c0_30, %c0_31, %c0_32] : memref<2x128x128xf32, #tpu.memory_space<vmem>>, vector<2x128x128xf32>
    tpu.vector_store %arg11[%c0_30, %c0_31, %c0_32], %50 {strides = array<i32>} : memref<2x128x128xf32, #tpu.memory_space<vmem>>, vector<2x128x128xf32>,
    %c0_33 = arith.constant 0 : index
    %c0_34 = arith.constant 0 : index
    %c0_35 = arith.constant 0 : index
    %52 = vector.load %arg9[%c0_33, %c0_34, %c0_35] : memref<2x128x1xf32, #tpu.memory_space<vmem>>, vector<2x128x1xf32>
    tpu.vector_store %arg9[%c0_33, %c0_34, %c0_35], %32 {strides = array<i32>} : memref<2x128x1xf32, #tpu.memory_space<vmem>>, vector<2x128x1xf32>,
    %c0_i32_36 = arith.constant 0 : i32
    %53 = arith.cmpi eq, %arg1, %c0_i32_36 : i32
    %54 = arith.extui %53 : i1 to i32
    %c0_i32_37 = arith.constant 0 : i32
    %55 = arith.cmpi ne, %54, %c0_i32_37 : i32
    scf.if %55 {
      %c0_38 = arith.constant 0 : index
      %c0_39 = arith.constant 0 : index
      %c0_40 = arith.constant 0 : index
      %56 = vector.load %arg10[%c0_38, %c0_39, %c0_40] : memref<2x128x1xf32, #tpu.memory_space<vmem>>, vector<2x128x1xf32>
      %57 = tpu.reciprocal %56 {approx = true} : vector<2x128x1xf32> -> vector<2x128x1xf32>
      %c0_41 = arith.constant 0 : index
      %c0_42 = arith.constant 0 : index
      %c0_43 = arith.constant 0 : index
      %58 = vector.load %arg11[%c0_41, %c0_42, %c0_43] : memref<2x128x128xf32, #tpu.memory_space<vmem>>, vector<2x128x128xf32>
      %59 = vector.broadcast %57 : vector<2x128x1xf32> to vector<2x128x128xf32>
      %60 = arith.mulf %58, %59 : vector<2x128x128xf32>
      %cst_44 = arith.constant dense<0.000000e+00> : vector<128x128xf32>
      %61 = vector.multi_reduction <add>, %60, %cst_44 [0] : vector<2x128x128xf32> to vector<128x128xf32>
      %cst_45 = arith.constant 5.000000e-01 : f32
      %62 = vector.broadcast %cst_45 : f32 to vector<128x128xf32>
      %63 = arith.mulf %61, %62 : vector<128x128xf32>
      %c0_46 = arith.constant 0 : index
      %c0_47 = arith.constant 0 : index
      %64 = vector.load %arg7[%c0_46, %c0_47] : memref<1x128xf32, #tpu.memory_space<vmem>>, vector<1x128xf32>
      %65 = vector.broadcast %64 : vector<1x128xf32> to vector<128x128xf32>
      %66 = arith.addf %63, %65 : vector<128x128xf32>
      %cst_48 = arith.constant 0.000000e+00 : f32
      %67 = vector.broadcast %cst_48 : f32 to vector<128x128xf32>
      %68 = arith.maximumf %66, %67 : vector<128x128xf32>
      %c0_49 = arith.constant 0 : index
      %c0_50 = arith.constant 0 : index
      %69 = vector.load %arg8[%c0_49, %c0_50] : memref<128x128xf32, #tpu.memory_space<vmem>>, vector<128x128xf32>
      tpu.vector_store %arg8[%c0_49, %c0_50], %68 {strides = array<i32>} : memref<128x128xf32, #tpu.memory_space<vmem>>, vector<128x128xf32>,
    } else {
    }
    return
  }
  func.func @transform_0(%arg0: i32, %arg1: i32) -> (i32, i32) {
    %c0_i32 = arith.constant 0 : i32
    return %arg0, %arg1 : i32, i32
  }
  func.func @transform_1(%arg0: i32, %arg1: i32) -> (i32, i32, i32) {
    %c0_i32 = arith.constant 0 : i32
    %c0_i32_0 = arith.constant 0 : i32
    %c0_i32_1 = arith.constant 0 : i32
    return %c0_i32, %arg0, %c0_i32_0 : i32, i32, i32
  }
  func.func @transform_2(%arg0: i32, %arg1: i32) -> (i32, i32, i32) {
    %c0_i32 = arith.constant 0 : i32
    %c0_i32_0 = arith.constant 0 : i32
    %c0_i32_1 = arith.constant 0 : i32
    return %c0_i32, %arg1, %c0_i32_0 : i32, i32, i32
  }
  func.func @transform_3(%arg0: i32, %arg1: i32) -> (i32, i32) {
    %c0_i32 = arith.constant 0 : i32
    %c0_i32_0 = arith.constant 0 : i32
    %c0_i32_1 = arith.constant 0 : i32
    return %c0_i32, %c0_i32_0 : i32, i32
  }
  func.func @transform_4(%arg0: i32, %arg1: i32) -> (i32, i32) {
    %c0_i32 = arith.constant 0 : i32
    %c0_i32_0 = arith.constant 0 : i32
    %c0_i32_1 = arith.constant 0 : i32
    return %c0_i32, %c0_i32_0 : i32, i32
  }
  func.func @transform_5(%arg0: i32, %arg1: i32) -> (i32, i32) {
    %c0_i32 = arith.constant 0 : i32
    %c0_i32_0 = arith.constant 0 : i32
    %c0_i32_1 = arith.constant 0 : i32
    return %c0_i32, %c0_i32_0 : i32, i32
  }
  func.func @transform_6(%arg0: i32, %arg1: i32) -> (i32, i32) {
    %c0_i32 = arith.constant 0 : i32
    %c0_i32_0 = arith.constant 0 : i32
    return %arg0, %c0_i32 : i32, i32
  }
}

module attributes {stable_mosaic.version = 11 : i64} {
  func.func @_spatial_lin_kernel(%arg0: i32, %arg1: memref<128x128xf32, #tpu.memory_space<vmem>>, %arg2: memref<128x32xf32, #tpu.memory_space<vmem>>, %arg3: memref<1x32xf32, #tpu.memory_space<vmem>>, %arg4: memref<128x32xf32, #tpu.memory_space<vmem>>, %arg5: memref<1x32xf32, #tpu.memory_space<vmem>>, %arg6: memref<128x32xf32, #tpu.memory_space<vmem>>, %arg7: memref<1x32xf32, #tpu.memory_space<vmem>>, %arg8: memref<32x32xf32, #tpu.memory_space<vmem>>, %arg9: memref<32x128xf32, #tpu.memory_space<vmem>>, %arg10: memref<1x128xf32, #tpu.memory_space<vmem>>, %arg11: memref<128x128xf32, #tpu.memory_space<vmem>>) attributes {dimension_semantics = [#tpu.dimension_semantics<parallel>], iteration_bounds = array<i64: 1>, scalar_prefetch = 0 : i64, scratch_operands = 0 : i64, tpu.core_type = #tpu.core_type<tc>, window_params = [{transform_indices = @transform_0, window_bounds = array<i64: 128, 128>}, {pipeline_mode = #tpu.pipeline_mode<synchronous>, transform_indices = @transform_1, window_bounds = array<i64: 128, 32>}, {pipeline_mode = #tpu.pipeline_mode<synchronous>, transform_indices = @transform_2, window_bounds = array<i64: 1, 32>}, {pipeline_mode = #tpu.pipeline_mode<synchronous>, transform_indices = @transform_3, window_bounds = array<i64: 128, 32>}, {pipeline_mode = #tpu.pipeline_mode<synchronous>, transform_indices = @transform_4, window_bounds = array<i64: 1, 32>}, {pipeline_mode = #tpu.pipeline_mode<synchronous>, transform_indices = @transform_5, window_bounds = array<i64: 128, 32>}, {pipeline_mode = #tpu.pipeline_mode<synchronous>, transform_indices = @transform_6, window_bounds = array<i64: 1, 32>}, {pipeline_mode = #tpu.pipeline_mode<synchronous>, transform_indices = @transform_7, window_bounds = array<i64: 32, 32>}, {pipeline_mode = #tpu.pipeline_mode<synchronous>, transform_indices = @transform_8, window_bounds = array<i64: 32, 128>}, {pipeline_mode = #tpu.pipeline_mode<synchronous>, transform_indices = @transform_9, window_bounds = array<i64: 1, 128>}, {transform_indices = @transform_10, window_bounds = array<i64: 128, 128>}]} {
    %c0 = arith.constant 0 : index
    %c0_0 = arith.constant 0 : index
    %0 = vector.load %arg1[%c0, %c0_0] : memref<128x128xf32, #tpu.memory_space<vmem>>, vector<128x128xf32>
    %1 = arith.truncf %0 : vector<128x128xf32> to vector<128x128xbf16>
    %c0_1 = arith.constant 0 : index
    %c0_2 = arith.constant 0 : index
    %2 = vector.load %arg2[%c0_1, %c0_2] : memref<128x32xf32, #tpu.memory_space<vmem>>, vector<128x32xf32>
    %3 = arith.truncf %2 : vector<128x32xf32> to vector<128x32xbf16>
    %cst = arith.constant dense<0.000000e+00> : vector<128x32xf32>
    %4 = tpu.matmul %1, %3, %cst {dimension_numbers = #tpu.dot_dimension_numbers<[1], [0], [0], [1], [0, 0, 1, 1], [], []>} : vector<128x128xbf16>, vector<128x32xbf16>, vector<128x32xf32> -> vector<128x32xf32>
    %c0_3 = arith.constant 0 : index
    %c0_4 = arith.constant 0 : index
    %5 = vector.load %arg3[%c0_3, %c0_4] : memref<1x32xf32, #tpu.memory_space<vmem>>, vector<1x32xf32>
    %6 = vector.broadcast %5 : vector<1x32xf32> to vector<128x32xf32>
    %7 = arith.addf %4, %6 : vector<128x32xf32>
    %c0_5 = arith.constant 0 : index
    %c0_6 = arith.constant 0 : index
    %8 = vector.load %arg4[%c0_5, %c0_6] : memref<128x32xf32, #tpu.memory_space<vmem>>, vector<128x32xf32>
    %9 = arith.truncf %8 : vector<128x32xf32> to vector<128x32xbf16>
    %cst_7 = arith.constant dense<0.000000e+00> : vector<128x32xf32>
    %10 = tpu.matmul %1, %9, %cst_7 {dimension_numbers = #tpu.dot_dimension_numbers<[1], [0], [0], [1], [0, 0, 1, 1], [], []>} : vector<128x128xbf16>, vector<128x32xbf16>, vector<128x32xf32> -> vector<128x32xf32>
    %c0_8 = arith.constant 0 : index
    %c0_9 = arith.constant 0 : index
    %11 = vector.load %arg5[%c0_8, %c0_9] : memref<1x32xf32, #tpu.memory_space<vmem>>, vector<1x32xf32>
    %12 = vector.broadcast %11 : vector<1x32xf32> to vector<128x32xf32>
    %13 = arith.addf %10, %12 : vector<128x32xf32>
    %c0_10 = arith.constant 0 : index
    %c0_11 = arith.constant 0 : index
    %14 = vector.load %arg6[%c0_10, %c0_11] : memref<128x32xf32, #tpu.memory_space<vmem>>, vector<128x32xf32>
    %15 = arith.truncf %14 : vector<128x32xf32> to vector<128x32xbf16>
    %cst_12 = arith.constant dense<0.000000e+00> : vector<128x32xf32>
    %16 = tpu.matmul %1, %15, %cst_12 {dimension_numbers = #tpu.dot_dimension_numbers<[1], [0], [0], [1], [0, 0, 1, 1], [], []>} : vector<128x128xbf16>, vector<128x32xbf16>, vector<128x32xf32> -> vector<128x32xf32>
    %c0_13 = arith.constant 0 : index
    %c0_14 = arith.constant 0 : index
    %17 = vector.load %arg7[%c0_13, %c0_14] : memref<1x32xf32, #tpu.memory_space<vmem>>, vector<1x32xf32>
    %18 = vector.broadcast %17 : vector<1x32xf32> to vector<128x32xf32>
    %19 = arith.addf %16, %18 : vector<128x32xf32>
    %c0_15 = arith.constant 0 : index
    %c0_16 = arith.constant 0 : index
    %20 = vector.load %arg8[%c0_15, %c0_16] : memref<32x32xf32, #tpu.memory_space<vmem>>, vector<32x32xf32>
    %cst_17 = arith.constant dense<0.000000e+00> : vector<128x32xf32>
    %21 = tpu.matmul %7, %20, %cst_17 {dimension_numbers = #tpu.dot_dimension_numbers<[1], [0], [0], [1], [0, 0, 1, 1], [], []>} : vector<128x32xf32>, vector<32x32xf32>, vector<128x32xf32> -> vector<128x32xf32>
    %22 = arith.mulf %13, %21 : vector<128x32xf32>
    %cst_18 = arith.constant 2.500000e-01 : f32
    %23 = vector.broadcast %cst_18 : f32 to vector<128x32xf32>
    %24 = arith.mulf %22, %23 : vector<128x32xf32>
    %cst_19 = arith.constant dense<0xFF800000> : vector<128xf32>
    %25 = vector.multi_reduction <maximumf>, %24, %cst_19 [1] : vector<128x32xf32> to vector<128xf32>
    %26 = vector.shape_cast %25 : vector<128xf32> to vector<128x1xf32>
    %27 = vector.broadcast %26 : vector<128x1xf32> to vector<128x32xf32>
    %28 = arith.subf %24, %27 : vector<128x32xf32>
    %29 = math.exp %28 : vector<128x32xf32>
    %cst_20 = arith.constant dense<0.000000e+00> : vector<128x32xf32>
    %30 = tpu.matmul %29, %20, %cst_20 {dimension_numbers = #tpu.dot_dimension_numbers<[1], [0], [0], [1], [0, 0, 1, 1], [], []>} : vector<128x32xf32>, vector<32x32xf32>, vector<128x32xf32> -> vector<128x32xf32>
    %cst_21 = arith.constant 1.000000e-30 : f32
    %31 = vector.broadcast %cst_21 : f32 to vector<128x32xf32>
    %32 = arith.maximumf %30, %31 : vector<128x32xf32>
    %33 = tpu.reciprocal %32 {approx = true} : vector<128x32xf32> -> vector<128x32xf32>
    %34 = arith.mulf %29, %33 : vector<128x32xf32>
    %cst_22 = arith.constant dense<0.000000e+00> : vector<128x32xf32>
    %35 = tpu.matmul %34, %20, %cst_22 {dimension_numbers = #tpu.dot_dimension_numbers<[1], [0], [0], [1], [0, 0, 1, 1], [], []>} : vector<128x32xf32>, vector<32x32xf32>, vector<128x32xf32> -> vector<128x32xf32>
    %36 = arith.mulf %19, %35 : vector<128x32xf32>
    %37 = arith.truncf %36 : vector<128x32xf32> to vector<128x32xbf16>
    %c0_23 = arith.constant 0 : index
    %c0_24 = arith.constant 0 : index
    %38 = vector.load %arg9[%c0_23, %c0_24] : memref<32x128xf32, #tpu.memory_space<vmem>>, vector<32x128xf32>
    %39 = arith.truncf %38 : vector<32x128xf32> to vector<32x128xbf16>
    %cst_25 = arith.constant dense<0.000000e+00> : vector<128x128xf32>
    %40 = tpu.matmul %37, %39, %cst_25 {dimension_numbers = #tpu.dot_dimension_numbers<[1], [0], [0], [1], [0, 0, 1, 1], [], []>} : vector<128x32xbf16>, vector<32x128xbf16>, vector<128x128xf32> -> vector<128x128xf32>
    %c0_26 = arith.constant 0 : index
    %c0_27 = arith.constant 0 : index
    %41 = vector.load %arg10[%c0_26, %c0_27] : memref<1x128xf32, #tpu.memory_space<vmem>>, vector<1x128xf32>
    %42 = vector.broadcast %41 : vector<1x128xf32> to vector<128x128xf32>
    %43 = arith.addf %40, %42 : vector<128x128xf32>
    %c0_28 = arith.constant 0 : index
    %c0_29 = arith.constant 0 : index
    %44 = vector.load %arg11[%c0_28, %c0_29] : memref<128x128xf32, #tpu.memory_space<vmem>>, vector<128x128xf32>
    tpu.vector_store %arg11[%c0_28, %c0_29], %43 {strides = array<i32>} : memref<128x128xf32, #tpu.memory_space<vmem>>, vector<128x128xf32>,
    return
  }
  func.func @transform_0(%arg0: i32) -> (i32, i32) {
    %c0_i32 = arith.constant 0 : i32
    %c0_i32_0 = arith.constant 0 : i32
    return %arg0, %c0_i32 : i32, i32
  }
  func.func @transform_1(%arg0: i32) -> (i32, i32) {
    %c0_i32 = arith.constant 0 : i32
    %c0_i32_0 = arith.constant 0 : i32
    %c0_i32_1 = arith.constant 0 : i32
    return %c0_i32, %c0_i32_0 : i32, i32
  }
  func.func @transform_2(%arg0: i32) -> (i32, i32) {
    %c0_i32 = arith.constant 0 : i32
    %c0_i32_0 = arith.constant 0 : i32
    %c0_i32_1 = arith.constant 0 : i32
    return %c0_i32, %c0_i32_0 : i32, i32
  }
  func.func @transform_3(%arg0: i32) -> (i32, i32) {
    %c0_i32 = arith.constant 0 : i32
    %c0_i32_0 = arith.constant 0 : i32
    %c0_i32_1 = arith.constant 0 : i32
    return %c0_i32, %c0_i32_0 : i32, i32
  }
  func.func @transform_4(%arg0: i32) -> (i32, i32) {
    %c0_i32 = arith.constant 0 : i32
    %c0_i32_0 = arith.constant 0 : i32
    %c0_i32_1 = arith.constant 0 : i32
    return %c0_i32, %c0_i32_0 : i32, i32
  }
  func.func @transform_5(%arg0: i32) -> (i32, i32) {
    %c0_i32 = arith.constant 0 : i32
    %c0_i32_0 = arith.constant 0 : i32
    %c0_i32_1 = arith.constant 0 : i32
    return %c0_i32, %c0_i32_0 : i32, i32
  }
  func.func @transform_6(%arg0: i32) -> (i32, i32) {
    %c0_i32 = arith.constant 0 : i32
    %c0_i32_0 = arith.constant 0 : i32
    %c0_i32_1 = arith.constant 0 : i32
    return %c0_i32, %c0_i32_0 : i32, i32
  }
  func.func @transform_7(%arg0: i32) -> (i32, i32) {
    %c0_i32 = arith.constant 0 : i32
    %c0_i32_0 = arith.constant 0 : i32
    %c0_i32_1 = arith.constant 0 : i32
    return %c0_i32, %c0_i32_0 : i32, i32
  }
  func.func @transform_8(%arg0: i32) -> (i32, i32) {
    %c0_i32 = arith.constant 0 : i32
    %c0_i32_0 = arith.constant 0 : i32
    %c0_i32_1 = arith.constant 0 : i32
    return %c0_i32, %c0_i32_0 : i32, i32
  }
  func.func @transform_9(%arg0: i32) -> (i32, i32) {
    %c0_i32 = arith.constant 0 : i32
    %c0_i32_0 = arith.constant 0 : i32
    %c0_i32_1 = arith.constant 0 : i32
    return %c0_i32, %c0_i32_0 : i32, i32
  }
  func.func @transform_10(%arg0: i32) -> (i32, i32) {
    %c0_i32 = arith.constant 0 : i32
    %c0_i32_0 = arith.constant 0 : i32
    return %arg0, %c0_i32 : i32, i32
  }
}

</mosaic_0001>

<bundles_post_ra>
// kernel: forward.9
= control target key start
LH: loop header
LB: loop body
LE: loop exit
PB: predicated region body
PF: predicated region fallthrough
CT: control target
= control target key end

     0   :  { %s499_s9 = smov 0   ;;  %s501_s10 = smov 0   ;;  %s623_s0 = inlined_call_operand.vmem [shape: f32[128,128], index: 0, kind: input, shape index: {}]   ;;  %s624_s1 = inlined_call_operand.vmem [shape: f32[2,128,128], index: 1, kind: input, shape index: {}]   ;;  %s625_s2 = inlined_call_operand.vmem [shape: f32[2,128,128], index: 2, kind: output, shape index: {}]  }
   0x1   :  { %s503_s11 = smov 0  }
   0x2 LB: > { %s21_s12 = sadd.s32 1, %s478_s10  ;;  %p403_p0 = scmp.ge.s32.totalorder %s482_s11, 1  ;;  %s482_s11 = sphi %s503_s11, %s12_s11   ;;  %s478_s10 = sphi %s501_s10, %s627_s10   ;;  %s474_s9 = sphi %s499_s9, %s626_s9  }
   0x3   : > { %p22_p1 = scmp.ge.s32.totalorder %s21_s12, 2  ;;  %p137_p2 = scmp.lt.s32.totalorder %s482_s11, 3 }
   0x5   : > { %s629_s12 = smov (%p22_p1, %s21_s12), 0  ;;  %p138_p3 = pnand %p403_p0, %p137_p2 }
   0x6   : > { %p174_p4 = scmp.lt.s32.totalorder (!%p138_p3), %s474_s9, 1 }
   0x7   : > { %141 = sbr.rel (%p138_p3) target bundleno = 208 (0xd0), region = 28 }
   0xc   : > { %s631_s9 = smov (!%p174_p4, %s474_s9), 1  ;;  %v189_v23 = vld [vmem:[%s623_s0] sm:$0xff]  ;;  %v190_v24 = vld [vmem:[%s623_s0 + $0x8] sm:$0xff]  ;;  %v191_v36 = vld [vmem:[%s623_s0 + $0x10] sm:$0xff] }
   0xd   : > { %s410_s13 = sshll.u32 %s631_s9, 7  ;;  %v193_v26 = vld [vmem:[%s623_s0 + $0x20] sm:$0xff]  ;;  %v194_v27 = vld [vmem:[%s623_s0 + $0x28] sm:$0xff]  ;;  %v205_v32 = vpack.c.bf16 %v190_v24, %v189_v23  ;;  %v192_v37 = vld [vmem:[%s623_s0 + $0x18] sm:$0xff] }
   0xe   : > { %s525_s16 = scalar_lea.vmem %s624_s1, %s410_s13  ;;  %v197_v28 = vld [vmem:[%s623_s0 + $0x40] sm:$0xff]  ;;  %v198_v29 = vld [vmem:[%s623_s0 + $0x48] sm:$0xff]  ;;  %v207_v33 = vpack.c.bf16 %v194_v27, %v193_v26  ;;  %v195_v38 = vld [vmem:[%s623_s0 + $0x30] sm:$0xff]  ;;  %v206_v44 = vpack.c.bf16 %v192_v37, %v191_v36  ;;  %s596_s28 = scalar_lea.vmem %s625_s2, %s410_s13 }
   0xf   : > { %v227_v0 = vld [vmem:[%s525_s16 + $0x70] sm:$0xff]  ;;  %v228_v1 = vld [vmem:[%s525_s16 + $0x78] sm:$0xff]  ;;  %v225_v2 = vld [vmem:[%s525_s16 + $0x60] sm:$0xff]  ;;  %v209_v34 = vpack.c.bf16 %v198_v29, %v197_v28 }
  0x10   : > { %v236_v3 = vpack.c.bf16 %v228_v1, %v227_v0  ;;  %v226_v4 = vld [vmem:[%s525_s16 + $0x68] sm:$0xff]  ;;  %v223_v6 = vld [vmem:[%s525_s16 + $0x50] sm:$0xff]  ;;  %v224_v7 = vld [vmem:[%s525_s16 + $0x58] sm:$0xff] }
  0x11   : > { %v235_v5 = vpack.c.bf16 %v226_v4, %v225_v2  ;;  %v234_v8 = vpack.c.bf16 %v224_v7, %v223_v6  ;;  %v221_v9 = vld [vmem:[%s525_s16 + $0x40] sm:$0xff]  ;;  %v222_v10 = vld [vmem:[%s525_s16 + $0x48] sm:$0xff]  ;;  %v219_v12 = vld [vmem:[%s525_s16 + $0x30] sm:$0xff] }
  0x12   : > { %237 = vmatpush.bf16.msra.mxu0 %v236_v3  ;;  %412 = vmatpush.bf16.msra.mxu1 %v236_v3  ;;  %v233_v11 = vpack.c.bf16 %v222_v10, %v221_v9  ;;  %v220_v13 = vld [vmem:[%s525_s16 + $0x38] sm:$0xff]  ;;  %v217_v15 = vld [vmem:[%s525_s16 + $0x20] sm:$0xff]  ;;  %v218_v16 = vld [vmem:[%s525_s16 + $0x28] sm:$0xff] }
  0x13   : > { %413 = vmatpush.bf16.msra.mxu2 %v236_v3  ;;  %414 = vmatpush.bf16.msra.mxu3 %v236_v3  ;;  %v232_v14 = vpack.c.bf16 %v220_v13, %v219_v12  ;;  %v231_v17 = vpack.c.bf16 %v218_v16, %v217_v15  ;;  %v215_v18 = vld [vmem:[%s525_s16 + $0x10] sm:$0xff]  ;;  %v216_v19 = vld [vmem:[%s525_s16 + $0x18] sm:$0xff]  ;;  %v213_v21 = vld [vmem:[%s525_s16] sm:$0xff] }
  0x14   : > { %v230_v20 = vpack.c.bf16 %v216_v19, %v215_v18  ;;  %v214_v22 = vld [vmem:[%s525_s16 + $0x8] sm:$0xff]  ;;  %v201_v30 = vld [vmem:[%s623_s0 + $0x60] sm:$0xff]  ;;  %v196_v39 = vld [vmem:[%s623_s0 + $0x38] sm:$0xff] }
  0x15   : > { %v229_v25 = vpack.c.bf16 %v214_v22, %v213_v21  ;;  %v202_v31 = vld [vmem:[%s623_s0 + $0x68] sm:$0xff]  ;;  %v199_v40 = vld [vmem:[%s623_s0 + $0x50] sm:$0xff]  ;;  %v200_v41 = vld [vmem:[%s623_s0 + $0x58] sm:$0xff]  ;;  %v208_v45 = vpack.c.bf16 %v196_v39, %v195_v38 }
  0x16   : > { %238 = vmatpush.bf16.msra.mxu0 %v235_v5  ;;  %415 = vmatpush.bf16.msra.mxu1 %v235_v5  ;;  %v211_v35 = vpack.c.bf16 %v202_v31, %v201_v30  ;;  %v203_v42 = vld [vmem:[%s623_s0 + $0x70] sm:$0xff]  ;;  %v204_v43 = vld [vmem:[%s623_s0 + $0x78] sm:$0xff]  ;;  %v210_v46 = vpack.c.bf16 %v200_v41, %v199_v40 }
  0x17   : > { %416 = vmatpush.bf16.msra.mxu2 %v235_v5  ;;  %417 = vmatpush.bf16.msra.mxu3 %v235_v5  ;;  %v212_v47 = vpack.c.bf16 %v204_v43, %v203_v42 }
  0x1a   : > { %239 = vmatpush.bf16.msra.mxu0 %v234_v8  ;;  %418 = vmatpush.bf16.msra.mxu1 %v234_v8 }
  0x1b   : > { %419 = vmatpush.bf16.msra.mxu2 %v234_v8  ;;  %420 = vmatpush.bf16.msra.mxu3 %v234_v8 }
  0x1e   : > { %240 = vmatpush.bf16.msra.mxu0 %v233_v11  ;;  %421 = vmatpush.bf16.msra.mxu1 %v233_v11 }
  0x1f   : > { %422 = vmatpush.bf16.msra.mxu2 %v233_v11  ;;  %423 = vmatpush.bf16.msra.mxu3 %v233_v11 }
  0x22   : > { %241 = vmatpush.bf16.msra.mxu0 %v232_v14  ;;  %424 = vmatpush.bf16.msra.mxu1 %v232_v14 }
  0x23   : > { %425 = vmatpush.bf16.msra.mxu2 %v232_v14  ;;  %426 = vmatpush.bf16.msra.mxu3 %v232_v14 }
  0x26   : > { %242 = vmatpush.bf16.msra.mxu0 %v231_v17  ;;  %427 = vmatpush.bf16.msra.mxu1 %v231_v17 }
  0x27   : > { %428 = vmatpush.bf16.msra.mxu2 %v231_v17  ;;  %429 = vmatpush.bf16.msra.mxu3 %v231_v17 }
  0x2a   : > { %243 = vmatpush.bf16.msra.mxu0 %v230_v20  ;;  %430 = vmatpush.bf16.msra.mxu1 %v230_v20 }
  0x2b   : > { %431 = vmatpush.bf16.msra.mxu2 %v230_v20  ;;  %432 = vmatpush.bf16.msra.mxu3 %v230_v20 }
  0x2e   : > { %244 = vmatpush.bf16.msra.mxu0 %v229_v25  ;;  %433 = vmatpush.bf16.msra.mxu1 %v229_v25 }
  0x2f   : > { %434 = vmatpush.bf16.msra.mxu2 %v229_v25  ;;  %435 = vmatpush.bf16.msra.mxu3 %v229_v25 }
  0x31   : > { %245 = vmatmul.bf16.vlgmr.msra.gmra.mxu0 %v205_v32  ;;  %255 = vmatmul.bf16.vlgmr.msra.gmra.mxu1 %v207_v33 }
  0x32   : > { %265 = vmatmul.bf16.vlgmr.msra.gmra.mxu2 %v209_v34  ;;  %275 = vmatmul.bf16.vlgmr.msra.gmra.mxu3 %v211_v35 }
  0x41   : > { %250 = vmatmul.bf16.gmra.mxu0 %v206_v44  ;;  %260 = vmatmul.bf16.gmra.mxu1 %v208_v45 }
  0x42   : > { %270 = vmatmul.bf16.gmra.mxu2 %v210_v46  ;;  %280 = vmatmul.bf16.gmra.mxu3 %v212_v47 }
  0xae   : > { %v246_v48 = vpop.f32.mrf.mxu0  ;;  %v256_v49 = vpop.f32.mrf.mxu1 }
  0xaf   : > { %286 = vst [vmem:[%s596_s28] sm:$0xff] %v246_v48 }
  0xb0   : > { %290 = vst [vmem:[%s596_s28 + $0x20] sm:$0xff] %v256_v49 }
  0xb5   : > { %v266_v50 = vpop.f32.mrf.mxu2  ;;  %v276_v51 = vpop.f32.mrf.mxu3 }
  0xb6   : > { %294 = vst [vmem:[%s596_s28 + $0x40] sm:$0xff] %v266_v50  ;;  %v248_v52 = vpop.f32.mrf.mxu0  ;;  %v258_v53 = vpop.f32.mrf.mxu1 }
  0xb7   : > { %298 = vst [vmem:[%s596_s28 + $0x60] sm:$0xff] %v276_v51 }
  0xb8   : > { %287 = vst [vmem:[%s596_s28 + $0x8] sm:$0xff] %v248_v52 }
  0xb9   : > { %291 = vst [vmem:[%s596_s28 + $0x28] sm:$0xff] %v258_v53 }
  0xbd   : > { %v268_v54 = vpop.f32.mrf.mxu2  ;;  %v278_v55 = vpop.f32.mrf.mxu3 }
  0xbe   : > { %295 = vst [vmem:[%s596_s28 + $0x48] sm:$0xff] %v268_v54  ;;  %v251_v56 = vpop.f32.mrf.mxu0  ;;  %v261_v57 = vpop.f32.mrf.mxu1 }
  0xbf   : > { %299 = vst [vmem:[%s596_s28 + $0x68] sm:$0xff] %v278_v55 }
  0xc0   : > { %288 = vst [vmem:[%s596_s28 + $0x10] sm:$0xff] %v251_v56 }
  0xc1   : > { %292 = vst [vmem:[%s596_s28 + $0x30] sm:$0xff] %v261_v57 }
  0xc5   : > { %v271_v58 = vpop.f32.mrf.mxu2  ;;  %v281_v59 = vpop.f32.mrf.mxu3 }
  0xc6   : > { %296 = vst [vmem:[%s596_s28 + $0x50] sm:$0xff] %v271_v58  ;;  %v253_v60 = vpop.f32.mrf.mxu0  ;;  %v263_v61 = vpop.f32.mrf.mxu1 }
  0xc7   : > { %300 = vst [vmem:[%s596_s28 + $0x70] sm:$0xff] %v281_v59 }
  0xc8   : > { %289 = vst [vmem:[%s596_s28 + $0x18] sm:$0xff] %v253_v60 }
  0xc9   : > { %293 = vst [vmem:[%s596_s28 + $0x38] sm:$0xff] %v263_v61 }
  0xcd   : > { %v273_v62 = vpop.f32.mrf.mxu2  ;;  %v283_v63 = vpop.f32.mrf.mxu3 }
  0xce   : > { %297 = vst [vmem:[%s596_s28 + $0x58] sm:$0xff] %v273_v62 }
  0xcf   : > { %301 = vst [vmem:[%s596_s28 + $0x78] sm:$0xff] %v283_v63 }
  0xd0 PF: > { %s12_s11 = sadd.s32 1, %s482_s11   ;;  %s626_s9 = smov %s478_s10 }
  0xd1   : > { %p9_p5 = scmp.ge.s32.totalorder %s12_s11, 4   ;;  %s627_s10 = smov %s629_s12 }
  0xd3   :  { %11 = sbr.rel (!%p9_p5) target bundleno = 2 (0x2), region = 61 }

// kernel: forward.7
= control target key start
LH: loop header
LB: loop body
LE: loop exit
PB: predicated region body
PF: predicated region fallthrough
CT: control target
= control target key end

     0   :  { %s633_s1 = inlined_call_operand.vmem [shape: f32[128,128], index: 1, kind: input, shape index: {}]   ;;  %s634_s0 = inlined_call_operand.vmem [shape: bf16[128,128], index: 0, kind: input, shape index: {}]   ;;  %s635_s2 = inlined_call_operand.vmem [shape: f32[128,128], index: 2, kind: input, shape index: {}]   ;;  %s636_s3 = inlined_call_operand.vmem [shape: f32[1,128], index: 3, kind: input, shape index: {}]   ;;  %s637_s4 = inlined_call_operand.vmem [shape: f32[128,128], index: 4, kind: output, shape index: {}]  }
   0x1   :  { %v83_v0 = vld [vmem:[%s633_s1 + $0x70] sm:$0xff]  ;;  %v84_v1 = vld [vmem:[%s633_s1 + $0x78] sm:$0xff]  ;;  %v81_v2 = vld [vmem:[%s633_s1 + $0x60] sm:$0xff] }
   0x2   :  { %v92_v3 = vpack.c.bf16 %v84_v1, %v83_v0  ;;  %v82_v4 = vld [vmem:[%s633_s1 + $0x68] sm:$0xff]  ;;  %v79_v6 = vld [vmem:[%s633_s1 + $0x50] sm:$0xff]  ;;  %v80_v7 = vld [vmem:[%s633_s1 + $0x58] sm:$0xff] }
   0x3   :  { %v91_v5 = vpack.c.bf16 %v82_v4, %v81_v2  ;;  %v90_v8 = vpack.c.bf16 %v80_v7, %v79_v6  ;;  %v77_v9 = vld [vmem:[%s633_s1 + $0x40] sm:$0xff]  ;;  %v78_v10 = vld [vmem:[%s633_s1 + $0x48] sm:$0xff]  ;;  %v75_v12 = vld [vmem:[%s633_s1 + $0x30] sm:$0xff] }
   0x4   :  { %141 = vmatpush.bf16.msra.mxu0 %v92_v3  ;;  %402 = vmatpush.bf16.msra.mxu2 %v92_v3  ;;  %v89_v11 = vpack.c.bf16 %v78_v10, %v77_v9  ;;  %v76_v13 = vld [vmem:[%s633_s1 + $0x38] sm:$0xff]  ;;  %v73_v15 = vld [vmem:[%s633_s1 + $0x20] sm:$0xff]  ;;  %v74_v16 = vld [vmem:[%s633_s1 + $0x28] sm:$0xff] }
   0x5   :  { %v88_v14 = vpack.c.bf16 %v76_v13, %v75_v12  ;;  %v87_v17 = vpack.c.bf16 %v74_v16, %v73_v15  ;;  %v71_v18 = vld [vmem:[%s633_s1 + $0x10] sm:$0xff]  ;;  %v72_v19 = vld [vmem:[%s633_s1 + $0x18] sm:$0xff]  ;;  %v69_v21 = vld [vmem:[%s633_s1] sm:$0xff] }
   0x6   :  { %v86_v20 = vpack.c.bf16 %v72_v19, %v71_v18  ;;  %v70_v22 = vld [vmem:[%s633_s1 + $0x8] sm:$0xff]  ;;  %v394_v24 = vld [vmem:[%s634_s0] sm:$0xff]  ;;  %v263_v28 = vld [vmem:[%s635_s2 + $0x70] sm:$0xff] }
   0x7   :  { %v85_v23 = vpack.c.bf16 %v70_v22, %v69_v21  ;;  %v398_v25 = vld [vmem:[%s634_s0 + $0x20] sm:$0xff]  ;;  %v395_v26 = vld [vmem:[%s634_s0 + $0x8] sm:$0xff]  ;;  %v264_v29 = vld [vmem:[%s635_s2 + $0x78] sm:$0xff] }
   0x8   :  { %142 = vmatpush.bf16.msra.mxu0 %v91_v5  ;;  %403 = vmatpush.bf16.msra.mxu2 %v91_v5  ;;  %v399_v27 = vld [vmem:[%s634_s0 + $0x28] sm:$0xff]  ;;  %v261_v30 = vld [vmem:[%s635_s2 + $0x60] sm:$0xff]  ;;  %v272_v31 = vpack.c.bf16 %v264_v29, %v263_v28  ;;  %v259_v34 = vld [vmem:[%s635_s2 + $0x50] sm:$0xff] }
   0x9   :  { %v262_v32 = vld [vmem:[%s635_s2 + $0x68] sm:$0xff]  ;;  %v260_v35 = vld [vmem:[%s635_s2 + $0x58] sm:$0xff]  ;;  %v257_v37 = vld [vmem:[%s635_s2 + $0x40] sm:$0xff] }
   0xa   :  { %277 = vmatpush.bf16.msra.mxu1 %v272_v31  ;;  %v271_v33 = vpack.c.bf16 %v262_v32, %v261_v30  ;;  %410 = vmatpush.bf16.msra.mxu3 %v272_v31  ;;  %v270_v36 = vpack.c.bf16 %v260_v35, %v259_v34  ;;  %v258_v38 = vld [vmem:[%s635_s2 + $0x48] sm:$0xff]  ;;  %v396_v39 = vld [vmem:[%s634_s0 + $0x10] sm:$0xff]  ;;  %v256_v43 = vld [vmem:[%s635_s2 + $0x38] sm:$0xff] }
   0xb   :  { %v269_v40 = vpack.c.bf16 %v258_v38, %v257_v37  ;;  %v400_v41 = vld [vmem:[%s634_s0 + $0x30] sm:$0xff]  ;;  %v397_v45 = vld [vmem:[%s634_s0 + $0x18] sm:$0xff]  ;;  %v253_v47 = vld [vmem:[%s635_s2 + $0x20] sm:$0xff] }
   0xc   :  { %143 = vmatpush.bf16.msra.mxu0 %v90_v8  ;;  %404 = vmatpush.bf16.msra.mxu2 %v90_v8  ;;  %v255_v42 = vld [vmem:[%s635_s2 + $0x30] sm:$0xff]  ;;  %v401_v46 = vld [vmem:[%s634_s0 + $0x38] sm:$0xff]  ;;  %v254_v48 = vld [vmem:[%s635_s2 + $0x28] sm:$0xff] }
   0xd   :  { %v268_v44 = vpack.c.bf16 %v256_v43, %v255_v42  ;;  %v267_v49 = vpack.c.bf16 %v254_v48, %v253_v47  ;;  %v251_v50 = vld [vmem:[%s635_s2 + $0x10] sm:$0xff]  ;;  %v252_v51 = vld [vmem:[%s635_s2 + $0x18] sm:$0xff]  ;;  %v249_v53 = vld [vmem:[%s635_s2] sm:$0xff] }
   0xe   :  { %278 = vmatpush.bf16.msra.mxu1 %v271_v33  ;;  %411 = vmatpush.bf16.msra.mxu3 %v271_v33  ;;  %v266_v52 = vpack.c.bf16 %v252_v51, %v251_v50  ;;  %v250_v54 = vld [vmem:[%s635_s2 + $0x8] sm:$0xff]  ;;  %v567_v16 = vld [vmem:[%s636_s3] ss:$0 sm:$0xff] }
   0xf   :  { %v265_v55 = vpack.c.bf16 %v250_v54, %v249_v53 }
  0x10   :  { %144 = vmatpush.bf16.msra.mxu0 %v89_v11  ;;  %405 = vmatpush.bf16.msra.mxu2 %v89_v11 }
  0x12   :  { %279 = vmatpush.bf16.msra.mxu1 %v270_v36  ;;  %412 = vmatpush.bf16.msra.mxu3 %v270_v36 }
  0x14   :  { %145 = vmatpush.bf16.msra.mxu0 %v88_v14  ;;  %406 = vmatpush.bf16.msra.mxu2 %v88_v14 }
  0x16   :  { %280 = vmatpush.bf16.msra.mxu1 %v269_v40  ;;  %413 = vmatpush.bf16.msra.mxu3 %v269_v40 }
  0x18   :  { %146 = vmatpush.bf16.msra.mxu0 %v87_v17  ;;  %407 = vmatpush.bf16.msra.mxu2 %v87_v17 }
  0x1a   :  { %281 = vmatpush.bf16.msra.mxu1 %v268_v44  ;;  %414 = vmatpush.bf16.msra.mxu3 %v268_v44 }
  0x1c   :  { %147 = vmatpush.bf16.msra.mxu0 %v86_v20  ;;  %408 = vmatpush.bf16.msra.mxu2 %v86_v20 }
  0x1e   :  { %282 = vmatpush.bf16.msra.mxu1 %v267_v49  ;;  %415 = vmatpush.bf16.msra.mxu3 %v267_v49 }
  0x20   :  { %148 = vmatpush.bf16.msra.mxu0 %v85_v23  ;;  %409 = vmatpush.bf16.msra.mxu2 %v85_v23 }
  0x22   :  { %283 = vmatpush.bf16.msra.mxu1 %v266_v52  ;;  %416 = vmatpush.bf16.msra.mxu3 %v266_v52 }
  0x23   :  { %149 = vmatmul.bf16.vlgmr.msra.gmra.mxu0 %v394_v24  ;;  %169 = vmatmul.bf16.vlgmr.msra.gmra.mxu2 %v398_v25 }
  0x26   :  { %284 = vmatpush.bf16.msra.mxu1 %v265_v55  ;;  %417 = vmatpush.bf16.msra.mxu3 %v265_v55 }
  0x33   :  { %154 = vmatmul.bf16.gmra.mxu0 %v395_v26  ;;  %174 = vmatmul.bf16.gmra.mxu2 %v399_v27 }
  0x43   :  { %159 = vmatmul.bf16.gmra.mxu0 %v396_v39  ;;  %179 = vmatmul.bf16.gmra.mxu2 %v400_v41 }
  0x53   :  { %164 = vmatmul.bf16.gmra.mxu0 %v397_v45  ;;  %184 = vmatmul.bf16.gmra.mxu2 %v401_v46 }
  0xa0   :  { %v150_v56 = vpop.f32.mrf.mxu0 }
  0xa6   :  { %v170_v57 = vpop.f32.mrf.mxu2 }
  0xa8   :  { %v152_v58 = vpop.f32.mrf.mxu0 }
  0xa9   :  { %v241_v59 = vpack.c.bf16 %v152_v58, %v150_v56 }
  0xab   :  { %285 = vmatmul.bf16.vlgmr.msra.gmra.mxu1 %v241_v59 }
  0xae   :  { %v172_v60 = vpop.f32.mrf.mxu2 }
  0xaf   :  { %v245_v61 = vpack.c.bf16 %v172_v60, %v170_v57 }
  0xb0   :  { %v155_v62 = vpop.f32.mrf.mxu0 }
  0xb1   :  { %305 = vmatmul.bf16.vlgmr.msra.gmra.mxu3 %v245_v61 }
  0xb6   :  { %v175_v63 = vpop.f32.mrf.mxu2 }
  0xb8   :  { %v157_v0 = vpop.f32.mrf.mxu0 }
  0xb9   :  { %v242_v1 = vpack.c.bf16 %v157_v0, %v155_v62 }
  0xbb   :  { %290 = vmatmul.bf16.gmra.mxu1 %v242_v1 }
  0xbe   :  { %v177_v2 = vpop.f32.mrf.mxu2 }
  0xbf   :  { %v246_v3 = vpack.c.bf16 %v177_v2, %v175_v63 }
  0xc0   :  { %v160_v4 = vpop.f32.mrf.mxu0 }
  0xc1   :  { %310 = vmatmul.bf16.gmra.mxu3 %v246_v3 }
  0xc6   :  { %v180_v5 = vpop.f32.mrf.mxu2 }
  0xc8   :  { %v162_v6 = vpop.f32.mrf.mxu0 }
  0xc9   :  { %v243_v7 = vpack.c.bf16 %v162_v6, %v160_v4 }
  0xcb   :  { %295 = vmatmul.bf16.gmra.mxu1 %v243_v7 }
  0xce   :  { %v182_v8 = vpop.f32.mrf.mxu2 }
  0xcf   :  { %v247_v9 = vpack.c.bf16 %v182_v8, %v180_v5 }
  0xd0   :  { %v165_v10 = vpop.f32.mrf.mxu0 }
  0xd1   :  { %315 = vmatmul.bf16.gmra.mxu3 %v247_v9 }
  0xd6   :  { %v185_v11 = vpop.f32.mrf.mxu2 }
  0xd8   :  { %v167_v12 = vpop.f32.mrf.mxu0 }
  0xd9   :  { %v244_v13 = vpack.c.bf16 %v167_v12, %v165_v10 }
  0xdb   :  { %300 = vmatmul.bf16.gmra.mxu1 %v244_v13 }
  0xde   :  { %v187_v14 = vpop.f32.mrf.mxu2 }
  0xdf   :  { %v248_v15 = vpack.c.bf16 %v187_v14, %v185_v11 }
  0xe1   :  { %320 = vmatmul.bf16.gmra.mxu3 %v248_v15 }
 0x128   :  { %v286_v17 = vpop.f32.mrf.mxu1 }
 0x129   :  { %v287_v18 = vadd.f32 %v567_v16, %v286_v17 }
 0x12b   :  { %v326_v19 = vmax.f32 %v287_v18, 0.0 }
 0x12d   :  { %342 = vst [vmem:[%s637_s4] sm:$0xff] %v326_v19 }
 0x130   :  { %v288_v20 = vpop.f32.mrf.mxu1 }
 0x131   :  { %v289_v21 = vadd.f32 %v567_v16, %v288_v20 }
 0x133   :  { %v327_v22 = vmax.f32 %v289_v21, 0.0 }
 0x134   :  { %v306_v23 = vpop.f32.mrf.mxu3 }
 0x135   :  { %343 = vst [vmem:[%s637_s4 + $0x8] sm:$0xff] %v327_v22  ;;  %v307_v24 = vadd.f32 %v567_v16, %v306_v23 }
 0x137   :  { %v334_v25 = vmax.f32 %v307_v24, 0.0 }
 0x138   :  { %v291_v26 = vpop.f32.mrf.mxu1 }
 0x139   :  { %350 = vst [vmem:[%s637_s4 + $0x40] sm:$0xff] %v334_v25  ;;  %v292_v27 = vadd.f32 %v567_v16, %v291_v26 }
 0x13b   :  { %v328_v28 = vmax.f32 %v292_v27, 0.0 }
 0x13c   :  { %v308_v29 = vpop.f32.mrf.mxu3 }
 0x13d   :  { %344 = vst [vmem:[%s637_s4 + $0x10] sm:$0xff] %v328_v28  ;;  %v309_v30 = vadd.f32 %v567_v16, %v308_v29 }
 0x13f   :  { %v335_v31 = vmax.f32 %v309_v30, 0.0 }
 0x140   :  { %v293_v32 = vpop.f32.mrf.mxu1 }
 0x141   :  { %351 = vst [vmem:[%s637_s4 + $0x48] sm:$0xff] %v335_v31  ;;  %v294_v33 = vadd.f32 %v567_v16, %v293_v32 }
 0x143   :  { %v329_v34 = vmax.f32 %v294_v33, 0.0 }
 0x144   :  { %v311_v35 = vpop.f32.mrf.mxu3 }
 0x145   :  { %345 = vst [vmem:[%s637_s4 + $0x18] sm:$0xff] %v329_v34  ;;  %v312_v36 = vadd.f32 %v567_v16, %v311_v35 }
 0x147   :  { %v336_v37 = vmax.f32 %v312_v36, 0.0 }
 0x148   :  { %v296_v38 = vpop.f32.mrf.mxu1 }
 0x149   :  { %352 = vst [vmem:[%s637_s4 + $0x50] sm:$0xff] %v336_v37  ;;  %v297_v39 = vadd.f32 %v567_v16, %v296_v38 }
 0x14b   :  { %v330_v40 = vmax.f32 %v297_v39, 0.0 }
 0x14c   :  { %v313_v41 = vpop.f32.mrf.mxu3 }
 0x14d   :  { %346 = vst [vmem:[%s637_s4 + $0x20] sm:$0xff] %v330_v40  ;;  %v314_v42 = vadd.f32 %v567_v16, %v313_v41 }
 0x14f   :  { %v337_v43 = vmax.f32 %v314_v42, 0.0 }
 0x150   :  { %v298_v44 = vpop.f32.mrf.mxu1 }
 0x151   :  { %353 = vst [vmem:[%s637_s4 + $0x58] sm:$0xff] %v337_v43  ;;  %v299_v45 = vadd.f32 %v567_v16, %v298_v44 }
 0x153   :  { %v331_v46 = vmax.f32 %v299_v45, 0.0 }
 0x154   :  { %v316_v47 = vpop.f32.mrf.mxu3 }
 0x155   :  { %347 = vst [vmem:[%s637_s4 + $0x28] sm:$0xff] %v331_v46  ;;  %v317_v48 = vadd.f32 %v567_v16, %v316_v47 }
 0x157   :  { %v338_v49 = vmax.f32 %v317_v48, 0.0 }
 0x158   :  { %v301_v50 = vpop.f32.mrf.mxu1 }
 0x159   :  { %354 = vst [vmem:[%s637_s4 + $0x60] sm:$0xff] %v338_v49  ;;  %v302_v51 = vadd.f32 %v567_v16, %v301_v50 }
 0x15b   :  { %v332_v52 = vmax.f32 %v302_v51, 0.0 }
 0x15c   :  { %v318_v53 = vpop.f32.mrf.mxu3 }
 0x15d   :  { %348 = vst [vmem:[%s637_s4 + $0x30] sm:$0xff] %v332_v52  ;;  %v319_v54 = vadd.f32 %v567_v16, %v318_v53 }
 0x15f   :  { %v339_v55 = vmax.f32 %v319_v54, 0.0 }
 0x160   :  { %v303_v56 = vpop.f32.mrf.mxu1 }
 0x161   :  { %355 = vst [vmem:[%s637_s4 + $0x68] sm:$0xff] %v339_v55  ;;  %v304_v57 = vadd.f32 %v567_v16, %v303_v56 }
 0x163   :  { %v333_v58 = vmax.f32 %v304_v57, 0.0 }
 0x164   :  { %v321_v59 = vpop.f32.mrf.mxu3 }
 0x165   :  { %349 = vst [vmem:[%s637_s4 + $0x38] sm:$0xff] %v333_v58  ;;  %v322_v60 = vadd.f32 %v567_v16, %v321_v59 }
 0x167   :  { %v340_v61 = vmax.f32 %v322_v60, 0.0 }
 0x169   :  { %356 = vst [vmem:[%s637_s4 + $0x70] sm:$0xff] %v340_v61 }
 0x16c   :  { %v323_v62 = vpop.f32.mrf.mxu3 }
 0x16d   :  { %v324_v63 = vadd.f32 %v567_v16, %v323_v62 }
 0x16f   :  { %v341_v0 = vmax.f32 %v324_v63, 0.0 }
 0x171   :  { %357 = vst [vmem:[%s637_s4 + $0x78] sm:$0xff] %v341_v0 }

// kernel: forward.13
= control target key start
LH: loop header
LB: loop body
LE: loop exit
PB: predicated region body
PF: predicated region fallthrough
CT: control target
= control target key end

     0   :  { %vm295_vm0 = vcmask 261120   ;;  %s1703_s1 = inlined_call_operand.vmem [shape: f32[128,32], index: 1, kind: input, shape index: {}]   ;;  %s1704_s3 = inlined_call_operand.vmem [shape: f32[128,32], index: 3, kind: input, shape index: {}]   ;;  %s1705_s2 = inlined_call_operand.vmem [shape: f32[1,32], index: 2, kind: input, shape index: {}]   ;;  %s1706_s0 = inlined_call_operand.vmem [shape: f32[128,128], index: 0, kind: input, shape index: {}]   ;;  %s1707_s5 = inlined_call_operand.vmem [shape: f32[128,32], index: 5, kind: input, shape index: {}]   ;;  %s1708_s7 = inlined_call_operand.vmem [shape: f32[32,32], index: 7, kind: input, shape index: {}]   ;;  %s1709_s4 = inlined_call_operand.vmem [shape: f32[1,32], index: 4, kind: input, shape index: {}]   ;;  %s1710_s6 = inlined_call_operand.vmem [shape: f32[1,32], index: 6, kind: input, shape index: {}]   ;;  %s1711_s8 = inlined_call_operand.vmem [shape: f32[32,128], index: 8, kind: input, shape index: {}]   ;;  %s1712_s9 = inlined_call_operand.vmem [shape: f32[1,128], index: 9, kind: input, shape index: {}]   ;;  %s1713_s10 = inlined_call_operand.vmem [shape: f32[128,128], index: 10, kind: output, shape index: {}]  }
   0x1   :  { %v74_v0 = vld [vmem:[%s1703_s1 + $0x70] sm:$0xff]  ;;  %v75_v1 = vld [vmem:[%s1703_s1 + $0x78] sm:$0xff]  ;;  %v72_v2 = vld [vmem:[%s1703_s1 + $0x60] sm:$0xff] }
   0x2   :  { %v83_v3 = vpack.c.bf16 %v75_v1, %v74_v0  ;;  %v73_v4 = vld [vmem:[%s1703_s1 + $0x68] sm:$0xff]  ;;  %v70_v6 = vld [vmem:[%s1703_s1 + $0x50] sm:$0xff]  ;;  %v71_v7 = vld [vmem:[%s1703_s1 + $0x58] sm:$0xff] }
   0x3   :  { %v82_v5 = vpack.c.bf16 %v73_v4, %v72_v2  ;;  %v151_v8 = vld [vmem:[%s1704_s3 + $0x70] sm:$0xff]  ;;  %v81_v9 = vpack.c.bf16 %v71_v7, %v70_v6  ;;  %v152_v10 = vld [vmem:[%s1704_s3 + $0x78] sm:$0xff]  ;;  %v68_v11 = vld [vmem:[%s1703_s1 + $0x40] sm:$0xff] }
   0x4   :  { %88 = vmatpush.bf16.msra.mxu0 %v83_v3  ;;  %994 = vmatpush.bf16.msra.mxu2 %v83_v3  ;;  %v69_v12 = vld [vmem:[%s1703_s1 + $0x48] sm:$0xff]  ;;  %v160_v13 = vpack.c.bf16 %v152_v10, %v151_v8  ;;  %v149_v14 = vld [vmem:[%s1704_s3 + $0x60] sm:$0xff]  ;;  %v66_v17 = vld [vmem:[%s1703_s1 + $0x30] sm:$0xff] }
   0x5   :  { %v150_v15 = vld [vmem:[%s1704_s3 + $0x68] sm:$0xff]  ;;  %v80_v16 = vpack.c.bf16 %v69_v12, %v68_v11  ;;  %v67_v18 = vld [vmem:[%s1703_s1 + $0x38] sm:$0xff]  ;;  %v147_v20 = vld [vmem:[%s1704_s3 + $0x50] sm:$0xff] }
   0x6   :  { %165 = vmatpush.bf16.msra.mxu1 %v160_v13  ;;  %v159_v19 = vpack.c.bf16 %v150_v15, %v149_v14  ;;  %v148_v21 = vld [vmem:[%s1704_s3 + $0x58] sm:$0xff]  ;;  %v79_v22 = vpack.c.bf16 %v67_v18, %v66_v17  ;;  %v64_v23 = vld [vmem:[%s1703_s1 + $0x20] sm:$0xff]  ;;  %v65_v24 = vld [vmem:[%s1703_s1 + $0x28] sm:$0xff] }
   0x7   :  { %v158_v25 = vpack.c.bf16 %v148_v21, %v147_v20  ;;  %v145_v26 = vld [vmem:[%s1704_s3 + $0x40] sm:$0xff]  ;;  %v146_v27 = vld [vmem:[%s1704_s3 + $0x48] sm:$0xff]  ;;  %v78_v28 = vpack.c.bf16 %v65_v24, %v64_v23  ;;  %v62_v29 = vld [vmem:[%s1703_s1 + $0x10] sm:$0xff] }
   0x8   :  { %89 = vmatpush.bf16.msra.mxu0 %v82_v5  ;;  %995 = vmatpush.bf16.msra.mxu2 %v82_v5  ;;  %v63_v30 = vld [vmem:[%s1703_s1 + $0x18] sm:$0xff]  ;;  %v157_v31 = vpack.c.bf16 %v146_v27, %v145_v26  ;;  %v143_v32 = vld [vmem:[%s1704_s3 + $0x30] sm:$0xff]  ;;  %v60_v35 = vld [vmem:[%s1703_s1] sm:$0xff] }
   0x9   :  { %v144_v33 = vld [vmem:[%s1704_s3 + $0x38] sm:$0xff]  ;;  %v77_v34 = vpack.c.bf16 %v63_v30, %v62_v29  ;;  %v61_v36 = vld [vmem:[%s1703_s1 + $0x8] sm:$0xff]  ;;  %v141_v38 = vld [vmem:[%s1704_s3 + $0x20] sm:$0xff] }
   0xa   :  { %166 = vmatpush.bf16.msra.mxu1 %v159_v19  ;;  %v156_v37 = vpack.c.bf16 %v144_v33, %v143_v32  ;;  %v142_v39 = vld [vmem:[%s1704_s3 + $0x28] sm:$0xff]  ;;  %v36_v40 = vld [vmem:[%s1706_s0] sm:$0xff]  ;;  %v76_v41 = vpack.c.bf16 %v61_v36, %v60_v35  ;;  %v139_v48 = vld [vmem:[%s1704_s3 + $0x10] sm:$0xff] }
   0xb   :  { %v37_v42 = vld [vmem:[%s1706_s0 + $0x8] sm:$0xff]  ;;  %v48_v43 = vld [vmem:[%s1706_s0 + $0x60] sm:$0xff]  ;;  %v155_v45 = vpack.c.bf16 %v142_v39, %v141_v38  ;;  %v140_v49 = vld [vmem:[%s1704_s3 + $0x18] sm:$0xff] }
   0xc   :  { %90 = vmatpush.bf16.msra.mxu0 %v81_v9  ;;  %996 = vmatpush.bf16.msra.mxu2 %v81_v9  ;;  %v49_v44 = vld [vmem:[%s1706_s0 + $0x68] sm:$0xff]  ;;  %v1233_v46 = vpack.c.bf16 %v37_v42, %v36_v40  ;;  %v154_v50 = vpack.c.bf16 %v140_v49, %v139_v48  ;;  %v137_v51 = vld [vmem:[%s1704_s3] sm:$0xff]  ;;  %v38_v54 = vld [vmem:[%s1706_s0 + $0x10] sm:$0xff] }
   0xd   :  { %v1235_v47 = vpack.c.bf16 %v49_v44, %v48_v43  ;;  %v138_v52 = vld [vmem:[%s1704_s3 + $0x8] sm:$0xff]  ;;  %v39_v55 = vld [vmem:[%s1706_s0 + $0x18] sm:$0xff]  ;;  %v50_v56 = vld [vmem:[%s1706_s0 + $0x70] sm:$0xff] }
   0xe   :  { %167 = vmatpush.bf16.msra.mxu1 %v158_v25  ;;  %v153_v53 = vpack.c.bf16 %v138_v52, %v137_v51  ;;  %v51_v57 = vld [vmem:[%s1706_s0 + $0x78] sm:$0xff]  ;;  %v1264_v58 = vpack.c.bf16 %v39_v55, %v38_v54  ;;  %v228_v60 = vld [vmem:[%s1707_s5 + $0x70] sm:$0xff]  ;;  %v226_v63 = vld [vmem:[%s1707_s5 + $0x60] sm:$0xff] }
   0xf   :  { %v1266_v59 = vpack.c.bf16 %v51_v57, %v50_v56  ;;  %v229_v61 = vld [vmem:[%s1707_s5 + $0x78] sm:$0xff]  ;;  %v227_v0 = vld [vmem:[%s1707_s5 + $0x68] sm:$0xff]  ;;  %v40_v1 = vld [vmem:[%s1706_s0 + $0x20] sm:$0xff] }
  0x10   :  { %91 = vmatpush.bf16.msra.mxu0 %v80_v16  ;;  %997 = vmatpush.bf16.msra.mxu2 %v80_v16  ;;  %v237_v62 = vpack.c.bf16 %v229_v61, %v228_v60  ;;  %v41_v2 = vld [vmem:[%s1706_s0 + $0x28] sm:$0xff]  ;;  %v236_v3 = vpack.c.bf16 %v227_v0, %v226_v63  ;;  %v224_v5 = vld [vmem:[%s1707_s5 + $0x50] sm:$0xff]  ;;  %v225_v6 = vld [vmem:[%s1707_s5 + $0x58] sm:$0xff] }
  0x11   :  { %v54_v4 = vpack.c.bf16 %v41_v2, %v40_v1  ;;  %v235_v7 = vpack.c.bf16 %v225_v6, %v224_v5  ;;  %v222_v8 = vld [vmem:[%s1707_s5 + $0x40] sm:$0xff]  ;;  %v223_v9 = vld [vmem:[%s1707_s5 + $0x48] sm:$0xff]  ;;  %v294_v10 = vld [vmem:[%s1708_s7 + $0x18] sm:$0xff] }
  0x12   :  { %168 = vmatpush.bf16.msra.mxu1 %v157_v31  ;;  %1010 = vmatpush.msra.mxu3 %v294_v10  ;;  %v234_v11 = vpack.c.bf16 %v223_v9, %v222_v8  ;;  %v220_v12 = vld [vmem:[%s1707_s5 + $0x30] sm:$0xff]  ;;  %v218_v15 = vld [vmem:[%s1707_s5 + $0x20] sm:$0xff]  ;;  %v219_v16 = vld [vmem:[%s1707_s5 + $0x28] sm:$0xff] }
  0x13   :  { %v42_v17 = vld [vmem:[%s1706_s0 + $0x30] sm:$0xff]  ;;  %v43_v18 = vld [vmem:[%s1706_s0 + $0x38] sm:$0xff]  ;;  %v214_v24 = vld [vmem:[%s1707_s5] sm:$0xff] }
  0x14   :  { %92 = vmatpush.bf16.msra.mxu0 %v79_v22  ;;  %998 = vmatpush.bf16.msra.mxu2 %v79_v22  ;;  %v55_v20 = vpack.c.bf16 %v43_v18, %v42_v17  ;;  %v216_v21 = vld [vmem:[%s1707_s5 + $0x10] sm:$0xff]  ;;  %v217_v22 = vld [vmem:[%s1707_s5 + $0x18] sm:$0xff]  ;;  %v44_v27 = vld [vmem:[%s1706_s0 + $0x40] sm:$0xff] }
  0x15   :  { %v231_v23 = vpack.c.bf16 %v217_v22, %v216_v21  ;;  %v293_v30 = vld [vmem:[%s1708_s7 + $0x10] sm:$0xff]  ;;  %v47_v32 = vld [vmem:[%s1706_s0 + $0x58] sm:$0xff]  ;;  %v291_v35 = vld [vmem:[%s1708_s7] sm:$0xff] }
  0x16   :  { %169 = vmatpush.bf16.msra.mxu1 %v156_v37  ;;  %1011 = vmatpush.msra.mxu3 %v293_v30  ;;  %v1014_v38 = vld [vmem:[%s1705_s2] ss:$0 sm:$0xff] }
  0x18   :  { %93 = vmatpush.bf16.msra.mxu0 %v78_v28  ;;  %999 = vmatpush.bf16.msra.mxu2 %v78_v28  ;;  %v45_v28 = vld [vmem:[%s1706_s0 + $0x48] sm:$0xff] }
  0x19   :  { %v56_v29 = vpack.c.bf16 %v45_v28, %v44_v27 }
  0x1a   :  { %170 = vmatpush.bf16.msra.mxu1 %v155_v45 }
  0x1c   :  { %94 = vmatpush.bf16.msra.mxu0 %v77_v34  ;;  %1000 = vmatpush.bf16.msra.mxu2 %v77_v34  ;;  %v292_v34 = vld [vmem:[%s1708_s7 + $0x8] sm:$0xff] }
  0x1d   :  { %1012 = vmatpush.msra.mxu3 %v292_v34 }
  0x1e   :  { %171 = vmatpush.bf16.msra.mxu1 %v154_v50 }
  0x1f   :  { %1013 = vmatpush.msra.mxu3 %v291_v35 }
  0x20   :  { %95 = vmatpush.bf16.msra.mxu0 %v76_v41  ;;  %1001 = vmatpush.bf16.msra.mxu2 %v76_v41 }
  0x21   :  { %597 = vmatpush.msrb.mxu3 %v294_v10 }
  0x22   :  { %172 = vmatpush.bf16.msra.mxu1 %v153_v53 }
  0x23   :  { %96 = vmatmul.bf16.vlgmr.msra.gmra.mxu0 %v1233_v46  ;;  %126 = vmatmul.bf16.vlgmr.msra.gmra.mxu2 %v1235_v47 }
  0x24   :  { %1002 = vmatpush.bf16.msrb.mxu2 %v160_v13  ;;  %758 = vmatpush.msrb.mxu0 %v294_v10  ;;  %v221_v13 = vld [vmem:[%s1707_s5 + $0x38] sm:$0xff] }
  0x25   :  { %173 = vmatmul.bf16.vlgmr.msra.gmra.mxu1 %v1233_v46  ;;  %v233_v14 = vpack.c.bf16 %v221_v13, %v220_v12  ;;  %598 = vmatpush.msrb.mxu3 %v293_v30 }
  0x26   :  { %759 = vmatpush.msrb.mxu0 %v293_v30 }
  0x27   :  { %599 = vmatpush.msrb.mxu3 %v292_v34 }
  0x28   :  { %1003 = vmatpush.bf16.msrb.mxu2 %v159_v19  ;;  %v232_v19 = vpack.c.bf16 %v219_v16, %v218_v15  ;;  %760 = vmatpush.msrb.mxu0 %v292_v34 }
  0x29   :  { %600 = vmatpush.msrb.mxu3 %v291_v35 }
  0x2a   :  { %761 = vmatpush.msrb.mxu0 %v291_v35 }
  0x2c   :  { %1004 = vmatpush.bf16.msrb.mxu2 %v158_v25  ;;  %v215_v25 = vld [vmem:[%s1707_s5 + $0x8] sm:$0xff] }
  0x2d   :  { %v230_v26 = vpack.c.bf16 %v215_v25, %v214_v24  ;;  %v1411_v24 = vld [vmem:[%s1709_s4] ss:$0 sm:$0xff] }
  0x30   :  { %1005 = vmatpush.bf16.msrb.mxu2 %v157_v31  ;;  %v46_v31 = vld [vmem:[%s1706_s0 + $0x50] sm:$0xff] }
  0x31   :  { %v57_v33 = vpack.c.bf16 %v47_v32, %v46_v31 }
  0x33   :  { %101 = vmatmul.bf16.gmra.mxu0 %v1264_v58  ;;  %131 = vmatmul.bf16.gmra.mxu2 %v1266_v59 }
  0x34   :  { %1006 = vmatpush.bf16.msrb.mxu2 %v156_v37 }
  0x35   :  { %178 = vmatmul.bf16.gmra.mxu1 %v1264_v58 }
  0x38   :  { %1007 = vmatpush.bf16.msrb.mxu2 %v155_v45 }
  0x3c   :  { %1008 = vmatpush.bf16.msrb.mxu2 %v154_v50 }
  0x40   :  { %1009 = vmatpush.bf16.msrb.mxu2 %v153_v53 }
  0x43   :  { %106 = vmatmul.bf16.gmra.mxu0 %v54_v4  ;;  %203 = vmatmul.bf16.vlgmr.msrb.gmra.mxu2 %v1235_v47 }
  0x44   :  { %242 = vmatpush.bf16.msra.mxu2 %v237_v62 }
  0x45   :  { %183 = vmatmul.bf16.gmra.mxu1 %v54_v4 }
  0x48   :  { %243 = vmatpush.bf16.msra.mxu2 %v236_v3 }
  0x4c   :  { %244 = vmatpush.bf16.msra.mxu2 %v235_v7 }
  0x50   :  { %245 = vmatpush.bf16.msra.mxu2 %v234_v11 }
  0x53   :  { %111 = vmatmul.bf16.gmra.mxu0 %v55_v20  ;;  %208 = vmatmul.bf16.gmra.mxu2 %v1266_v59 }
  0x54   :  { %246 = vmatpush.bf16.msra.mxu2 %v233_v14 }
  0x55   :  { %188 = vmatmul.bf16.gmra.mxu1 %v55_v20 }
  0x58   :  { %247 = vmatpush.bf16.msra.mxu2 %v232_v19 }
  0x5c   :  { %248 = vmatpush.bf16.msra.mxu2 %v231_v23 }
  0x60   :  { %249 = vmatpush.bf16.msra.mxu2 %v230_v26 }
  0x63   :  { %116 = vmatmul.bf16.gmra.mxu0 %v56_v29  ;;  %250 = vmatmul.bf16.vlgmr.msra.gmra.mxu2 %v1233_v46 }
  0x64   :  { %356 = vmatpush.msrb.mxu2 %v294_v10 }
  0x65   :  { %193 = vmatmul.bf16.gmra.mxu1 %v56_v29 }
  0x66   :  { %357 = vmatpush.msrb.mxu2 %v293_v30 }
  0x68   :  { %358 = vmatpush.msrb.mxu2 %v292_v34 }
  0x6a   :  { %359 = vmatpush.msrb.mxu2 %v291_v35 }
  0x73   :  { %121 = vmatmul.bf16.gmra.mxu0 %v57_v33  ;;  %255 = vmatmul.bf16.gmra.mxu2 %v1264_v58 }
  0x75   :  { %198 = vmatmul.bf16.gmra.mxu1 %v57_v33 }
  0x83   :  { %260 = vmatmul.bf16.gmra.mxu2 %v54_v4 }
  0x93   :  { %265 = vmatmul.bf16.gmra.mxu2 %v55_v20 }
  0xa0   :  { %v97_v36 = vpop.f32.mrf.mxu0 }
  0xa1   :  { %v98_v61 = vadd.f32 %v1014_v38, %v97_v36 }
  0xa2   :  { %v174_v12 = vpop.f32.mrf.mxu1 }
  0xa3   :  { %270 = vmatmul.bf16.gmra.mxu2 %v56_v29 }
  0xa6   :  { %v127_v37 = vpop.f32.mrf.mxu2 }
  0xa7   :  { %v128_v9 = vadd.f32 %v1014_v38, %v127_v37 }
  0xa8   :  { %v99_v39 = vpop.f32.mrf.mxu0 }
  0xa9   :  { %v100_v40 = vadd.f32 %v1014_v38, %v99_v39 }
  0xaa   :  { %v176_v15 = vpop.f32.mrf.mxu1 }
  0xab   :  { %939 = vmatmul.msk.f32.vlgmr.msra.gmra.mxu3 %vm295_vm0, %v100_v40 }
  0xae   :  { %v129_v41 = vpop.f32.mrf.mxu2 }
  0xaf   :  { %v130_v11 = vadd.f32 %v1014_v38, %v129_v41 }
  0xb0   :  { %v102_v42 = vpop.f32.mrf.mxu0 }
  0xb1   :  { %v103_v43 = vadd.f32 %v1014_v38, %v102_v42 }
  0xb2   :  { %v179_v18 = vpop.f32.mrf.mxu1 }
  0xb3   :  { %275 = vmatmul.bf16.gmra.mxu2 %v57_v33  ;;  %940 = vmatmul.msk.f32.gmra.mxu3 %vm295_vm0, %v103_v43  ;;  %v180_v26 = vadd.f32 %v1411_v24, %v179_v18 }
  0xb6   :  { %v132_v44 = vpop.f32.mrf.mxu2 }
  0xb7   :  { %v133_v14 = vadd.f32 %v1014_v38, %v132_v44 }
  0xb8   :  { %v104_v45 = vpop.f32.mrf.mxu0 }
  0xb9   :  { %v105_v46 = vadd.f32 %v1014_v38, %v104_v45 }
  0xba   :  { %v181_v21 = vpop.f32.mrf.mxu1 }
  0xbb   :  { %941 = vmatmul.msk.f32.gmra.mxu3 %vm295_vm0, %v105_v46  ;;  %v182_v31 = vadd.f32 %v1411_v24, %v181_v21 }
  0xbe   :  { %v134_v48 = vpop.f32.mrf.mxu2 }
  0xbf   :  { %v135_v17 = vadd.f32 %v1014_v38, %v134_v48 }
  0xc0   :  { %v107_v49 = vpop.f32.mrf.mxu0 }
  0xc1   :  { %v108_v50 = vadd.f32 %v1014_v38, %v107_v49 }
  0xc2   :  { %v184_v25 = vpop.f32.mrf.mxu1 }
  0xc3   :  { %280 = vmatmul.bf16.gmra.mxu2 %v1235_v47  ;;  %942 = vmatmul.msk.f32.gmra.mxu3 %vm295_vm0, %v108_v50 }
  0xc6   :  { %v1367_v51 = vpop.f32.mrf.mxu2 }
  0xc8   :  { %v109_v52 = vpop.f32.mrf.mxu0 }
  0xc9   :  { %v110_v53 = vadd.f32 %v1014_v38, %v109_v52 }
  0xca   :  { %v186_v33 = vpop.f32.mrf.mxu1 }
  0xcb   :  { %943 = vmatmul.msk.f32.gmra.mxu3 %vm295_vm0, %v110_v53  ;;  %v187_v45 = vadd.f32 %v1411_v24, %v186_v33 }
  0xce   :  { %v1370_v54 = vpop.f32.mrf.mxu2 }
  0xd0   :  { %v112_v55 = vpop.f32.mrf.mxu0 }
  0xd1   :  { %v113_v56 = vadd.f32 %v1014_v38, %v112_v55 }
  0xd2   :  { %v189_v40 = vpop.f32.mrf.mxu1 }
  0xd3   :  { %285 = vmatmul.bf16.gmra.mxu2 %v1266_v59  ;;  %944 = vmatmul.msk.f32.gmra.mxu3 %vm295_vm0, %v113_v56 }
  0xd6   :  { %v1374_v57 = vpop.f32.mrf.mxu2 }
  0xd8   :  { %v114_v58 = vpop.f32.mrf.mxu0 }
  0xd9   :  { %v115_v47 = vadd.f32 %v1014_v38, %v114_v58 }
  0xda   :  { %v191_v52 = vpop.f32.mrf.mxu1 }
  0xdb   :  { %945 = vmatmul.msk.f32.gmra.mxu3 %vm295_vm0, %v115_v47 }
  0xde   :  { %v1377_v60 = vpop.f32.mrf.mxu2 }
  0xe0   :  { %v117_v62 = vpop.f32.mrf.mxu0 }
  0xe1   :  { %v118_v63 = vadd.f32 %v1014_v38, %v117_v62 }
  0xe2   :  { %v194_v47 = vpop.f32.mrf.mxu1 }
  0xe3   :  { %938 = vmatmul.msk.f32.vlgmr.msrb.gmra.mxu2 %vm295_vm0, %v98_v61  ;;  %946 = vmatmul.msk.f32.gmra.mxu3 %vm295_vm0, %v118_v63  ;;  %v192_v61 = vadd.f32 %v1411_v24, %v191_v52 }
  0xe6   :  { %v1381_v0 = vpop.f32.mrf.mxu2 }
  0xe8   :  { %v119_v59 = vpop.f32.mrf.mxu0 }
  0xe9   :  { %v120_v1 = vadd.f32 %v1014_v38, %v119_v59 }
  0xeb   :  { %947 = vmatmul.msk.f32.gmra.mxu3 %vm295_vm0, %v120_v1 }
  0xee   :  { %v1384_v2 = vpop.f32.mrf.mxu2 }
  0xf0   :  { %v122_v3 = vpop.f32.mrf.mxu0 }
  0xf1   :  { %v123_v4 = vadd.f32 %v1014_v38, %v122_v3  ;;  %v175_v3 = vadd.f32 %v1411_v24, %v174_v12 }
  0xf3   :  { %948 = vmatmul.msk.f32.gmra.mxu3 %vm295_vm0, %v123_v4  ;;  %v195_v4 = vadd.f32 %v1411_v24, %v194_v47 }
  0xf6   :  { %v1387_v5 = vpop.f32.mrf.mxu2 }
  0xf8   :  { %v124_v6 = vpop.f32.mrf.mxu0 }
  0xf9   :  { %v125_v7 = vadd.f32 %v1014_v38, %v124_v6  ;;  %v185_v38 = vadd.f32 %v1411_v24, %v184_v25 }
  0xfb   :  { %949 = vmatmul.msk.f32.gmra.mxu3 %vm295_vm0, %v125_v7  ;;  %v196_v7 = vpop.f32.mrf.mxu1 }
  0xfe   :  { %v1390_v8 = vpop.f32.mrf.mxu2 }
 0x103   :  { %950 = vmatmul.msk.f32.gmra.mxu3 %vm295_vm0, %v128_v9 }
 0x106   :  { %v1393_v10 = vpop.f32.mrf.mxu2 }
 0x10b   :  { %951 = vmatmul.msk.f32.gmra.mxu3 %vm295_vm0, %v130_v11 }
 0x10e   :  { %v1396_v13 = vpop.f32.mrf.mxu2 }
 0x113   :  { %952 = vmatmul.msk.f32.gmra.mxu3 %vm295_vm0, %v133_v14  ;;  %v177_v14 = vadd.f32 %v1411_v24, %v176_v15 }
 0x116   :  { %v1399_v16 = vpop.f32.mrf.mxu2 }
 0x11b   :  { %953 = vmatmul.msk.f32.gmra.mxu3 %vm295_vm0, %v135_v17 }
 0x11e   :  { %v1402_v19 = vpop.f32.mrf.mxu2 }
 0x126   :  { %v1404_v20 = vpop.f32.mrf.mxu2 }
 0x12e   :  { %v1406_v22 = vpop.f32.mrf.mxu2  ;;  %v364_v23 = vpop.f32.mrf.mxu3 }
 0x136   :  { %v1414_v27 = vpop.f32.mrf.mxu2  ;;  %v367_v28 = vpop.f32.mrf.mxu3 }
 0x137   :  { %v411_v29 = vmul.f32 %v367_v28, %v180_v26  ;;  %v410_v26 = vmul.f32 %v364_v23, %v177_v14  ;;  %v197_v23 = vadd.f32 %v1411_v24, %v196_v7 }
 0x139   :  { %v1416_v30 = vmul.f32 0.25, %v411_v29  ;;  %v190_v29 = vadd.f32 %v1411_v24, %v189_v40  ;;  %v426_v33 = vmul.f32 0.25, %v410_v26 }
 0x13b   :  { %v447_v32 = vsel %vm295_vm0, %v1416_v30, -inf }
 0x13c   :  { %448 = vmax.xlane.f32.xlu1 %v447_v32  ;;  %v199_v32 = vpop.f32.mrf.mxu1 }
 0x13d   :  { %v200_v15 = vadd.f32 %v1411_v24, %v199_v32 }
 0x13e   :  { %v1421_v34 = vpop.f32.mrf.mxu2  ;;  %v370_v35 = vpop.f32.mrf.mxu3 }
 0x13f   :  { %v412_v36 = vmul.f32 %v370_v35, %v182_v31 }
 0x141   :  { %v1423_v37 = vmul.f32 0.25, %v412_v36  ;;  %v444_v36 = vsel %vm295_vm0, %v426_v33, -inf }
 0x143   :  { %v450_v39 = vsel %vm295_vm0, %v1423_v37, -inf }
 0x144   :  { %451 = vmax.xlane.f32.xlu1 %v450_v39 }
 0x146   :  { %v1428_v41 = vpop.f32.mrf.mxu2  ;;  %v373_v42 = vpop.f32.mrf.mxu3 }
 0x147   :  { %v413_v43 = vmul.f32 %v373_v42, %v185_v38 }
 0x149   :  { %v1430_v44 = vmul.f32 0.25, %v413_v43  ;;  %v201_v43 = vpop.f32.mrf.mxu1 }
 0x14b   :  { %v453_v46 = vsel %vm295_vm0, %v1430_v44, -inf }
 0x14c   :  { %454 = vmax.xlane.f32.xlu2 %v453_v46 }
 0x14e   :  { %v1435_v48 = vpop.f32.mrf.mxu2  ;;  %v376_v49 = vpop.f32.mrf.mxu3 }
 0x14f   :  { %v414_v50 = vmul.f32 %v376_v49, %v187_v45  ;;  %v202_v49 = vadd.f32 %v1411_v24, %v201_v43 }
 0x151   :  { %v1437_v53 = vmul.f32 0.25, %v414_v50 }
 0x153   :  { %v456_v55 = vsel %vm295_vm0, %v1437_v53, -inf }
 0x154   :  { %457 = vmax.xlane.f32.xlu2 %v456_v55 }
 0x156   :  { %v1441_v56 = vpop.f32.mrf.mxu2  ;;  %v379_v58 = vpop.f32.mrf.mxu3 }
 0x157   :  { %v415_v35 = vmul.f32 %v379_v58, %v190_v29 }
 0x159   :  { %v1461_v38 = vmul.f32 0.25, %v415_v35 }
 0x15b   :  { %v459_v40 = vsel %vm295_vm0, %v1461_v38, -inf }
 0x15e   :  { %v1444_v62 = vpop.f32.mrf.mxu2  ;;  %v382_v63 = vpop.f32.mrf.mxu3 }
 0x15f   :  { %v416_v59 = vmul.f32 %v382_v63, %v192_v61 }
 0x161   :  { %v1446_v1 = vmul.f32 0.25, %v416_v59  ;;  %v205_v59 = vadd.f32 %v1411_v24, %v1367_v51  ;;  %v210_v51 = vadd.f32 %v1411_v24, %v1374_v57 }
 0x163   :  { %v462_v6 = vsel %vm295_vm0, %v1446_v1, -inf }
 0x164   :  { %463 = vmax.xlane.f32.xlu1 %v462_v6 }
 0x166   :  { %v361_v9 = vpop.f32.mrf.mxu2  ;;  %v385_v11 = vpop.f32.mrf.mxu3 }
 0x167   :  { %v409_v17 = vmul.f32 %v361_v9, %v175_v3  ;;  %v417_v18 = vmul.f32 %v385_v11, %v195_v4  ;;  %v207_v9 = vadd.f32 %v1411_v24, %v1370_v54  ;;  %v212_v54 = vadd.f32 %v1411_v24, %v1377_v60 }
 0x169   :  { %v425_v21 = vmul.f32 0.25, %v409_v17  ;;  %v1453_v25 = vmul.f32 0.25, %v417_v18 }
 0x16b   :  { %v465_v12 = vsel %vm295_vm0, %v1453_v25, -inf  ;;  %v441_v28 = vsel %vm295_vm0, %v425_v21, -inf }
 0x16c   :  { %466 = vmax.xlane.f32.xlu2 %v465_v12  ;;  %442 = vmax.xlane.f32.xlu0 %v441_v28 }
 0x16e   :  { %v388_v31 = vpop.f32.mrf.mxu3 }
 0x16f   :  { %v418_v45 = vmul.f32 %v388_v31, %v197_v23 }
 0x171   :  { %v1471_v52 = vmul.f32 0.25, %v418_v45 }
 0x173   :  { %v468_v61 = vsel %vm295_vm0, %v1471_v52, -inf }
 0x174   :  { %445 = vmax.xlane.f32.xlu0 %v444_v36 }
 0x176   :  { %v391_v39 = vpop.f32.mrf.mxu3 }
 0x177   :  { %v419_v42 = vmul.f32 %v391_v39, %v200_v15 }
 0x179   :  { %v1464_v46 = vmul.f32 0.25, %v419_v42 }
 0x17b   :  { %v471_v50 = vsel %vm295_vm0, %v1464_v46, -inf }
 0x17c   :  { %472 = vmax.xlane.f32.xlu1 %v471_v50  ;;  %460 = vmax.xlane.f32.xlu0 %v459_v40 }
 0x17e   :  { %v394_v55 = vpop.f32.mrf.mxu3 }
 0x17f   :  { %v420_v58 = vmul.f32 %v394_v55, %v202_v49 }
 0x181   :  { %v1473_v47 = vmul.f32 0.25, %v420_v58 }
 0x183   :  { %v474_v63 = vsel %vm295_vm0, %v1473_v47, -inf }
 0x184   :  { %475 = vmax.xlane.f32.xlu2 %v474_v63  ;;  %469 = vmax.xlane.f32.xlu0 %v468_v61 }
 0x186   :  { %v397_v3 = vpop.f32.mrf.mxu3 }
 0x187   :  { %v421_v4 = vmul.f32 %v397_v3, %v205_v59 }
 0x189   :  { %v1481_v6 = vmul.f32 0.25, %v421_v4 }
 0x18b   :  { %v477_v7 = vsel %vm295_vm0, %v1481_v6, -inf }
 0x18c   :  { %478 = vmax.xlane.f32.xlu0 %v477_v7 }
 0x18e   :  { %v400_v11 = vpop.f32.mrf.mxu3 }
 0x18f   :  { %v422_v14 = vmul.f32 %v400_v11, %v207_v9 }
 0x191   :  { %v1487_v17 = vmul.f32 0.25, %v422_v14 }
 0x193   :  { %v480_v18 = vsel %vm295_vm0, %v1487_v17, -inf }
 0x194   :  { %481 = vmax.xlane.f32.xlu1 %v480_v18 }
 0x196   :  { %v403_v26 = vpop.f32.mrf.mxu3 }
 0x197   :  { %v423_v12 = vmul.f32 %v403_v26, %v210_v51 }
 0x199   :  { %v1493_v28 = vmul.f32 0.25, %v423_v12 }
 0x19b   :  { %v483_v29 = vsel %vm295_vm0, %v1493_v28, -inf }
 0x19c   :  { %484 = vmax.xlane.f32.xlu2 %v483_v29 }
 0x19e   :  { %v406_v31 = vpop.f32.mrf.mxu3 }
 0x19f   :  { %v424_v32 = vmul.f32 %v406_v31, %v212_v54 }
 0x1a1   :  { %v1499_v35 = vmul.f32 0.25, %v424_v32 }
 0x1a3   :  { %v486_v15 = vsel %vm295_vm0, %v1499_v35, -inf }
 0x1a4   :  { %487 = vmax.xlane.f32.xlu0 %v486_v15 }
 0x1af   :  { %v449_v42 = vpop.xlane.xlu1 %448 }
 0x1b0   :  { %v491_v60 = vsub.f32 %v1416_v30, %v449_v42 }
 0x1b2   :  { %v509_v24 = vmul.f32 1.442695, %v491_v60 }
 0x1b7   :  { %v452_v50 = vpop.xlane.xlu1 %451 }
 0x1d7   :  { %v464_v11 = vpop.xlane.xlu1 %463 }
 0x1d8   :  { %v496_v18 = vsub.f32 %v1446_v1, %v464_v11 }
 0x1df   :  { %v443_v57 = vpop.xlane.xlu0 %442 }
 0x1e0   :  { %v489_v36 = vsub.f32 %v425_v21, %v443_v57  ;;  %v492_v21 = vsub.f32 %v1423_v37, %v452_v50 }
 0x1e2   :  { %v505_v23 = vmul.f32 1.442695, %v489_v36  ;;  %v511_v55 = vmul.f32 1.442695, %v492_v21 }
 0x1e4   :  { %1018 = vpow2.f32 %v505_v23 }
 0x1e7   :  { %v446_v39 = vpop.xlane.xlu0 %445 }
 0x1e8   :  { %v490_v43 = vsub.f32 %v426_v33, %v446_v39  ;;  %v455_v33 = vpop.xlane.xlu2 %454 }
 0x1e9   :  { %v493_v30 = vsub.f32 %v1430_v44, %v455_v33 }
 0x1ea   :  { %v507_v45 = vmul.f32 1.442695, %v490_v43  ;;  %v1503_v40 = vpop.eup %1018 }
 0x1eb   :  { %954 = vmatmul.msk.f32.vlgmr.msrb.gmra.mxu3 %vm295_vm0, %v1503_v40  ;;  %v513_v61 = vmul.f32 1.442695, %v493_v30 }
 0x1ec   :  { %1020 = vpow2.f32 %v507_v45 }
 0x1ed   :  { %1022 = vpow2.f32 %v509_v24 }
 0x1ee   :  { %1024 = vpow2.f32 %v511_v55 }
 0x1ef   :  { %1026 = vpow2.f32 %v513_v61  ;;  %v461_v4 = vpop.xlane.xlu0 %460  ;;  %v473_v32 = vpop.xlane.xlu1 %472 }
 0x1f0   :  { %v458_v63 = vpop.xlane.xlu2 %457  ;;  %v495_v44 = vsub.f32 %v1461_v38, %v461_v4  ;;  %v499_v57 = vsub.f32 %v1464_v46, %v473_v32 }
 0x1f1   :  { %v494_v37 = vsub.f32 %v1437_v53, %v458_v63  ;;  %v519_v53 = vmul.f32 1.442695, %v496_v18 }
 0x1f2   :  { %v1508_v49 = vpop.eup %1020  ;;  %v517_v9 = vmul.f32 1.442695, %v495_v44 }
 0x1f3   :  { %955 = vmatmul.msk.f32.gmra.mxu3 %vm295_vm0, %v1508_v49  ;;  %v1513_v58 = vpop.eup %1022  ;;  %v515_v3 = vmul.f32 1.442695, %v494_v37 }
 0x1f4   :  { %v1518_v59 = vpop.eup %1024 }
 0x1f5   :  { %v1523_v7 = vpop.eup %1026  ;;  %1028 = vpow2.f32 %v515_v3 }
 0x1f6   :  { %1030 = vpow2.f32 %v517_v9 }
 0x1f7   :  { %1032 = vpow2.f32 %v519_v53  ;;  %v470_v29 = vpop.xlane.xlu0 %469 }
 0x1f8   :  { %v467_v51 = vpop.xlane.xlu2 %466  ;;  %v498_v1 = vsub.f32 %v1471_v52, %v470_v29  ;;  %v838_v29 = vld [vmem:[%s1711_s8 + $0x18] sm:$0xff] }
 0x1f9   :  { %v497_v38 = vsub.f32 %v1453_v25, %v467_v51  ;;  %v525_v25 = vmul.f32 1.442695, %v499_v57 }
 0x1fa   :  { %v523_v31 = vmul.f32 1.442695, %v498_v1 }
 0x1fb   :  { %956 = vmatmul.msk.f32.gmra.mxu3 %vm295_vm0, %v1513_v58  ;;  %v1528_v14 = vpop.eup %1028  ;;  %v521_v12 = vmul.f32 1.442695, %v497_v38 }
 0x1fc   :  { %v1533_v26 = vpop.eup %1030 }
 0x1fd   :  { %v1538_v54 = vpop.eup %1032  ;;  %1034 = vpow2.f32 %v521_v12  ;;  %v837_v12 = vld [vmem:[%s1711_s8 + $0x10] sm:$0xff] }
 0x1fe   :  { %1036 = vpow2.f32 %v523_v31 }
 0x1ff   :  { %1038 = vpow2.f32 %v525_v25  ;;  %v479_v42 = vpop.xlane.xlu0 %478 }
 0x200   :  { %v476_v36 = vpop.xlane.xlu2 %475  ;;  %v501_v46 = vsub.f32 %v1481_v6, %v479_v42 }
 0x201   :  { %v500_v52 = vsub.f32 %v1473_v47, %v476_v36 }
 0x202   :  { %v529_v45 = vmul.f32 1.442695, %v501_v46 }
 0x203   :  { %957 = vmatmul.msk.f32.gmra.mxu3 %vm295_vm0, %v1518_v59  ;;  %v1543_v15 = vpop.eup %1034  ;;  %v527_v39 = vmul.f32 1.442695, %v500_v52 }
 0x204   :  { %v1548_v23 = vpop.eup %1036 }
 0x205   :  { %v1553_v43 = vpop.eup %1038  ;;  %1040 = vpow2.f32 %v527_v39 }
 0x206   :  { %1042 = vpow2.f32 %v529_v45 }
 0x207   :  { %v482_v60 = vpop.xlane.xlu1 %481 }
 0x208   :  { %v502_v47 = vsub.f32 %v1487_v17, %v482_v60 }
 0x20a   :  { %v531_v50 = vmul.f32 1.442695, %v502_v47 }
 0x20b   :  { %958 = vmatmul.msk.f32.gmra.mxu3 %vm295_vm0, %v1523_v7  ;;  %v1558_v24 = vpop.eup %1040 }
 0x20c   :  { %v1563_v33 = vpop.eup %1042  ;;  %1044 = vpow2.f32 %v531_v50 }
 0x20f   :  { %v485_v21 = vpop.xlane.xlu2 %484 }
 0x210   :  { %v503_v6 = vsub.f32 %v1493_v28, %v485_v21 }
 0x212   :  { %v533_v55 = vmul.f32 1.442695, %v503_v6  ;;  %v1568_v61 = vpop.eup %1044 }
 0x213   :  { %959 = vmatmul.msk.f32.gmra.mxu3 %vm295_vm0, %v1528_v14 }
 0x214   :  { %1046 = vpow2.f32 %v533_v55 }
 0x217   :  { %v488_v30 = vpop.xlane.xlu0 %487 }
 0x218   :  { %v504_v17 = vsub.f32 %v1499_v35, %v488_v30 }
 0x21a   :  { %v535_v63 = vmul.f32 1.442695, %v504_v17  ;;  %v1573_v37 = vpop.eup %1046 }
 0x21b   :  { %960 = vmatmul.msk.f32.gmra.mxu3 %vm295_vm0, %v1533_v26 }
 0x21c   :  { %1048 = vpow2.f32 %v535_v63 }
 0x222   :  { %v1577_v3 = vpop.eup %1048 }
 0x223   :  { %961 = vmatmul.msk.f32.gmra.mxu3 %vm295_vm0, %v1538_v54 }
 0x22b   :  { %962 = vmatmul.msk.f32.gmra.mxu3 %vm295_vm0, %v1543_v15 }
 0x233   :  { %963 = vmatmul.msk.f32.gmra.mxu3 %vm295_vm0, %v1548_v23 }
 0x23b   :  { %964 = vmatmul.msk.f32.gmra.mxu3 %vm295_vm0, %v1553_v43 }
 0x243   :  { %965 = vmatmul.msk.f32.gmra.mxu3 %vm295_vm0, %v1558_v24 }
 0x24b   :  { %966 = vmatmul.msk.f32.gmra.mxu3 %vm295_vm0, %v1563_v33 }
 0x253   :  { %967 = vmatmul.msk.f32.gmra.mxu3 %vm295_vm0, %v1568_v61 }
 0x25b   :  { %968 = vmatmul.msk.f32.gmra.mxu3 %vm295_vm0, %v1573_v37 }
 0x263   :  { %969 = vmatmul.msk.f32.gmra.mxu3 %vm295_vm0, %v1577_v3 }
 0x26e   :  { %v602_v28 = vpop.f32.mrf.mxu3 }
 0x26f   :  { %v650_v4 = vmax.f32 %v602_v28, 1e-30  ;;  %v836_v28 = vld [vmem:[%s1711_s8 + $0x8] sm:$0xff] }
 0x271   :  { %1050 = vrcp.f32 %v650_v4 }
 0x276   :  { %v605_v44 = vpop.f32.mrf.mxu3 }
 0x277   :  { %v1051_v9 = vpop.eup %1050  ;;  %v651_v11 = vmax.f32 %v605_v44, 1e-30 }
 0x278   :  { %v682_v35 = vmul.f32 %v1051_v9, %v1503_v40  ;;  %v840_v40 = vpack.c.bf16 %v838_v29, %v837_v12 }
 0x279   :  { %1052 = vrcp.f32 %v651_v11 }
 0x27a   :  { %970 = vmatmul.msk.f32.vlgmr.msrb.gmra.mxu0 %vm295_vm0, %v682_v35  ;;  %875 = vmatpush.bf16.msrb.mxu1 %v840_v40 }
 0x27e   :  { %v608_v18 = vpop.f32.mrf.mxu3 }
 0x27f   :  { %v1053_v53 = vpop.eup %1052  ;;  %v652_v51 = vmax.f32 %v608_v18, 1e-30 }
 0x280   :  { %v683_v38 = vmul.f32 %v1053_v53, %v1508_v49 }
 0x281   :  { %1054 = vrcp.f32 %v652_v51 }
 0x282   :  { %971 = vmatmul.msk.f32.gmra.mxu0 %vm295_vm0, %v683_v38 }
 0x286   :  { %v611_v1 = vpop.f32.mrf.mxu3 }
 0x287   :  { %v1055_v31 = vpop.eup %1054  ;;  %v653_v32 = vmax.f32 %v611_v1, 1e-30 }
 0x288   :  { %v684_v57 = vmul.f32 %v1055_v31, %v1513_v58 }
 0x289   :  { %1056 = vrcp.f32 %v653_v32 }
 0x28a   :  { %972 = vmatmul.msk.f32.gmra.mxu0 %vm295_vm0, %v684_v57 }
 0x28e   :  { %v614_v49 = vpop.f32.mrf.mxu3 }
 0x28f   :  { %v1057_v25 = vpop.eup %1056  ;;  %v654_v36 = vmax.f32 %v614_v49, 1e-30 }
 0x290   :  { %v685_v52 = vmul.f32 %v1057_v25, %v1518_v59 }
 0x291   :  { %1058 = vrcp.f32 %v654_v36 }
 0x292   :  { %973 = vmatmul.msk.f32.gmra.mxu0 %vm295_vm0, %v685_v52 }
 0x296   :  { %v617_v39 = vpop.f32.mrf.mxu3 }
 0x297   :  { %v1059_v42 = vpop.eup %1058  ;;  %v655_v46 = vmax.f32 %v617_v39, 1e-30 }
 0x298   :  { %v686_v45 = vmul.f32 %v1059_v42, %v1523_v7 }
 0x299   :  { %1060 = vrcp.f32 %v655_v46 }
 0x29a   :  { %974 = vmatmul.msk.f32.gmra.mxu0 %vm295_vm0, %v686_v45 }
 0x29e   :  { %v620_v58 = vpop.f32.mrf.mxu3 }
 0x29f   :  { %v1061_v60 = vpop.eup %1060  ;;  %v656_v47 = vmax.f32 %v620_v58, 1e-30 }
 0x2a0   :  { %v687_v50 = vmul.f32 %v1061_v60, %v1528_v14  ;;  %v835_v14 = vld [vmem:[%s1711_s8] sm:$0xff] }
 0x2a1   :  { %1062 = vrcp.f32 %v656_v47 }
 0x2a2   :  { %975 = vmatmul.msk.f32.gmra.mxu0 %vm295_vm0, %v687_v50 }
 0x2a6   :  { %v623_v59 = vpop.f32.mrf.mxu3 }
 0x2a7   :  { %v1063_v21 = vpop.eup %1062  ;;  %v657_v6 = vmax.f32 %v623_v59, 1e-30 }
 0x2a8   :  { %v688_v55 = vmul.f32 %v1063_v21, %v1533_v26  ;;  %v839_v26 = vpack.c.bf16 %v836_v28, %v835_v14 }
 0x2a9   :  { %1064 = vrcp.f32 %v657_v6 }
 0x2aa   :  { %976 = vmatmul.msk.f32.gmra.mxu0 %vm295_vm0, %v688_v55  ;;  %876 = vmatpush.bf16.msrb.mxu1 %v839_v26 }
 0x2ae   :  { %v626_v7 = vpop.f32.mrf.mxu3 }
 0x2af   :  { %v1065_v30 = vpop.eup %1064  ;;  %v658_v17 = vmax.f32 %v626_v7, 1e-30 }
 0x2b0   :  { %v689_v63 = vmul.f32 %v1065_v30, %v1538_v54 }
 0x2b1   :  { %1066 = vrcp.f32 %v658_v17 }
 0x2b2   :  { %977 = vmatmul.msk.f32.gmra.mxu0 %vm295_vm0, %v689_v63 }
 0x2b6   :  { %v629_v4 = vpop.f32.mrf.mxu3 }
 0x2b7   :  { %v1067_v44 = vpop.eup %1066  ;;  %v659_v9 = vmax.f32 %v629_v4, 1e-30 }
 0x2b8   :  { %v690_v11 = vmul.f32 %v1067_v44, %v1543_v15 }
 0x2b9   :  { %1068 = vrcp.f32 %v659_v9 }
 0x2ba   :  { %978 = vmatmul.msk.f32.gmra.mxu0 %vm295_vm0, %v690_v11 }
 0x2be   :  { %v632_v54 = vpop.f32.mrf.mxu3 }
 0x2bf   :  { %v1069_v35 = vpop.eup %1068  ;;  %v660_v18 = vmax.f32 %v632_v54, 1e-30 }
 0x2c0   :  { %v691_v53 = vmul.f32 %v1069_v35, %v1548_v23 }
 0x2c1   :  { %1070 = vrcp.f32 %v660_v18 }
 0x2c2   :  { %979 = vmatmul.msk.f32.gmra.mxu0 %vm295_vm0, %v691_v53 }
 0x2c6   :  { %v635_v51 = vpop.f32.mrf.mxu3 }
 0x2c7   :  { %v1071_v38 = vpop.eup %1070  ;;  %v661_v12 = vmax.f32 %v635_v51, 1e-30 }
 0x2c8   :  { %v692_v29 = vmul.f32 %v1071_v38, %v1553_v43 }
 0x2c9   :  { %1072 = vrcp.f32 %v661_v12 }
 0x2ca   :  { %980 = vmatmul.msk.f32.gmra.mxu0 %vm295_vm0, %v692_v29 }
 0x2ce   :  { %v638_v15 = vpop.f32.mrf.mxu3 }
 0x2cf   :  { %v1073_v40 = vpop.eup %1072  ;;  %v662_v1 = vmax.f32 %v638_v15, 1e-30 }
 0x2d0   :  { %v693_v31 = vmul.f32 %v1073_v40, %v1558_v24 }
 0x2d1   :  { %1074 = vrcp.f32 %v662_v1 }
 0x2d2   :  { %981 = vmatmul.msk.f32.gmra.mxu0 %vm295_vm0, %v693_v31 }
 0x2d6   :  { %v641_v23 = vpop.f32.mrf.mxu3 }
 0x2d7   :  { %v1075_v32 = vpop.eup %1074  ;;  %v663_v57 = vmax.f32 %v641_v23, 1e-30 }
 0x2d8   :  { %v694_v49 = vmul.f32 %v1075_v32, %v1563_v33 }
 0x2d9   :  { %1076 = vrcp.f32 %v663_v57 }
 0x2da   :  { %982 = vmatmul.msk.f32.gmra.mxu0 %vm295_vm0, %v694_v49 }
 0x2de   :  { %v644_v43 = vpop.f32.mrf.mxu3 }
 0x2df   :  { %v1077_v25 = vpop.eup %1076  ;;  %v664_v36 = vmax.f32 %v644_v43, 1e-30 }
 0x2e0   :  { %v695_v52 = vmul.f32 %v1077_v25, %v1568_v61  ;;  %v1016_v61 = vld [vmem:[%s1710_s6] ss:$0 sm:$0xff] }
 0x2e1   :  { %1078 = vrcp.f32 %v664_v36  ;;  %v252_v60 = vadd.f32 %v1016_v61, %v1381_v0  ;;  %v254_v47 = vadd.f32 %v1016_v61, %v1384_v2  ;;  %v259_v55 = vadd.f32 %v1016_v61, %v1390_v8 }
 0x2e2   :  { %983 = vmatmul.msk.f32.gmra.mxu0 %vm295_vm0, %v695_v52  ;;  %v262_v2 = vadd.f32 %v1016_v61, %v1393_v10  ;;  %v264_v14 = vadd.f32 %v1016_v61, %v1396_v13  ;;  %v267_v8 = vadd.f32 %v1016_v61, %v1399_v16  ;;  %v269_v9 = vadd.f32 %v1016_v61, %v1402_v19 }
 0x2e3   :  { %v272_v13 = vadd.f32 %v1016_v61, %v1404_v20  ;;  %v274_v53 = vadd.f32 %v1016_v61, %v1406_v22  ;;  %v277_v19 = vadd.f32 %v1016_v61, %v1414_v27  ;;  %v279_v15 = vadd.f32 %v1016_v61, %v1421_v34 }
 0x2e4   :  { %v282_v22 = vadd.f32 %v1016_v61, %v1428_v41  ;;  %v284_v32 = vadd.f32 %v1016_v61, %v1435_v48  ;;  %v287_v34 = vadd.f32 %v1016_v61, %v1441_v56  ;;  %v289_v36 = vadd.f32 %v1016_v61, %v1444_v62  ;;  %v1017_v41 = vld [vmem:[%s1712_s9] ss:$0 sm:$0xff] }
 0x2e6   :  { %v647_v24 = vpop.f32.mrf.mxu3 }
 0x2e7   :  { %v1079_v39 = vpop.eup %1078  ;;  %v665_v42 = vmax.f32 %v647_v24, 1e-30 }
 0x2e8   :  { %v696_v46 = vmul.f32 %v1079_v39, %v1573_v37 }
 0x2e9   :  { %1080 = vrcp.f32 %v665_v42 }
 0x2ea   :  { %984 = vmatmul.msk.f32.gmra.mxu0 %vm295_vm0, %v696_v46 }
 0x2ef   :  { %v1081_v33 = vpop.eup %1080 }
 0x2f0   :  { %v697_v45 = vmul.f32 %v1081_v33, %v1577_v3  ;;  %v257_v3 = vadd.f32 %v1016_v61, %v1387_v5 }
 0x2f2   :  { %985 = vmatmul.msk.f32.gmra.mxu0 %vm295_vm0, %v697_v45 }
 0x2f7   :  { %v763_v58 = vpop.f32.mrf.mxu0 }
 0x2f8   :  { %v811_v59 = vmul.f32 %v763_v58, %v252_v60 }
 0x2ff   :  { %v766_v50 = vpop.f32.mrf.mxu0 }
 0x300   :  { %v812_v37 = vmul.f32 %v766_v50, %v254_v47 }
 0x302   :  { %v827_v21 = vpack.c.bf16 %v812_v37, %v811_v59 }
 0x304   :  { %986 = vmatmul.msk.bf16.vlgmr.msrb.gmra.mxu1 %vm295_vm0, %v827_v21 }
 0x307   :  { %v769_v6 = vpop.f32.mrf.mxu0 }
 0x308   :  { %v813_v30 = vmul.f32 %v769_v6, %v257_v3 }
 0x30f   :  { %v772_v7 = vpop.f32.mrf.mxu0 }
 0x310   :  { %v814_v17 = vmul.f32 %v772_v7, %v259_v55 }
 0x312   :  { %v828_v63 = vpack.c.bf16 %v814_v17, %v813_v30 }
 0x314   :  { %987 = vmatmul.msk.bf16.gmra.mxu1 %vm295_vm0, %v828_v63 }
 0x317   :  { %v775_v0 = vpop.f32.mrf.mxu0 }
 0x318   :  { %v815_v26 = vmul.f32 %v775_v0, %v262_v2 }
 0x31f   :  { %v778_v28 = vpop.f32.mrf.mxu0 }
 0x320   :  { %v816_v4 = vmul.f32 %v778_v28, %v264_v14 }
 0x322   :  { %v829_v44 = vpack.c.bf16 %v816_v4, %v815_v26 }
 0x324   :  { %988 = vmatmul.msk.bf16.gmra.mxu1 %vm295_vm0, %v829_v44 }
 0x327   :  { %v781_v5 = vpop.f32.mrf.mxu0 }
 0x328   :  { %v817_v54 = vmul.f32 %v781_v5, %v267_v8 }
 0x32f   :  { %v784_v11 = vpop.f32.mrf.mxu0 }
 0x330   :  { %v818_v35 = vmul.f32 %v784_v11, %v269_v9 }
 0x332   :  { %v830_v18 = vpack.c.bf16 %v818_v35, %v817_v54 }
 0x334   :  { %989 = vmatmul.msk.bf16.gmra.mxu1 %vm295_vm0, %v830_v18 }
 0x337   :  { %v787_v10 = vpop.f32.mrf.mxu0 }
 0x338   :  { %v819_v38 = vmul.f32 %v787_v10, %v272_v13 }
 0x33f   :  { %v790_v51 = vpop.f32.mrf.mxu0 }
 0x340   :  { %v820_v12 = vmul.f32 %v790_v51, %v274_v53 }
 0x342   :  { %v831_v29 = vpack.c.bf16 %v820_v12, %v819_v38 }
 0x344   :  { %990 = vmatmul.msk.bf16.gmra.mxu1 %vm295_vm0, %v831_v29 }
 0x347   :  { %v793_v16 = vpop.f32.mrf.mxu0 }
 0x348   :  { %v821_v1 = vmul.f32 %v793_v16, %v277_v19 }
 0x34f   :  { %v796_v40 = vpop.f32.mrf.mxu0 }
 0x350   :  { %v822_v31 = vmul.f32 %v796_v40, %v279_v15 }
 0x352   :  { %v832_v23 = vpack.c.bf16 %v822_v31, %v821_v1 }
 0x354   :  { %991 = vmatmul.msk.bf16.gmra.mxu1 %vm295_vm0, %v832_v23 }
 0x357   :  { %v799_v20 = vpop.f32.mrf.mxu0 }
 0x358   :  { %v823_v49 = vmul.f32 %v799_v20, %v282_v22 }
 0x35f   :  { %v802_v57 = vpop.f32.mrf.mxu0 }
 0x360   :  { %v824_v43 = vmul.f32 %v802_v57, %v284_v32 }
 0x362   :  { %v833_v25 = vpack.c.bf16 %v824_v43, %v823_v49 }
 0x364   :  { %992 = vmatmul.msk.bf16.gmra.mxu1 %vm295_vm0, %v833_v25 }
 0x367   :  { %v805_v27 = vpop.f32.mrf.mxu0 }
 0x368   :  { %v825_v24 = vmul.f32 %v805_v27, %v287_v34 }
 0x36f   :  { %v808_v52 = vpop.f32.mrf.mxu0 }
 0x370   :  { %v826_v39 = vmul.f32 %v808_v52, %v289_v36 }
 0x372   :  { %v834_v42 = vpack.c.bf16 %v826_v39, %v825_v24 }
 0x374   :  { %993 = vmatmul.msk.bf16.gmra.mxu1 %vm295_vm0, %v834_v42 }
 0x381   :  { %v878_v48 = vpop.f32.mrf.mxu1 }
 0x382   :  { %v879_v46 = vadd.f32 %v1017_v41, %v878_v48 }
 0x384   :  { %918 = vst [vmem:[%s1713_s10] sm:$0xff] %v879_v46 }
 0x389   :  { %v880_v33 = vpop.f32.mrf.mxu1 }
 0x38a   :  { %v881_v56 = vadd.f32 %v1017_v41, %v880_v33 }
 0x38c   :  { %919 = vst [vmem:[%s1713_s10 + $0x8] sm:$0xff] %v881_v56 }
 0x391   :  { %v883_v62 = vpop.f32.mrf.mxu1 }
 0x392   :  { %v884_v45 = vadd.f32 %v1017_v41, %v883_v62 }
 0x394   :  { %920 = vst [vmem:[%s1713_s10 + $0x10] sm:$0xff] %v884_v45 }
 0x399   :  { %v885_v58 = vpop.f32.mrf.mxu1 }
 0x39a   :  { %v886_v61 = vadd.f32 %v1017_v41, %v885_v58 }
 0x39c   :  { %921 = vst [vmem:[%s1713_s10 + $0x18] sm:$0xff] %v886_v61 }
 0x3a1   :  { %v888_v60 = vpop.f32.mrf.mxu1 }
 0x3a2   :  { %v889_v47 = vadd.f32 %v1017_v41, %v888_v60 }
 0x3a4   :  { %922 = vst [vmem:[%s1713_s10 + $0x20] sm:$0xff] %v889_v47 }
 0x3a9   :  { %v890_v50 = vpop.f32.mrf.mxu1 }
 0x3aa   :  { %v891_v59 = vadd.f32 %v1017_v41, %v890_v50 }
 0x3ac   :  { %923 = vst [vmem:[%s1713_s10 + $0x28] sm:$0xff] %v891_v59 }
 0x3b1   :  { %v893_v37 = vpop.f32.mrf.mxu1 }
 0x3b2   :  { %v894_v21 = vadd.f32 %v1017_v41, %v893_v37 }
 0x3b4   :  { %924 = vst [vmem:[%s1713_s10 + $0x30] sm:$0xff] %v894_v21 }
 0x3b9   :  { %v895_v6 = vpop.f32.mrf.mxu1 }
 0x3ba   :  { %v896_v3 = vadd.f32 %v1017_v41, %v895_v6 }
 0x3bc   :  { %925 = vst [vmem:[%s1713_s10 + $0x38] sm:$0xff] %v896_v3 }
 0x3c1   :  { %v898_v55 = vpop.f32.mrf.mxu1 }
 0x3c2   :  { %v899_v7 = vadd.f32 %v1017_v41, %v898_v55 }
 0x3c4   :  { %926 = vst [vmem:[%s1713_s10 + $0x40] sm:$0xff] %v899_v7 }
 0x3c9   :  { %v900_v30 = vpop.f32.mrf.mxu1 }
 0x3ca   :  { %v901_v17 = vadd.f32 %v1017_v41, %v900_v30 }
 0x3cc   :  { %927 = vst [vmem:[%s1713_s10 + $0x48] sm:$0xff] %v901_v17 }
 0x3d1   :  { %v903_v63 = vpop.f32.mrf.mxu1 }
 0x3d2   :  { %v904_v0 = vadd.f32 %v1017_v41, %v903_v63 }
 0x3d4   :  { %928 = vst [vmem:[%s1713_s10 + $0x50] sm:$0xff] %v904_v0 }
 0x3d9   :  { %v905_v2 = vpop.f32.mrf.mxu1 }
 0x3da   :  { %v906_v14 = vadd.f32 %v1017_v41, %v905_v2 }
 0x3dc   :  { %929 = vst [vmem:[%s1713_s10 + $0x58] sm:$0xff] %v906_v14 }
 0x3e1   :  { %v908_v28 = vpop.f32.mrf.mxu1 }
 0x3e2   :  { %v909_v26 = vadd.f32 %v1017_v41, %v908_v28 }
 0x3e4   :  { %930 = vst [vmem:[%s1713_s10 + $0x60] sm:$0xff] %v909_v26 }
 0x3e9   :  { %v910_v4 = vpop.f32.mrf.mxu1 }
 0x3ea   :  { %v911_v44 = vadd.f32 %v1017_v41, %v910_v4 }
 0x3ec   :  { %931 = vst [vmem:[%s1713_s10 + $0x68] sm:$0xff] %v911_v44 }
 0x3f1   :  { %v913_v5 = vpop.f32.mrf.mxu1 }
 0x3f2   :  { %v914_v8 = vadd.f32 %v1017_v41, %v913_v5 }
 0x3f4   :  { %932 = vst [vmem:[%s1713_s10 + $0x70] sm:$0xff] %v914_v8 }
 0x3f9   :  { %v915_v9 = vpop.f32.mrf.mxu1 }
 0x3fa   :  { %v916_v11 = vadd.f32 %v1017_v41, %v915_v9 }
 0x3fc   :  { %933 = vst [vmem:[%s1713_s10 + $0x78] sm:$0xff] %v916_v11 }

// kernel: forward.10
= control target key start
LH: loop header
LB: loop body
LE: loop exit
PB: predicated region body
PF: predicated region fallthrough
CT: control target
= control target key end

     0   :  { %vm431_vm0 = vcmask 130112   ;;  %vm435_vm1 = vcmask 195712   ;;  %vm439_vm2 = vcmask 261312   ;;  %vm443_vm3 = vcmask 326912   ;;  %s4446_s1 = inlined_call_operand.vmem [shape: f32[2,128,128], index: 1, kind: input, shape index: {}, may-alias: {1,2}]   ;;  %s4447_s4 = inlined_call_operand.vmem [shape: f32[2,128], index: 4, kind: input, shape index: {}]   ;;  %s4448_s3 = inlined_call_operand.vmem [shape: f32[2,128], index: 3, kind: input, shape index: {}]   ;;  %s4449_s2 = inlined_call_operand.vmem [shape: f32[2,128,128], index: 2, kind: input, shape index: {}, may-alias: {1,2}]   ;;  %s4450_s0 = inlined_call_operand.vmem [shape: f32[128,128], index: 0, kind: input, shape index: {}]   ;;  %s4451_s5 = inlined_call_operand.vmem [shape: f32[1,128], index: 5, kind: input, shape index: {}]   ;;  %s4452_s6 = inlined_call_operand.vmem [shape: f32[128,128], index: 6, kind: output, shape index: {}]  }
   0x1   :  { %v124_v0 = vld [vmem:[%s4446_s1] sm:$0xff]  ;;  %v126_v2 = vld [vmem:[%s4446_s1 + $0x10] sm:$0xff]  ;;  %v125_v8 = vld [vmem:[%s4446_s1 + $0x8] sm:$0xff]  ;;  %vm447_vm4 = vcmask 392512   ;;  %vm451_vm5 = vcmask 458112   ;;  %vm455_vm6 = vcmask 523712  }
   0x2   :  { %v188_v1 = vld [vmem:[%s4447_s4] sm:$0x3]  ;;  %v127_v9 = vld [vmem:[%s4446_s1 + $0x18] sm:$0xff]  ;;  %v129_v10 = vld [vmem:[%s4446_s1 + $0x28] sm:$0xff]  ;;  %vm459_vm7 = vcmask 589312   ;;  %vm463_vm8 = vcmask 654912  }
   0x3   :  { %v191_v3 = vperm.slane %v188_v1, 0  ;;  %v128_v4 = vld [vmem:[%s4446_s1 + $0x20] sm:$0xff]  ;;  %v130_v14 = vld [vmem:[%s4446_s1 + $0x30] sm:$0xff]  ;;  %v131_v15 = vld [vmem:[%s4446_s1 + $0x38] sm:$0xff]  ;;  %v190_v31 = vrot.slane %v188_v1, 1  ;;  %vm467_vm9 = vcmask 720512  }
   0x4   :  { %v132_v16 = vld [vmem:[%s4446_s1 + $0x40] sm:$0xff]  ;;  %v133_v20 = vld [vmem:[%s4446_s1 + $0x48] sm:$0xff]  ;;  %v134_v21 = vld [vmem:[%s4446_s1 + $0x50] sm:$0xff]  ;;  %vm471_vm10 = vcmask 786112   ;;  %vm4456_vm11 = vcmask 851712   ;;  %vm4455_vm12 = vcmask 917312  }
   0x5   :  { %v195_v5 = vmul.f32 %v191_v3, %v124_v0  ;;  %v197_v6 = vmul.f32 %v191_v3, %v126_v2  ;;  %v199_v7 = vmul.f32 %v191_v3, %v128_v4  ;;  %v196_v11 = vmul.f32 %v191_v3, %v125_v8  ;;  %v135_v22 = vld [vmem:[%s4446_s1 + $0x58] sm:$0xff]  ;;  %v136_v26 = vld [vmem:[%s4446_s1 + $0x60] sm:$0xff]  ;;  %v137_v27 = vld [vmem:[%s4446_s1 + $0x68] sm:$0xff] }
   0x6   :  { %v198_v12 = vmul.f32 %v191_v3, %v127_v9  ;;  %v200_v13 = vmul.f32 %v191_v3, %v129_v10  ;;  %v201_v17 = vmul.f32 %v191_v3, %v130_v14  ;;  %v202_v18 = vmul.f32 %v191_v3, %v131_v15  ;;  %v138_v28 = vld [vmem:[%s4446_s1 + $0x70] sm:$0xff]  ;;  %v139_v34 = vld [vmem:[%s4446_s1 + $0x78] sm:$0xff]  ;;  %v140_v35 = vld [vmem:[%s4446_s1 + $0x80] sm:$0xff] }
   0x7   :  { %227 = vadd.xlane.f32.xlu0 %v195_v5  ;;  %231 = vadd.xlane.f32.xlu1 %v197_v6  ;;  %v203_v19 = vmul.f32 %v191_v3, %v132_v16  ;;  %v204_v23 = vmul.f32 %v191_v3, %v133_v20  ;;  %v205_v24 = vmul.f32 %v191_v3, %v134_v21  ;;  %v192_v33 = vperm.slane %v190_v31, 0  ;;  %v141_v36 = vld [vmem:[%s4446_s1 + $0x88] sm:$0xff]  ;;  %v142_v40 = vld [vmem:[%s4446_s1 + $0x90] sm:$0xff]  ;;  %v143_v41 = vld [vmem:[%s4446_s1 + $0x98] sm:$0xff] }
   0x8   :  { %235 = vadd.xlane.f32.xlu2 %v199_v7  ;;  %v206_v25 = vmul.f32 %v191_v3, %v135_v22  ;;  %v207_v29 = vmul.f32 %v191_v3, %v136_v26  ;;  %v208_v30 = vmul.f32 %v191_v3, %v137_v27  ;;  %v209_v32 = vmul.f32 %v191_v3, %v138_v28  ;;  %v144_v42 = vld [vmem:[%s4446_s1 + $0xa0] sm:$0xff]  ;;  %v145_v46 = vld [vmem:[%s4446_s1 + $0xa8] sm:$0xff]  ;;  %v146_v47 = vld [vmem:[%s4446_s1 + $0xb0] sm:$0xff] }
   0x9   :  { %v210_v37 = vmul.f32 %v191_v3, %v139_v34  ;;  %v211_v38 = vmul.f32 %v192_v33, %v140_v35  ;;  %v212_v39 = vmul.f32 %v192_v33, %v141_v36  ;;  %v213_v43 = vmul.f32 %v192_v33, %v142_v40  ;;  %v147_v48 = vld [vmem:[%s4446_s1 + $0xb8] sm:$0xff]  ;;  %v148_v52 = vld [vmem:[%s4446_s1 + $0xc0] sm:$0xff]  ;;  %v149_v53 = vld [vmem:[%s4446_s1 + $0xc8] sm:$0xff] }
   0xa   :  { %v214_v44 = vmul.f32 %v192_v33, %v143_v41  ;;  %v215_v45 = vmul.f32 %v192_v33, %v144_v42  ;;  %v216_v49 = vmul.f32 %v192_v33, %v145_v46  ;;  %v217_v50 = vmul.f32 %v192_v33, %v146_v47  ;;  %v150_v54 = vld [vmem:[%s4446_s1 + $0xd0] sm:$0xff]  ;;  %v151_v58 = vld [vmem:[%s4446_s1 + $0xd8] sm:$0xff]  ;;  %v152_v59 = vld [vmem:[%s4446_s1 + $0xe0] sm:$0xff] }
   0xb   :  { %v218_v51 = vmul.f32 %v192_v33, %v147_v48  ;;  %v219_v55 = vmul.f32 %v192_v33, %v148_v52  ;;  %v220_v56 = vmul.f32 %v192_v33, %v149_v53  ;;  %v221_v57 = vmul.f32 %v192_v33, %v150_v54  ;;  %v153_v60 = vld [vmem:[%s4446_s1 + $0xe8] sm:$0xff]  ;;  %v2823_v0 = vld [vmem:[%s4448_s3] sm:$0x3]  ;;  %v154_v1 = vld [vmem:[%s4446_s1 + $0xf0] sm:$0xff] }
   0xc   :  { %v222_v61 = vmul.f32 %v192_v33, %v151_v58  ;;  %v223_v62 = vmul.f32 %v192_v33, %v152_v59  ;;  %v224_v63 = vmul.f32 %v192_v33, %v153_v60  ;;  %v155_v2 = vld [vmem:[%s4446_s1 + $0xf8] sm:$0xff]  ;;  %v294_v3 = vperm.slane %v2823_v0, 0  ;;  %v156_v4 = vld [vmem:[%s4449_s2] sm:$0xff]  ;;  %v157_v8 = vld [vmem:[%s4449_s2 + $0x8] sm:$0xff] }
   0xd   :  { %v225_v5 = vmul.f32 %v192_v33, %v154_v1  ;;  %v226_v6 = vmul.f32 %v192_v33, %v155_v2  ;;  %v158_v9 = vld [vmem:[%s4449_s2 + $0x10] sm:$0xff]  ;;  %v159_v10 = vld [vmem:[%s4449_s2 + $0x18] sm:$0xff]  ;;  %v160_v14 = vld [vmem:[%s4449_s2 + $0x20] sm:$0xff]  ;;  %v293_v40 = vrot.slane %v2823_v0, 1  ;;  %vm4454_vm13 = vcmask 982912  }
   0xe   :  { %v298_v7 = vmul.f32 %v294_v3, %v156_v4  ;;  %v161_v15 = vld [vmem:[%s4449_s2 + $0x28] sm:$0xff]  ;;  %v162_v16 = vld [vmem:[%s4449_s2 + $0x30] sm:$0xff]  ;;  %v163_v20 = vld [vmem:[%s4449_s2 + $0x38] sm:$0xff]  ;;  %vm4453_vm14 = vcmask 1048512  }
   0xf   :  { %229 = vadd.xlane.f32.xlu0 %v196_v11  ;;  %233 = vadd.xlane.f32.xlu1 %v198_v12  ;;  %v299_v11 = vmul.f32 %v294_v3, %v157_v8  ;;  %v300_v12 = vmul.f32 %v294_v3, %v158_v9  ;;  %v164_v21 = vld [vmem:[%s4449_s2 + $0x40] sm:$0xff]  ;;  %v165_v22 = vld [vmem:[%s4449_s2 + $0x48] sm:$0xff]  ;;  %v166_v26 = vld [vmem:[%s4449_s2 + $0x50] sm:$0xff]  ;;  %v2887_v42 = vperm.slane %v293_v40, 0 }
  0x10   :  { %237 = vadd.xlane.f32.xlu2 %v200_v13  ;;  %v301_v13 = vmul.f32 %v294_v3, %v159_v10  ;;  %v167_v27 = vld [vmem:[%s4449_s2 + $0x58] sm:$0xff]  ;;  %v168_v28 = vld [vmem:[%s4449_s2 + $0x60] sm:$0xff]  ;;  %v170_v33 = vld [vmem:[%s4449_s2 + $0x70] sm:$0xff] }
  0x11   :  { %v310_v31 = vmul.f32 %v294_v3, %v168_v28  ;;  %v171_v34 = vld [vmem:[%s4449_s2 + $0x78] sm:$0xff]  ;;  %v176_v53 = vld [vmem:[%s4449_s2 + $0xa0] sm:$0xff]  ;;  %v177_v54 = vld [vmem:[%s4449_s2 + $0xa8] sm:$0xff] }
  0x12   :  { %v313_v41 = vmul.f32 %v294_v3, %v171_v34  ;;  %v175_v52 = vld [vmem:[%s4449_s2 + $0x98] sm:$0xff]  ;;  %v318_v59 = vmul.f32 %v2887_v42, %v176_v53  ;;  %v319_v60 = vmul.f32 %v2887_v42, %v177_v54 }
  0x13   :  { %v317_v58 = vmul.f32 %v2887_v42, %v175_v52  ;;  %v183_v8 = vld [vmem:[%s4449_s2 + $0xd8] sm:$0xff] }
  0x17   :  { %239 = vadd.xlane.f32.xlu0 %v201_v17  ;;  %241 = vadd.xlane.f32.xlu1 %v202_v18  ;;  %v302_v17 = vmul.f32 %v294_v3, %v160_v14  ;;  %v303_v18 = vmul.f32 %v294_v3, %v161_v15  ;;  %v325_v14 = vmul.f32 %v2887_v42, %v183_v8  ;;  %v184_v15 = vld [vmem:[%s4449_s2 + $0xe0] sm:$0xff] }
  0x18   :  { %243 = vadd.xlane.f32.xlu2 %v203_v19  ;;  %v304_v19 = vmul.f32 %v294_v3, %v162_v16  ;;  %v185_v16 = vld [vmem:[%s4449_s2 + $0xe8] sm:$0xff] }
  0x1f   :  { %245 = vadd.xlane.f32.xlu0 %v204_v23  ;;  %247 = vadd.xlane.f32.xlu1 %v205_v24  ;;  %v305_v23 = vmul.f32 %v294_v3, %v163_v20  ;;  %v306_v24 = vmul.f32 %v294_v3, %v164_v21  ;;  %v326_v21 = vmul.f32 %v2887_v42, %v184_v15 }
  0x20   :  { %249 = vadd.xlane.f32.xlu2 %v206_v25  ;;  %v307_v25 = vmul.f32 %v294_v3, %v165_v22  ;;  %v327_v22 = vmul.f32 %v2887_v42, %v185_v16 }
  0x27   :  { %251 = vadd.xlane.f32.xlu0 %v207_v29  ;;  %253 = vadd.xlane.f32.xlu1 %v208_v30  ;;  %v308_v29 = vmul.f32 %v294_v3, %v166_v26  ;;  %v309_v30 = vmul.f32 %v294_v3, %v167_v27 }
  0x28   :  { %255 = vadd.xlane.f32.xlu2 %v209_v32  ;;  %v169_v32 = vld [vmem:[%s4449_s2 + $0x68] sm:$0xff] }
  0x2f   :  { %257 = vadd.xlane.f32.xlu0 %v210_v37  ;;  %259 = vadd.xlane.f32.xlu1 %v211_v38  ;;  %v311_v38 = vmul.f32 %v294_v3, %v169_v32 }
  0x30   :  { %261 = vadd.xlane.f32.xlu2 %v212_v39  ;;  %v312_v39 = vmul.f32 %v294_v3, %v170_v33 }
  0x37   :  { %263 = vadd.xlane.f32.xlu0 %v213_v43  ;;  %265 = vadd.xlane.f32.xlu1 %v214_v44  ;;  %v172_v43 = vld [vmem:[%s4449_s2 + $0x80] sm:$0xff]  ;;  %v173_v44 = vld [vmem:[%s4449_s2 + $0x88] sm:$0xff] }
  0x38   :  { %267 = vadd.xlane.f32.xlu2 %v215_v45  ;;  %v174_v45 = vld [vmem:[%s4449_s2 + $0x90] sm:$0xff] }
  0x3f   :  { %269 = vadd.xlane.f32.xlu0 %v216_v49  ;;  %271 = vadd.xlane.f32.xlu1 %v217_v50  ;;  %v314_v49 = vmul.f32 %v2887_v42, %v172_v43  ;;  %v315_v50 = vmul.f32 %v2887_v42, %v173_v44  ;;  %v426_v43 = vlaneseq }
  0x40   :  { %273 = vadd.xlane.f32.xlu2 %v218_v51  ;;  %v316_v51 = vmul.f32 %v2887_v42, %v174_v45 }
  0x41   :  { %v3011_v45 = vand.u32 127, %v426_v43 }
  0x43   :  { %v3017_v53 = vadd.s32 4294967280, %v3011_v45  ;;  %v3041_v15 = vadd.s32 4294967240, %v3011_v45 }
  0x47   :  { %275 = vadd.xlane.f32.xlu0 %v219_v55  ;;  %277 = vadd.xlane.f32.xlu1 %v220_v56 }
  0x48   :  { %279 = vadd.xlane.f32.xlu2 %v221_v57 }
  0x4f   :  { %281 = vadd.xlane.f32.xlu0 %v222_v61  ;;  %283 = vadd.xlane.f32.xlu1 %v223_v62  ;;  %v178_v61 = vld [vmem:[%s4449_s2 + $0xb0] sm:$0xff]  ;;  %v179_v62 = vld [vmem:[%s4449_s2 + $0xb8] sm:$0xff] }
  0x50   :  { %285 = vadd.xlane.f32.xlu2 %v224_v63  ;;  %v180_v63 = vld [vmem:[%s4449_s2 + $0xc0] sm:$0xff]  ;;  %v320_v3 = vmul.f32 %v2887_v42, %v178_v61  ;;  %v321_v4 = vmul.f32 %v2887_v42, %v179_v62  ;;  %v3026_v61 = vadd.s32 4294967264, %v3011_v45 }
  0x57   :  { %287 = vadd.xlane.f32.xlu0 %v225_v5  ;;  %289 = vadd.xlane.f32.xlu1 %v226_v6  ;;  %v322_v5 = vmul.f32 %v2887_v42, %v180_v63  ;;  %v181_v6 = vld [vmem:[%s4449_s2 + $0xc8] sm:$0xff] }
  0x58   :  { %330 = vadd.xlane.f32.xlu2 %v298_v7  ;;  %v182_v7 = vld [vmem:[%s4449_s2 + $0xd0] sm:$0xff] }
  0x5f   :  { %332 = vadd.xlane.f32.xlu0 %v299_v11  ;;  %334 = vadd.xlane.f32.xlu1 %v300_v12  ;;  %v323_v12 = vmul.f32 %v2887_v42, %v181_v6 }
  0x60   :  { %336 = vadd.xlane.f32.xlu2 %v301_v13  ;;  %v324_v13 = vmul.f32 %v2887_v42, %v182_v7 }
  0x67   :  { %338 = vadd.xlane.f32.xlu0 %v302_v17  ;;  %340 = vadd.xlane.f32.xlu1 %v303_v18  ;;  %v186_v17 = vld [vmem:[%s4449_s2 + $0xf0] sm:$0xff] }
  0x68   :  { %342 = vadd.xlane.f32.xlu2 %v304_v19 }
  0x6f   :  { %344 = vadd.xlane.f32.xlu0 %v305_v23  ;;  %346 = vadd.xlane.f32.xlu1 %v306_v24  ;;  %v328_v23 = vmul.f32 %v2887_v42, %v186_v17  ;;  %v187_v24 = vld [vmem:[%s4449_s2 + $0xf8] sm:$0xff] }
  0x70   :  { %348 = vadd.xlane.f32.xlu2 %v307_v25  ;;  %v329_v28 = vmul.f32 %v2887_v42, %v187_v24 }
  0x77   :  { %350 = vadd.xlane.f32.xlu0 %v308_v29  ;;  %352 = vadd.xlane.f32.xlu1 %v309_v30 }
  0x78   :  { %354 = vadd.xlane.f32.xlu2 %v310_v31 }
  0x7a   :  { %v2880_v35 = vpop.xlane.xlu0 %227  ;;  %v2882_v36 = vpop.xlane.xlu1 %231 }
  0x7b   :  { %v2884_v37 = vpop.xlane.xlu2 %235 }
  0x7f   :  { %356 = vadd.xlane.f32.xlu0 %v311_v38  ;;  %358 = vadd.xlane.f32.xlu1 %v312_v39 }
  0x80   :  { %360 = vadd.xlane.f32.xlu2 %v313_v41 }
  0x82   :  { %v2898_v46 = vpop.xlane.xlu0 %229  ;;  %v2900_v47 = vpop.xlane.xlu1 %233 }
  0x83   :  { %v2902_v48 = vpop.xlane.xlu2 %237 }
  0x87   :  { %362 = vadd.xlane.f32.xlu0 %v314_v49  ;;  %364 = vadd.xlane.f32.xlu1 %v315_v50  ;;  %v3014_v49 = vadd.s32 4294967288, %v3011_v45 }
  0x88   :  { %366 = vadd.xlane.f32.xlu2 %v316_v51 }
  0x8a   :  { %v2916_v55 = vpop.xlane.xlu0 %239  ;;  %v2918_v56 = vpop.xlane.xlu1 %241 }
  0x8b   :  { %v2920_v57 = vpop.xlane.xlu2 %243 }
  0x8f   :  { %368 = vadd.xlane.f32.xlu0 %v317_v58  ;;  %370 = vadd.xlane.f32.xlu1 %v318_v59  ;;  %v3022_v59 = vadd.s32 4294967272, %v3011_v45 }
  0x90   :  { %372 = vadd.xlane.f32.xlu2 %v319_v60 }
  0x92   :  { %v2934_v0 = vpop.xlane.xlu0 %245  ;;  %v2936_v1 = vpop.xlane.xlu1 %247 }
  0x93   :  { %v2938_v2 = vpop.xlane.xlu2 %249 }
  0x97   :  { %374 = vadd.xlane.f32.xlu0 %v320_v3  ;;  %376 = vadd.xlane.f32.xlu1 %v321_v4 }
  0x98   :  { %378 = vadd.xlane.f32.xlu2 %v322_v5  ;;  %v3031_v5 = vadd.s32 4294967256, %v3011_v45 }
  0x9a   :  { %v2952_v9 = vpop.xlane.xlu0 %251  ;;  %v2954_v10 = vpop.xlane.xlu1 %253 }
  0x9b   :  { %v2956_v11 = vpop.xlane.xlu2 %255 }
  0x9f   :  { %380 = vadd.xlane.f32.xlu0 %v323_v12  ;;  %382 = vadd.xlane.f32.xlu1 %v324_v13  ;;  %v3036_v12 = vadd.s32 4294967248, %v3011_v45 }
  0xa0   :  { %384 = vadd.xlane.f32.xlu2 %v325_v14 }
  0xa2   :  { %v2970_v18 = vpop.xlane.xlu0 %257  ;;  %v2972_v19 = vpop.xlane.xlu1 %259 }
  0xa3   :  { %v2974_v20 = vpop.xlane.xlu2 %261 }
  0xa7   :  { %386 = vadd.xlane.f32.xlu0 %v326_v21  ;;  %388 = vadd.xlane.f32.xlu1 %v327_v22  ;;  %v3046_v22 = vadd.s32 4294967232, %v3011_v45 }
  0xa8   :  { %390 = vadd.xlane.f32.xlu2 %v328_v23 }
  0xaa   :  { %v2982_v25 = vpop.xlane.xlu0 %263  ;;  %v2984_v26 = vpop.xlane.xlu1 %265 }
  0xab   :  { %v2986_v27 = vpop.xlane.xlu2 %267 }
  0xaf   :  { %392 = vadd.xlane.f32.xlu0 %v329_v28 }
  0xb2   :  { %v2989_v29 = vpop.xlane.xlu0 %269  ;;  %v2991_v30 = vpop.xlane.xlu1 %271 }
  0xb3   :  { %v2993_v31 = vpop.xlane.xlu2 %273 }
  0xba   :  { %v2995_v32 = vpop.xlane.xlu0 %275  ;;  %v2997_v33 = vpop.xlane.xlu1 %277 }
  0xbb   :  { %v2999_v34 = vpop.xlane.xlu2 %279 }
  0xc2   :  { %v3001_v38 = vpop.xlane.xlu0 %281  ;;  %v3003_v39 = vpop.xlane.xlu1 %283 }
  0xc3   :  { %4510 = vst [vmem:[#allocation5_spill] sm:$0xff] %v3003_v39  ;;  %v3005_v40 = vpop.xlane.xlu2 %285 }
  0xca   :  { %v3007_v41 = vpop.xlane.xlu0 %287  ;;  %v3009_v42 = vpop.xlane.xlu1 %289 }
  0xcb   :  { %4511 = vst [vmem:[#allocation6_spill] sm:$0xff] %v3007_v41  ;;  %v331_v44 = vpop.xlane.xlu2 %330 }
  0xcc   :  { %4512 = vst [vmem:[#allocation7_spill] sm:$0xff] %v3009_v42  ;;  %v428_v58 = vperm.slane %v331_v44, %v3011_v45  ;;  %v3051_v44 = vadd.s32 4294967224, %v3011_v45 }
  0xd2   :  { %v333_v50 = vpop.xlane.xlu0 %332  ;;  %v335_v51 = vpop.xlane.xlu1 %334 }
  0xd3   :  { %v337_v52 = vpop.xlane.xlu2 %336  ;;  %v430_v54 = vperm.slane %v333_v50, %v3014_v49  ;;  %v434_v60 = vperm.slane %v335_v51, %v3017_v53 }
  0xd4   :  { %v438_v4 = vperm.slane %v337_v52, %v3022_v59 }
  0xd5   :  { %v432_v62 = vsel %vm431_vm0, %v430_v54, %v428_v58  ;;  %v3057_v54 = vadd.s32 4294967216, %v3011_v45 }
  0xd6   :  { %v436_v7 = vsel %vm435_vm1, %v434_v60, %v432_v62  ;;  %v3061_v60 = vadd.s32 4294967208, %v3011_v45 }
  0xd7   :  { %v440_v13 = vsel %vm439_vm2, %v438_v4, %v436_v7  ;;  %v3066_v7 = vadd.s32 4294967200, %v3011_v45 }
  0xda   :  { %v339_v63 = vpop.xlane.xlu0 %338  ;;  %v341_v3 = vpop.xlane.xlu1 %340 }
  0xdb   :  { %v343_v6 = vpop.xlane.xlu2 %342  ;;  %v442_v8 = vperm.slane %v339_v63, %v3026_v61  ;;  %v446_v14 = vperm.slane %v341_v3, %v3031_v5 }
  0xdc   :  { %v450_v17 = vperm.slane %v343_v6, %v3036_v12 }
  0xdd   :  { %v444_v16 = vsel %vm443_vm3, %v442_v8, %v440_v13 }
  0xde   :  { %v448_v24 = vsel %vm447_vm4, %v446_v14, %v444_v16  ;;  %v3072_v16 = vadd.s32 4294967192, %v3011_v45 }
  0xdf   :  { %v452_v50 = vsel %vm451_vm5, %v450_v17, %v448_v24  ;;  %v3075_v17 = vadd.s32 4294967184, %v3011_v45 }
  0xe2   :  { %v345_v21 = vpop.xlane.xlu0 %344  ;;  %v347_v23 = vpop.xlane.xlu1 %346 }
  0xe3   :  { %v454_v28 = vperm.slane %v345_v21, %v3041_v15  ;;  %v349_v43 = vpop.xlane.xlu2 %348  ;;  %v458_v51 = vperm.slane %v347_v23, %v3046_v22  ;;  %v3079_v23 = vadd.s32 4294967176, %v3011_v45 }
  0xe4   :  { %v462_v58 = vperm.slane %v349_v43, %v3051_v44 }
  0xe5   :  { %v456_v52 = vsel %vm455_vm6, %v454_v28, %v452_v50 }
  0xe6   :  { %v460_v62 = vsel %vm459_vm7, %v458_v51, %v456_v52 }
  0xe7   :  { %v464_v8 = vsel %vm463_vm8, %v462_v58, %v460_v62 }
  0xea   :  { %v351_v63 = vpop.xlane.xlu0 %350  ;;  %v353_v3 = vpop.xlane.xlu1 %352 }
  0xeb   :  { %v466_v4 = vperm.slane %v351_v63, %v3057_v54  ;;  %v355_v6 = vpop.xlane.xlu2 %354  ;;  %v470_v13 = vperm.slane %v353_v3, %v3061_v60 }
  0xec   :  { %v474_v21 = vperm.slane %v355_v6, %v3066_v7 }
  0xed   :  { %v468_v14 = vsel %vm467_vm9, %v466_v4, %v464_v8 }
  0xee   :  { %v472_v24 = vsel %vm471_vm10, %v470_v13, %v468_v14  ;;  %v3100_v14 = vld [vmem:[%s4450_s0 + $0x10] sm:$0xff] }
  0xef   :  { %v476_v58 = vsel %vm4456_vm11, %v474_v21, %v472_v24  ;;  %v3105_v21 = vld [vmem:[%s4450_s0 + $0x8] sm:$0xff] }
  0xf2   :  { %v357_v28 = vpop.xlane.xlu0 %356  ;;  %v359_v43 = vpop.xlane.xlu1 %358 }
  0xf3   :  { %v478_v50 = vperm.slane %v357_v28, %v3072_v16  ;;  %v482_v51 = vperm.slane %v359_v43, %v3075_v17  ;;  %v361_v52 = vpop.xlane.xlu2 %360 }
  0xf4   :  { %v486_v62 = vperm.slane %v361_v52, %v3079_v23 }
  0xf5   :  { %v480_v63 = vsel %vm4455_vm12, %v478_v50, %v476_v58 }
  0xf6   :  { %v484_v3 = vsel %vm4454_vm13, %v482_v51, %v480_v63  ;;  %v3112_v51 = vld [vmem:[%s4450_s0] sm:$0xff] }
  0xf7   :  { %v3089_v4 = vsel %vm4453_vm14, %v486_v62, %v484_v3 }
  0xf8   :  { %v542_v6 = vadd.f32 %v3089_v4, %v2882_v36  ;;  %v541_v8 = vadd.f32 %v3089_v4, %v2898_v46  ;;  %v540_v13 = vadd.f32 %v3089_v4, %v2880_v35  ;;  %v545_v24 = vadd.f32 %v3089_v4, %v2902_v48 }
  0xf9   :  { %v544_v52 = vadd.f32 %v3089_v4, %v2884_v37  ;;  %v543_v48 = vadd.f32 %v3089_v4, %v2900_v47 }
  0xfa   :  { %v363_v36 = vpop.xlane.xlu0 %362  ;;  %v365_v28 = vpop.xlane.xlu1 %364  ;;  %vm574_vm15 = vcmp.ge.f32.partialorder %v542_v6, 0.0  ;;  %v606_v46 = vmul.f32 0.2, %v542_v6  ;;  %vm573_vm14 = vcmp.ge.f32.partialorder %v541_v8, 0.0  ;;  %v605_v43 = vmul.f32 0.2, %v541_v8 }
  0xfb   :  { %v367_v35 = vpop.xlane.xlu2 %366  ;;  %vm572_vm13 = vcmp.ge.f32.partialorder %v540_v13, 0.0  ;;  %v604_v50 = vmul.f32 0.2, %v540_v13  ;;  %v609_v39 = vmul.f32 0.2, %v545_v24  ;;  %vm577_vm12 = vcmp.ge.f32.partialorder %v545_v24, 0.0 }
  0xfc   :  { %v638_v58 = vsel %vm574_vm15, %v542_v6, %v606_v46  ;;  %v637_v62 = vsel %vm573_vm14, %v541_v8, %v605_v43  ;;  %vm576_vm11 = vcmp.ge.f32.partialorder %v544_v52, 0.0  ;;  %v608_v37 = vmul.f32 0.2, %v544_v52  ;;  %v3135_v43 = vld [vmem:[%s4450_s0 + $0x28] sm:$0xff] }
  0xfd   :  { %v3119_v63 = vadd.f32 %v3100_v14, %v638_v58  ;;  %v3122_v3 = vadd.f32 %v3105_v21, %v637_v62  ;;  %v636_v42 = vsel %vm572_vm13, %v540_v13, %v604_v50  ;;  %v607_v47 = vmul.f32 0.2, %v543_v48  ;;  %v3140_v58 = vld [vmem:[%s4450_s0 + $0x20] sm:$0xff] }
  0xfe   :  { %v3125_v41 = vadd.f32 %v3112_v51, %v636_v42  ;;  %vm575_vm14 = vcmp.ge.f32.partialorder %v543_v48, 0.0  ;;  %v489_v6 = vperm.slane %v363_v36, %v3011_v45  ;;  %v490_v8 = vperm.slane %v365_v28, %v3014_v49 }
  0xff   :  { %752 = vmax.xlane.f32.xlu0 %v3119_v63  ;;  %750 = vmax.xlane.f32.xlu2 %v3122_v3  ;;  %v641_v42 = vsel %vm577_vm12, %v545_v24, %v609_v39  ;;  %v640_v50 = vsel %vm576_vm11, %v544_v52, %v608_v37  ;;  %v548_v62 = vadd.f32 %v3089_v4, %v2920_v57  ;;  %v3149_v39 = vld [vmem:[%s4450_s0 + $0x18] sm:$0xff]  ;;  %vm4517_vm13 = vcmask 1048512  }
 0x100   :  { %4513 = vst [vmem:[#allocation8_spill] sm:$0xff] %v3125_v41  ;;  %748 = vmax.xlane.f32.xlu1 %v3125_v41  ;;  %v547_v45 = vadd.f32 %v3089_v4, %v2918_v56  ;;  %v639_v36 = vsel %vm575_vm14, %v543_v48, %v607_v47  ;;  %v546_v24 = vadd.f32 %v3089_v4, %v2916_v55 }
 0x101   :  { %v492_v28 = vperm.slane %v367_v35, %v3017_v53  ;;  %v491_v52 = vsel %vm431_vm0, %v490_v8, %v489_v6  ;;  %v3157_v57 = vadd.f32 %v3135_v43, %v641_v42  ;;  %v3160_v56 = vadd.f32 %v3140_v58, %v640_v50  ;;  %v3174_v42 = vld [vmem:[%s4450_s0 + $0x40] sm:$0xff] }
 0x102   :  { %v369_v13 = vpop.xlane.xlu0 %368  ;;  %v371_v46 = vpop.xlane.xlu1 %370  ;;  %v3163_v48 = vadd.f32 %v3149_v39, %v639_v36  ;;  %v612_v47 = vmul.f32 0.2, %v548_v62  ;;  %v611_v41 = vmul.f32 0.2, %v547_v45  ;;  %vm580_vm11 = vcmp.ge.f32.partialorder %v548_v62, 0.0  ;;  %v3179_v36 = vld [vmem:[%s4450_s0 + $0x38] sm:$0xff] }
 0x103   :  { %v373_v49 = vpop.xlane.xlu2 %372  ;;  %v494_v37 = vperm.slane %v369_v13, %v3022_v59  ;;  %vm579_vm12 = vcmp.ge.f32.partialorder %v547_v45, 0.0  ;;  %v610_v55 = vmul.f32 0.2, %v546_v24  ;;  %v493_v53 = vsel %vm435_vm1, %v492_v28, %v491_v52 }
 0x104   :  { %v496_v59 = vperm.slane %v371_v46, %v3026_v61  ;;  %vm578_vm0 = vcmp.ge.f32.partialorder %v546_v24, 0.0  ;;  %v644_v13 = vsel %vm580_vm11, %v548_v62, %v612_v47  ;;  %v643_v50 = vsel %vm579_vm12, %v547_v45, %v611_v41 }
 0x105   :  { %v495_v35 = vsel %vm439_vm2, %v494_v37, %v493_v53  ;;  %v551_v61 = vadd.f32 %v3089_v4, %v2938_v2  ;;  %v550_v46 = vadd.f32 %v3089_v4, %v2936_v1  ;;  %v498_v28 = vperm.slane %v373_v49, %v3031_v5  ;;  %v3189_v37 = vld [vmem:[%s4450_s0 + $0x30] sm:$0xff] }
 0x106   :  { %v642_v52 = vsel %vm578_vm0, %v546_v24, %v610_v55  ;;  %v549_v41 = vadd.f32 %v3089_v4, %v2934_v0  ;;  %v497_v45 = vsel %vm443_vm3, %v496_v59, %v495_v35  ;;  %v3196_v2 = vadd.f32 %v3174_v42, %v644_v13 }
 0x107   :  { %758 = vmax.xlane.f32.xlu0 %v3157_v57  ;;  %756 = vmax.xlane.f32.xlu2 %v3160_v56  ;;  %v3199_v1 = vadd.f32 %v3179_v36, %v643_v50  ;;  %v3202_v5 = vadd.f32 %v3189_v37, %v642_v52  ;;  %vm583_vm1 = vcmp.ge.f32.partialorder %v551_v61, 0.0  ;;  %v615_v49 = vmul.f32 0.2, %v551_v61 }
 0x108   :  { %754 = vmax.xlane.f32.xlu1 %v3163_v48  ;;  %v614_v24 = vmul.f32 0.2, %v550_v46  ;;  %v499_v55 = vsel %vm447_vm4, %v498_v28, %v497_v45  ;;  %vm582_vm2 = vcmp.ge.f32.partialorder %v550_v46, 0.0  ;;  %vm581_vm3 = vcmp.ge.f32.partialorder %v549_v41, 0.0  ;;  %v3222_v28 = vld [vmem:[%s4450_s0 + $0x50] sm:$0xff]  ;;  %v3231_v45 = vld [vmem:[%s4450_s0 + $0x48] sm:$0xff] }
 0x109   :  { %v554_v59 = vadd.f32 %v3089_v4, %v2956_v11  ;;  %v553_v11 = vadd.f32 %v3089_v4, %v2954_v10 }
 0x10a   :  { %v375_v6 = vpop.xlane.xlu0 %374  ;;  %v377_v8 = vpop.xlane.xlu1 %376  ;;  %v646_v50 = vsel %vm582_vm2, %v550_v46, %v614_v24  ;;  %v552_v46 = vadd.f32 %v3089_v4, %v2952_v9 }
 0x10b   :  { %v379_v62 = vpop.xlane.xlu2 %378  ;;  %v500_v47 = vperm.slane %v375_v6, %v3036_v12  ;;  %v502_v0 = vperm.slane %v377_v8, %v3041_v15  ;;  %v613_v12 = vmul.f32 0.2, %v549_v41  ;;  %v647_v15 = vsel %vm583_vm1, %v551_v61, %v615_v49  ;;  %v3217_v8 = vld [vmem:[%s4450_s0 + $0x58] sm:$0xff] }
 0x10c   :  { %v504_v35 = vperm.slane %v379_v62, %v3046_v22  ;;  %v3239_v49 = vadd.f32 %v3222_v28, %v646_v50  ;;  %v618_v10 = vmul.f32 0.2, %v554_v59  ;;  %vm586_vm4 = vcmp.ge.f32.partialorder %v554_v59, 0.0  ;;  %v3260_v50 = vld [vmem:[%s4450_s0 + $0x68] sm:$0xff] }
 0x10d   :  { %v501_v53 = vsel %vm451_vm5, %v500_v47, %v499_v55  ;;  %v645_v61 = vsel %vm581_vm3, %v549_v41, %v613_v12  ;;  %v3236_v47 = vadd.f32 %v3217_v8, %v647_v15  ;;  %v617_v55 = vmul.f32 0.2, %v553_v11 }
 0x10e   :  { %v503_v22 = vsel %vm455_vm6, %v502_v0, %v501_v53  ;;  %v3244_v41 = vadd.f32 %v3231_v45, %v645_v61  ;;  %vm585_vm5 = vcmp.ge.f32.partialorder %v553_v11, 0.0  ;;  %v616_v9 = vmul.f32 0.2, %v552_v46 }
 0x10f   :  { %764 = vmax.xlane.f32.xlu0 %v3196_v2  ;;  %762 = vmax.xlane.f32.xlu2 %v3199_v1  ;;  %v505_v24 = vsel %vm459_vm7, %v504_v35, %v503_v22  ;;  %vm584_vm6 = vcmp.ge.f32.partialorder %v552_v46, 0.0  ;;  %v649_v15 = vsel %vm585_vm5, %v553_v11, %v617_v55  ;;  %vm4514_vm7 = vcmask 851712  }
 0x110   :  { %760 = vmax.xlane.f32.xlu1 %v3202_v5 }
 0x112   :  { %v381_v6 = vpop.xlane.xlu0 %380  ;;  %v383_v13 = vpop.xlane.xlu1 %382 }
 0x113   :  { %v506_v62 = vperm.slane %v381_v6, %v3051_v44  ;;  %v385_v52 = vpop.xlane.xlu2 %384  ;;  %v508_v44 = vperm.slane %v383_v13, %v3057_v54  ;;  %v650_v6 = vsel %vm586_vm4, %v554_v59, %v618_v10  ;;  %v3255_v13 = vld [vmem:[%s4450_s0 + $0x70] sm:$0xff]  ;;  %v555_v59 = vadd.f32 %v3089_v4, %v2970_v18 }
 0x114   :  { %v510_v12 = vperm.slane %v385_v52, %v3061_v60  ;;  %v3266_v60 = vld [vmem:[%s4450_s0 + $0x60] sm:$0xff]  ;;  %v3273_v10 = vadd.f32 %v3255_v13, %v650_v6  ;;  %vm27_vm4 = vcmask 7168  }
 0x115   :  { %v507_v0 = vsel %vm463_vm8, %v506_v62, %v505_v24  ;;  %v648_v62 = vsel %vm584_vm6, %v552_v46, %v616_v9  ;;  %v3276_v24 = vadd.f32 %v3260_v50, %v649_v15  ;;  %v619_v18 = vmul.f32 0.2, %v555_v59  ;;  %v3291_v9 = vld [vmem:[%s4450_s0 + $0x78] sm:$0xff] }
 0x116   :  { %v509_v54 = vsel %vm467_vm9, %v508_v44, %v507_v0  ;;  %v3280_v46 = vadd.f32 %v3266_v60, %v648_v62  ;;  %vm587_vm8 = vcmp.ge.f32.partialorder %v555_v59, 0.0  ;;  %vm4515_vm9 = vcmask 917312  }
 0x117   :  { %770 = vmax.xlane.f32.xlu0 %v3236_v47  ;;  %768 = vmax.xlane.f32.xlu2 %v3239_v49  ;;  %v511_v52 = vsel %vm471_vm10, %v510_v12, %v509_v54  ;;  %v651_v0 = vsel %vm587_vm8, %v555_v59, %v619_v18  ;;  %vm4516_vm10 = vcmask 982912  }
 0x118   :  { %766 = vmax.xlane.f32.xlu1 %v3244_v41 }
 0x11a   :  { %v387_v53 = vpop.xlane.xlu0 %386  ;;  %v389_v35 = vpop.xlane.xlu1 %388 }
 0x11b   :  { %v512_v22 = vperm.slane %v387_v53, %v3066_v7  ;;  %v514_v11 = vperm.slane %v389_v35, %v3072_v16  ;;  %v391_v61 = vpop.xlane.xlu2 %390 }
 0x11c   :  { %v516_v4 = vperm.slane %v391_v61, %v3075_v17  ;;  %v3298_v17 = vadd.f32 %v3291_v9, %v651_v0 }
 0x11d   :  { %v513_v7 = vsel %vm4514_vm7, %v512_v22, %v511_v52 }
 0x11e   :  { %v515_v16 = vsel %vm4515_vm9, %v514_v11, %v513_v7 }
 0x11f   :  { %776 = vmax.xlane.f32.xlu0 %v3273_v10  ;;  %774 = vmax.xlane.f32.xlu2 %v3276_v24  ;;  %v517_v12 = vsel %vm4516_vm10, %v516_v4, %v515_v16 }
 0x120   :  { %772 = vmax.xlane.f32.xlu1 %v3280_v46 }
 0x122   :  { %v393_v44 = vpop.xlane.xlu0 %392 }
 0x123   :  { %v518_v55 = vperm.slane %v393_v44, %v3079_v23 }
 0x125   :  { %v3295_v54 = vsel %vm4517_vm13, %v518_v55, %v517_v12 }
 0x126   :  { %v557_v53 = vadd.f32 %v3295_v54, %v2974_v20  ;;  %v556_v23 = vadd.f32 %v3295_v54, %v2972_v19  ;;  %v558_v35 = vadd.f32 %v3295_v54, %v2982_v25  ;;  %v560_v6 = vadd.f32 %v3295_v54, %v2986_v27 }
 0x127   :  { %v559_v15 = vadd.f32 %v3295_v54, %v2984_v26  ;;  %v561_v26 = vadd.f32 %v3295_v54, %v2989_v29  ;;  %v562_v29 = vadd.f32 %v3295_v54, %v2991_v30  ;;  %v564_v55 = vadd.f32 %v3295_v54, %v2995_v32 }
 0x128   :  { %778 = vmax.xlane.f32.xlu1 %v3298_v17  ;;  %vm589_vm15 = vcmp.ge.f32.partialorder %v557_v53, 0.0  ;;  %v621_v22 = vmul.f32 0.2, %v557_v53  ;;  %vm588_vm14 = vcmp.ge.f32.partialorder %v556_v23, 0.0  ;;  %v620_v62 = vmul.f32 0.2, %v556_v23 }
 0x129   :  { %vm590_vm11 = vcmp.ge.f32.partialorder %v558_v35, 0.0  ;;  %v622_v20 = vmul.f32 0.2, %v558_v35  ;;  %v624_v11 = vmul.f32 0.2, %v560_v6  ;;  %vm592_vm12 = vcmp.ge.f32.partialorder %v560_v6, 0.0 }
 0x12a   :  { %v653_v59 = vsel %vm589_vm15, %v557_v53, %v621_v22  ;;  %v652_v52 = vsel %vm588_vm14, %v556_v23, %v620_v62  ;;  %v623_v61 = vmul.f32 0.2, %v559_v15  ;;  %vm591_vm0 = vcmp.ge.f32.partialorder %v559_v15, 0.0 }
 0x12b   :  { %v3312_v19 = vadd.f32 %v3105_v21, %v653_v59  ;;  %v3315_v25 = vadd.f32 %v3112_v51, %v652_v52  ;;  %v654_v27 = vsel %vm590_vm11, %v558_v35, %v622_v20  ;;  %v625_v21 = vmul.f32 0.2, %v561_v26  ;;  %v4518_v20 = vld [vmem:[#allocation5_spill] sm:$0xff] }
 0x12c   :  { %v3322_v7 = vadd.f32 %v3100_v14, %v654_v27  ;;  %v563_v51 = vadd.f32 %v3295_v54, %v2993_v31  ;;  %v656_v18 = vsel %vm592_vm12, %v560_v6, %v624_v11  ;;  %v655_v4 = vsel %vm591_vm0, %v559_v15, %v623_v61 }
 0x12d   :  { %782 = vmax.xlane.f32.xlu0 %v3312_v19  ;;  %780 = vmax.xlane.f32.xlu2 %v3315_v25  ;;  %vm593_vm1 = vcmp.ge.f32.partialorder %v561_v26, 0.0  ;;  %v3330_v16 = vadd.f32 %v3140_v58, %v656_v18  ;;  %v3333_v44 = vadd.f32 %v3149_v39, %v655_v4  ;;  %v626_v31 = vmul.f32 0.2, %v562_v29  ;;  %v4520_v18 = vld [vmem:[#allocation7_spill] sm:$0xff] }
 0x12e   :  { %v657_v14 = vsel %vm593_vm1, %v561_v26, %v625_v21  ;;  %v627_v0 = vmul.f32 0.2, %v563_v51  ;;  %vm595_vm2 = vcmp.ge.f32.partialorder %v563_v51, 0.0  ;;  %vm594_vm3 = vcmp.ge.f32.partialorder %v562_v29, 0.0 }
 0x12f   :  { %v3340_v30 = vadd.f32 %v3135_v43, %v657_v14  ;;  %v628_v58 = vmul.f32 0.2, %v564_v55  ;;  %v566_v39 = vadd.f32 %v3295_v54, %v2999_v34  ;;  %v658_v32 = vsel %vm594_vm3, %v562_v29, %v626_v31 }
 0x130   :  { %784 = vmax.xlane.f32.xlu1 %v3322_v7  ;;  %v659_v12 = vsel %vm595_vm2, %v563_v51, %v627_v0  ;;  %vm596_vm5 = vcmp.ge.f32.partialorder %v564_v55, 0.0  ;;  %v565_v53 = vadd.f32 %v3295_v54, %v2997_v33  ;;  %v2689_v23 = vmov -1e+30  }
 0x131   :  { %30 = vst.msk [vmem:[#allocation2 + $0x10] sm:$0xff] %vm27_vm4, %v2689_v23  ;;  %v567_v43 = vadd.f32 %v3295_v54, %v3001_v38  ;;  %v3356_v34 = vadd.f32 %v3179_v36, %v659_v12  ;;  %v3359_v35 = vadd.f32 %v3189_v37, %v658_v32  ;;  %v660_v33 = vsel %vm596_vm5, %v564_v55, %v628_v58 }
 0x132   :  { %28 = vst.msk [vmem:[#allocation2] sm:$0xff] %vm27_vm4, %v2689_v23  ;;  %v630_v6 = vmul.f32 0.2, %v566_v39  ;;  %vm598_vm6 = vcmp.ge.f32.partialorder %v566_v39, 0.0  ;;  %v629_v15 = vmul.f32 0.2, %v565_v53  ;;  %v3370_v38 = vadd.f32 %v3174_v42, %v660_v33 }
 0x133   :  { %29 = vst.msk [vmem:[#allocation2 + $0x8] sm:$0xff] %vm27_vm4, %v2689_v23  ;;  %vm597_vm7 = vcmp.ge.f32.partialorder %v565_v53, 0.0  ;;  %v631_v37 = vmul.f32 0.2, %v567_v43  ;;  %vm599_vm8 = vcmp.ge.f32.partialorder %v567_v43, 0.0  ;;  %v569_v62 = vadd.f32 %v3295_v54, %v3005_v40  ;;  %v4519_v40 = vld [vmem:[#allocation6_spill] sm:$0xff] }
 0x134   :  { %31 = vst.msk [vmem:[#allocation2 + $0x18] sm:$0xff] %vm27_vm4, %v2689_v23  ;;  %v662_v36 = vsel %vm598_vm6, %v566_v39, %v630_v6  ;;  %v661_v22 = vsel %vm597_vm7, %v565_v53, %v629_v15  ;;  %v568_v59 = vadd.f32 %v3295_v54, %v4518_v20  ;;  %v570_v26 = vadd.f32 %v3295_v54, %v4519_v40 }
 0x135   :  { %788 = vmax.xlane.f32.xlu0 %v3330_v16  ;;  %786 = vmax.xlane.f32.xlu2 %v3333_v44  ;;  %32 = vst.msk [vmem:[#allocation2 + $0x20] sm:$0xff] %vm27_vm4, %v2689_v23  ;;  %v3388_v42 = vadd.f32 %v3222_v28, %v662_v36  ;;  %v3391_v52 = vadd.f32 %v3231_v45, %v661_v22  ;;  %v633_v11 = vmul.f32 0.2, %v569_v62  ;;  %vm601_vm9 = vcmp.ge.f32.partialorder %v569_v62, 0.0 }
 0x136   :  { %33 = vst.msk [vmem:[#allocation2 + $0x28] sm:$0xff] %vm27_vm4, %v2689_v23  ;;  %v663_v27 = vsel %vm599_vm8, %v567_v43, %v631_v37  ;;  %v632_v61 = vmul.f32 0.2, %v568_v59  ;;  %vm600_vm10 = vcmp.ge.f32.partialorder %v568_v59, 0.0  ;;  %v634_v45 = vmul.f32 0.2, %v570_v26 }
 0x137   :  { %34 = vst.msk [vmem:[#allocation2 + $0x30] sm:$0xff] %vm27_vm4, %v2689_v23  ;;  %v3404_v28 = vadd.f32 %v3217_v8, %v663_v27  ;;  %v665_v21 = vsel %vm601_vm9, %v569_v62, %v633_v11  ;;  %vm602_vm13 = vcmp.ge.f32.partialorder %v570_v26, 0.0  ;;  %v571_v4 = vadd.f32 %v3295_v54, %v4520_v18 }
 0x138   :  { %790 = vmax.xlane.f32.xlu1 %v3340_v30  ;;  %35 = vst.msk [vmem:[#allocation2 + $0x38] sm:$0xff] %vm27_vm4, %v2689_v23  ;;  %v664_v51 = vsel %vm600_vm10, %v568_v59, %v632_v61  ;;  %v3420_v8 = vadd.f32 %v3260_v50, %v665_v21  ;;  %v666_v14 = vsel %vm602_vm13, %v570_v26, %v634_v45  ;;  %v2690_v55 = vmov 0   ;;  %v3469_v0 = vld [vmem:[#allocation2 + $0x10] sm:$0xff] }
 0x139   :  { %36 = vst.msk [vmem:[#allocation2 + $0x40] sm:$0xff] %vm27_vm4, %v2689_v23  ;;  %v3423_v29 = vadd.f32 %v3266_v60, %v664_v51  ;;  %v635_v54 = vmul.f32 0.2, %v571_v4  ;;  %vm603_vm15 = vcmp.ge.f32.partialorder %v571_v4, 0.0  ;;  %v3434_v50 = vadd.f32 %v3255_v13, %v666_v14  ;;  %2463 = vset.pattern.permute.xlu2 %v2690_v55  ;;  %2462 = vset.pattern.permute.xlu1 %v2690_v55  ;;  %v3475_v58 = vld [vmem:[#allocation2] sm:$0xff] }
 0x13a   :  { %37 = vst.msk [vmem:[#allocation2 + $0x48] sm:$0xff] %vm27_vm4, %v2689_v23  ;;  %2461 = vset.pattern.permute.xlu0 %v2690_v55  ;;  %v3471_v31 = vld [vmem:[#allocation2 + $0x8] sm:$0xff] }
 0x13b   :  { %38 = vst.msk [vmem:[#allocation2 + $0x50] sm:$0xff] %vm27_vm4, %v2689_v23  ;;  %v667_v60 = vsel %vm603_vm15, %v571_v4, %v635_v54  ;;  %v3515_v22 = vld [vmem:[#allocation2 + $0x18] sm:$0xff] }
 0x13c   :  { %39 = vst.msk [vmem:[#allocation2 + $0x58] sm:$0xff] %vm27_vm4, %v2689_v23  ;;  %v3448_v13 = vadd.f32 %v3291_v9, %v667_v60  ;;  %v2691_v9 = vmov 0.0   ;;  %v3511_v37 = vld [vmem:[#allocation2 + $0x20] sm:$0xff] }
 0x13d   :  { %794 = vmax.xlane.f32.xlu0 %v3356_v34  ;;  %792 = vmax.xlane.f32.xlu2 %v3359_v35  ;;  %40 = vst.msk [vmem:[#allocation2 + $0x60] sm:$0xff] %vm27_vm4, %v2689_v23  ;;  %v3509_v36 = vld [vmem:[#allocation2 + $0x28] sm:$0xff] }
 0x13e   :  { %41 = vst.msk [vmem:[#allocation2 + $0x68] sm:$0xff] %vm27_vm4, %v2689_v23  ;;  %v3554_v18 = vld [vmem:[#allocation2 + $0x30] sm:$0xff] }
 0x13f   :  { %42 = vst.msk [vmem:[#allocation2 + $0x70] sm:$0xff] %vm27_vm4, %v2689_v23  ;;  %v3550_v51 = vld [vmem:[#allocation2 + $0x38] sm:$0xff] }
 0x140   :  { %796 = vmax.xlane.f32.xlu1 %v3370_v38  ;;  %43 = vst.msk [vmem:[#allocation2 + $0x78] sm:$0xff] %vm27_vm4, %v2689_v23  ;;  %v3548_v21 = vld [vmem:[#allocation2 + $0x40] sm:$0xff] }
 0x141   :  { %44 = vst.msk [vmem:[#allocation2 + $0x80] sm:$0xff] %vm27_vm4, %v2689_v23 }
 0x142   :  { %45 = vst.msk [vmem:[#allocation2 + $0x88] sm:$0xff] %vm27_vm4, %v2689_v23 }
 0x143   :  { %46 = vst.msk [vmem:[#allocation2 + $0x90] sm:$0xff] %vm27_vm4, %v2689_v23 }
 0x144   :  { %47 = vst.msk [vmem:[#allocation2 + $0x98] sm:$0xff] %vm27_vm4, %v2689_v23 }
 0x145   :  { %800 = vmax.xlane.f32.xlu0 %v3388_v42  ;;  %798 = vmax.xlane.f32.xlu2 %v3391_v52  ;;  %48 = vst.msk [vmem:[#allocation2 + $0xa0] sm:$0xff] %vm27_vm4, %v2689_v23  ;;  %v3630_v45 = vld [vmem:[#allocation2 + $0x68] sm:$0xff] }
 0x146   :  { %49 = vst.msk [vmem:[#allocation2 + $0xa8] sm:$0xff] %vm27_vm4, %v2689_v23 }
 0x147   :  { %50 = vst.msk [vmem:[#allocation2 + $0xb0] sm:$0xff] %vm27_vm4, %v2689_v23 }
 0x148   :  { %802 = vmax.xlane.f32.xlu1 %v3404_v28  ;;  %51 = vst.msk [vmem:[#allocation2 + $0xb8] sm:$0xff] %vm27_vm4, %v2689_v23 }
 0x149   :  { %52 = vst.msk [vmem:[#allocation2 + $0xc0] sm:$0xff] %vm27_vm4, %v2689_v23 }
 0x14a   :  { %53 = vst.msk [vmem:[#allocation2 + $0xc8] sm:$0xff] %vm27_vm4, %v2689_v23 }
 0x14b   :  { %54 = vst.msk [vmem:[#allocation2 + $0xd0] sm:$0xff] %vm27_vm4, %v2689_v23 }
 0x14c   :  { %4521 = vst [vmem:[#allocation5_spill] sm:$0xff] %v3448_v13 }
 0x14d   :  { %806 = vmax.xlane.f32.xlu0 %v3420_v8  ;;  %804 = vmax.xlane.f32.xlu2 %v3423_v29  ;;  %55 = vst.msk [vmem:[#allocation2 + $0xd8] sm:$0xff] %vm27_vm4, %v2689_v23 }
 0x14e   :  { %56 = vst.msk [vmem:[#allocation2 + $0xe0] sm:$0xff] %vm27_vm4, %v2689_v23 }
 0x14f   :  { %57 = vst.msk [vmem:[#allocation2 + $0xe8] sm:$0xff] %vm27_vm4, %v2689_v23 }
 0x150   :  { %808 = vmax.xlane.f32.xlu1 %v3434_v50  ;;  %58 = vst.msk [vmem:[#allocation2 + $0xf0] sm:$0xff] %vm27_vm4, %v2689_v23 }
 0x151   :  { %59 = vst.msk [vmem:[#allocation2 + $0xf8] sm:$0xff] %vm27_vm4, %v2689_v23 }
 0x152   :  { %62 = vst.msk [vmem:[#allocation3 + $0x10] sm:$0xff] %vm27_vm4, %v2691_v9 }
 0x153   :  { %60 = vst.msk [vmem:[#allocation3] sm:$0xff] %vm27_vm4, %v2691_v9 }
 0x154   :  { %61 = vst.msk [vmem:[#allocation3 + $0x8] sm:$0xff] %vm27_vm4, %v2691_v9 }
 0x155   :  { %810 = vmax.xlane.f32.xlu2 %v3448_v13  ;;  %63 = vst.msk [vmem:[#allocation3 + $0x18] sm:$0xff] %vm27_vm4, %v2691_v9 }
 0x156   :  { %64 = vst.msk [vmem:[#allocation3 + $0x20] sm:$0xff] %vm27_vm4, %v2691_v9 }
 0x157   :  { %65 = vst.msk [vmem:[#allocation3 + $0x28] sm:$0xff] %vm27_vm4, %v2691_v9 }
 0x158   :  { %66 = vst.msk [vmem:[#allocation3 + $0x30] sm:$0xff] %vm27_vm4, %v2691_v9 }
 0x159   :  { %67 = vst.msk [vmem:[#allocation3 + $0x38] sm:$0xff] %vm27_vm4, %v2691_v9 }
 0x15a   :  { %68 = vst.msk [vmem:[#allocation3 + $0x40] sm:$0xff] %vm27_vm4, %v2691_v9 }
 0x15b   :  { %4522 = vst [vmem:[#allocation6_spill] sm:$0xff] %v3509_v36 }
 0x15c   :  { %69 = vst.msk [vmem:[#allocation3 + $0x48] sm:$0xff] %vm27_vm4, %v2691_v9 }
 0x15d   :  { %70 = vst.msk [vmem:[#allocation3 + $0x50] sm:$0xff] %vm27_vm4, %v2691_v9 }
 0x15e   :  { %71 = vst.msk [vmem:[#allocation3 + $0x58] sm:$0xff] %vm27_vm4, %v2691_v9 }
 0x15f   :  { %72 = vst.msk [vmem:[#allocation3 + $0x60] sm:$0xff] %vm27_vm4, %v2691_v9 }
 0x160   :  { %73 = vst.msk [vmem:[#allocation3 + $0x68] sm:$0xff] %vm27_vm4, %v2691_v9 }
 0x161   :  { %4524 = vst [vmem:[#allocation9_spill] sm:$0xff] %v3548_v21 }
 0x162   :  { %74 = vst.msk [vmem:[#allocation3 + $0x70] sm:$0xff] %vm27_vm4, %v2691_v9 }
 0x163   :  { %4525 = vst [vmem:[#allocation10_spill] sm:$0xff] %v3554_v18 }
 0x164   :  { %75 = vst.msk [vmem:[#allocation3 + $0x78] sm:$0xff] %vm27_vm4, %v2691_v9 }
 0x165   :  { %76 = vst.msk [vmem:[#allocation3 + $0x80] sm:$0xff] %vm27_vm4, %v2691_v9 }
 0x166   :  { %77 = vst.msk [vmem:[#allocation3 + $0x88] sm:$0xff] %vm27_vm4, %v2691_v9 }
 0x167   :  { %78 = vst.msk [vmem:[#allocation3 + $0x90] sm:$0xff] %vm27_vm4, %v2691_v9 }
 0x168   :  { %79 = vst.msk [vmem:[#allocation3 + $0x98] sm:$0xff] %vm27_vm4, %v2691_v9 }
 0x169   :  { %80 = vst.msk [vmem:[#allocation3 + $0xa0] sm:$0xff] %vm27_vm4, %v2691_v9 }
 0x16a   :  { %81 = vst.msk [vmem:[#allocation3 + $0xa8] sm:$0xff] %vm27_vm4, %v2691_v9 }
 0x16b   :  { %82 = vst.msk [vmem:[#allocation3 + $0xb0] sm:$0xff] %vm27_vm4, %v2691_v9 }
 0x16c   :  { %83 = vst.msk [vmem:[#allocation3 + $0xb8] sm:$0xff] %vm27_vm4, %v2691_v9 }
 0x16d   :  { %4535 = vst [vmem:[#allocation20_spill] sm:$0xff] %v3630_v45 }
 0x16e   :  { %84 = vst.msk [vmem:[#allocation3 + $0xc0] sm:$0xff] %vm27_vm4, %v2691_v9 }
 0x16f   :  { %85 = vst.msk [vmem:[#allocation3 + $0xc8] sm:$0xff] %vm27_vm4, %v2691_v9 }
 0x170   :  { %86 = vst.msk [vmem:[#allocation3 + $0xd0] sm:$0xff] %vm27_vm4, %v2691_v9 }
 0x171   :  { %87 = vst.msk [vmem:[#allocation3 + $0xd8] sm:$0xff] %vm27_vm4, %v2691_v9 }
 0x172   :  { %v753_v39 = vpop.xlane.xlu0 %752  ;;  %v751_v12 = vpop.xlane.xlu2 %750  ;;  %88 = vst.msk [vmem:[#allocation3 + $0xe0] sm:$0xff] %vm27_vm4, %v2691_v9 }
 0x173   :  { %v3482_v32 = vmax.f32 %v3469_v0, %v753_v39  ;;  %v3485_v53 = vmax.f32 %v3471_v31, %v751_v12  ;;  %v749_v23 = vpop.xlane.xlu1 %748  ;;  %89 = vst.msk [vmem:[#allocation3 + $0xe8] sm:$0xff] %vm27_vm4, %v2691_v9 }
 0x174   :  { %v3490_v43 = vmax.f32 %v3475_v58, %v749_v23  ;;  %90 = vst.msk [vmem:[#allocation3 + $0xf0] sm:$0xff] %vm27_vm4, %v2691_v9 }
 0x175   :  { %2033 = vst.msk [vmem:[#allocation2 + $0x10] sm:$0xff] %vm27_vm4, %v3482_v32  ;;  %952 = vperm.xlu2 %2463, %v3482_v32   ;;  %947 = vperm.xlu1 %2462, %v3485_v53  }
 0x176   :  { %2032 = vst.msk [vmem:[#allocation2 + $0x8] sm:$0xff] %vm27_vm4, %v3485_v53  ;;  %942 = vperm.xlu0 %2461, %v3490_v43  }
 0x177   :  { %2031 = vst.msk [vmem:[#allocation2] sm:$0xff] %vm27_vm4, %v3490_v43 }
 0x178   :  { %91 = vst.msk [vmem:[#allocation3 + $0xf8] sm:$0xff] %vm27_vm4, %v2691_v9 }
 0x17a   :  { %v759_v62 = vpop.xlane.xlu0 %758  ;;  %v757_v20 = vpop.xlane.xlu2 %756 }
 0x17b   :  { %v3522_v59 = vmax.f32 %v3509_v36, %v759_v62  ;;  %v3525_v27 = vmax.f32 %v3511_v37, %v757_v20  ;;  %v755_v40 = vpop.xlane.xlu1 %754  ;;  %v3588_v20 = vld [vmem:[#allocation2 + $0x58] sm:$0xff] }
 0x17c   :  { %v3530_v26 = vmax.f32 %v3515_v22, %v755_v40  ;;  %4528 = vst [vmem:[#allocation13_spill] sm:$0xff] %v3588_v20  ;;  %v3590_v40 = vld [vmem:[#allocation2 + $0x50] sm:$0xff] }
 0x17d   :  { %4523 = vst [vmem:[#allocation7_spill] sm:$0xff] %v3522_v59  ;;  %962 = vperm.xlu1 %2462, %v3525_v27  }
 0x17e   :  { %2036 = vst.msk [vmem:[#allocation2 + $0x28] sm:$0xff] %vm27_vm4, %v3522_v59  ;;  %957 = vperm.xlu2 %2463, %v3530_v26  }
 0x17f   :  { %2035 = vst.msk [vmem:[#allocation2 + $0x20] sm:$0xff] %vm27_vm4, %v3525_v27 }
 0x180   :  { %2034 = vst.msk [vmem:[#allocation2 + $0x18] sm:$0xff] %vm27_vm4, %v3530_v26 }
 0x181   :  { %4529 = vst [vmem:[#allocation14_spill] sm:$0xff] %v3590_v40 }
 0x182   :  { %v765_v4 = vpop.xlane.xlu0 %764  ;;  %v763_v14 = vpop.xlane.xlu2 %762 }
 0x183   :  { %v3561_v54 = vmax.f32 %v3548_v21, %v765_v4  ;;  %v3564_v60 = vmax.f32 %v3550_v51, %v763_v14  ;;  %v761_v55 = vpop.xlane.xlu1 %760  ;;  %v3594_v4 = vld [vmem:[#allocation2 + $0x48] sm:$0xff] }
 0x184   :  { %v3569_v39 = vmax.f32 %v3554_v18, %v761_v55  ;;  %4530 = vst [vmem:[#allocation15_spill] sm:$0xff] %v3594_v4 }
 0x185   :  { %4526 = vst [vmem:[#allocation11_spill] sm:$0xff] %v3561_v54  ;;  %977 = vperm.xlu0 %2461, %v3564_v60  }
 0x186   :  { %4527 = vst [vmem:[#allocation12_spill] sm:$0xff] %v3569_v39  ;;  %967 = vperm.xlu2 %2463, %v3522_v59   ;;  %972 = vperm.xlu1 %2462, %v3569_v39  }
 0x187   :  { %2039 = vst.msk [vmem:[#allocation2 + $0x40] sm:$0xff] %vm27_vm4, %v3561_v54 }
 0x188   :  { %2038 = vst.msk [vmem:[#allocation2 + $0x38] sm:$0xff] %vm27_vm4, %v3564_v60 }
 0x189   :  { %2037 = vst.msk [vmem:[#allocation2 + $0x30] sm:$0xff] %vm27_vm4, %v3569_v39 }
 0x18a   :  { %v771_v14 = vpop.xlane.xlu0 %770  ;;  %v769_v55 = vpop.xlane.xlu2 %768 }
 0x18b   :  { %v3601_v12 = vmax.f32 %v3588_v20, %v771_v14  ;;  %v3604_v11 = vmax.f32 %v3590_v40, %v769_v55  ;;  %v767_v62 = vpop.xlane.xlu1 %766  ;;  %v3628_v55 = vld [vmem:[#allocation2 + $0x70] sm:$0xff]  ;;  %v3634_v14 = vld [vmem:[#allocation2 + $0x60] sm:$0xff] }
 0x18c   :  { %v3609_v23 = vmax.f32 %v3594_v4, %v767_v62  ;;  %4534 = vst [vmem:[#allocation19_spill] sm:$0xff] %v3628_v55 }
 0x18d   :  { %4531 = vst [vmem:[#allocation16_spill] sm:$0xff] %v3601_v12  ;;  %992 = vperm.xlu0 %2461, %v3604_v11  }
 0x18e   :  { %4532 = vst [vmem:[#allocation17_spill] sm:$0xff] %v3604_v11  ;;  %982 = vperm.xlu2 %2463, %v3561_v54   ;;  %987 = vperm.xlu1 %2462, %v3609_v23  }
 0x18f   :  { %4533 = vst [vmem:[#allocation18_spill] sm:$0xff] %v3609_v23 }
 0x190   :  { %2042 = vst.msk [vmem:[#allocation2 + $0x58] sm:$0xff] %vm27_vm4, %v3601_v12 }
 0x191   :  { %2041 = vst.msk [vmem:[#allocation2 + $0x50] sm:$0xff] %vm27_vm4, %v3604_v11 }
 0x192   :  { %2040 = vst.msk [vmem:[#allocation2 + $0x48] sm:$0xff] %vm27_vm4, %v3609_v23  ;;  %v777_v62 = vpop.xlane.xlu0 %776  ;;  %v775_v61 = vpop.xlane.xlu2 %774 }
 0x193   :  { %4536 = vst [vmem:[#allocation21_spill] sm:$0xff] %v3634_v14  ;;  %v3641_v6 = vmax.f32 %v3628_v55, %v777_v62  ;;  %v3644_v33 = vmax.f32 %v3630_v45, %v775_v61  ;;  %v773_v15 = vpop.xlane.xlu1 %772  ;;  %v3670_v62 = vld [vmem:[#allocation2 + $0x78] sm:$0xff]  ;;  %v3685_v55 = vld [vmem:[#allocation2 + $0x88] sm:$0xff]  ;;  %v3695_v61 = vld [vmem:[#allocation2 + $0x90] sm:$0xff] }
 0x194   :  { %v3649_v13 = vmax.f32 %v3634_v14, %v773_v15  ;;  %4540 = vst [vmem:[#allocation25_spill] sm:$0xff] %v3670_v62  ;;  %v2659_v45 = vld [vmem:[%s4449_s2 + $0x60] sm:$0xff] }
 0x195   :  { %4537 = vst [vmem:[#allocation22_spill] sm:$0xff] %v3641_v6  ;;  %1007 = vperm.xlu0 %2461, %v3644_v33   ;;  %v1657_v54 = vpack.c.bf16 %v2659_v45, %v2659_v45 }
 0x196   :  { %4538 = vst [vmem:[#allocation23_spill] sm:$0xff] %v3644_v33  ;;  %997 = vperm.xlu2 %2463, %v3601_v12   ;;  %1002 = vperm.xlu1 %2462, %v3649_v13   ;;  %v3687_v12 = vld [vmem:[#allocation2 + $0x80] sm:$0xff] }
 0x197   :  { %4539 = vst [vmem:[#allocation24_spill] sm:$0xff] %v3649_v13 }
 0x198   :  { %2045 = vst.msk [vmem:[#allocation2 + $0x70] sm:$0xff] %vm27_vm4, %v3641_v6 }
 0x199   :  { %2044 = vst.msk [vmem:[#allocation2 + $0x68] sm:$0xff] %vm27_vm4, %v3644_v33  ;;  %v3791_v33 = vld [vmem:[#allocation2 + $0xd8] sm:$0xff] }
 0x19a   :  { %2043 = vst.msk [vmem:[#allocation2 + $0x60] sm:$0xff] %vm27_vm4, %v3649_v13 }
 0x19b   :  { %v779_v20 = vpop.xlane.xlu1 %778  ;;  %4542 = vst [vmem:[#allocation27_spill] sm:$0xff] %v3685_v55 }
 0x19c   :  { %v3677_v15 = vmax.f32 %v3670_v62, %v779_v20  ;;  %4543 = vst [vmem:[#allocation28_spill] sm:$0xff] %v3687_v12  ;;  %v3715_v62 = vld [vmem:[#allocation2 + $0xa0] sm:$0xff] }
 0x19d   :  { %4546 = vst [vmem:[#allocation31_spill] sm:$0xff] %v3695_v61 }
 0x19e   :  { %4541 = vst [vmem:[#allocation26_spill] sm:$0xff] %v3677_v15  ;;  %1012 = vperm.xlu2 %2463, %v3641_v6   ;;  %1017 = vperm.xlu1 %2462, %v3677_v15   ;;  %v3717_v6 = vld [vmem:[#allocation2 + $0x98] sm:$0xff] }
 0x19f   :  { %2046 = vst.msk [vmem:[#allocation2 + $0x78] sm:$0xff] %vm27_vm4, %v3677_v15 }
 0x1a0   :  { %v783_v13 = vpop.xlane.xlu0 %782  ;;  %v781_v9 = vpop.xlane.xlu2 %780  ;;  %4548 = vst [vmem:[#allocation33_spill] sm:$0xff] %v3715_v62 }
 0x1a1   :  { %v3690_v14 = vmax.f32 %v3685_v55, %v783_v13  ;;  %v3693_v20 = vmax.f32 %v3687_v12, %v781_v9  ;;  %4549 = vst [vmem:[#allocation34_spill] sm:$0xff] %v3717_v6  ;;  %v3725_v9 = vld [vmem:[#allocation2 + $0xa8] sm:$0xff] }
 0x1a2   :  { %4552 = vst [vmem:[#allocation37_spill] sm:$0xff] %v3725_v9 }
 0x1a3   :  { %4544 = vst [vmem:[#allocation29_spill] sm:$0xff] %v3690_v14  ;;  %v785_v15 = vpop.xlane.xlu1 %784  ;;  %1022 = vperm.xlu0 %2461, %v3693_v20  }
 0x1a4   :  { %4545 = vst [vmem:[#allocation30_spill] sm:$0xff] %v3693_v20  ;;  %v3707_v13 = vmax.f32 %v3695_v61, %v785_v15  ;;  %v3745_v61 = vld [vmem:[#allocation2 + $0xb8] sm:$0xff] }
 0x1a5   :  { %2048 = vst.msk [vmem:[#allocation2 + $0x88] sm:$0xff] %vm27_vm4, %v3690_v14 }
 0x1a6   :  { %2047 = vst.msk [vmem:[#allocation2 + $0x80] sm:$0xff] %vm27_vm4, %v3693_v20  ;;  %1027 = vperm.xlu2 %2463, %v3690_v14   ;;  %1032 = vperm.xlu1 %2462, %v3707_v13   ;;  %v3747_v14 = vld [vmem:[#allocation2 + $0xb0] sm:$0xff] }
 0x1a7   :  { %4547 = vst [vmem:[#allocation32_spill] sm:$0xff] %v3707_v13 }
 0x1a8   :  { %2049 = vst.msk [vmem:[#allocation2 + $0x90] sm:$0xff] %vm27_vm4, %v3707_v13  ;;  %v789_v55 = vpop.xlane.xlu0 %788  ;;  %v787_v12 = vpop.xlane.xlu2 %786 }
 0x1a9   :  { %v3720_v20 = vmax.f32 %v3715_v62, %v789_v55  ;;  %v3723_v15 = vmax.f32 %v3717_v6, %v787_v12  ;;  %4554 = vst [vmem:[#allocation39_spill] sm:$0xff] %v3745_v61  ;;  %v3755_v55 = vld [vmem:[#allocation2 + $0xc0] sm:$0xff] }
 0x1aa   :  { %4555 = vst [vmem:[#allocation40_spill] sm:$0xff] %v3747_v14 }
 0x1ab   :  { %4550 = vst [vmem:[#allocation35_spill] sm:$0xff] %v3720_v20  ;;  %v791_v13 = vpop.xlane.xlu1 %790  ;;  %1037 = vperm.xlu0 %2461, %v3723_v15  }
 0x1ac   :  { %4551 = vst [vmem:[#allocation36_spill] sm:$0xff] %v3723_v15  ;;  %v3737_v12 = vmax.f32 %v3725_v9, %v791_v13  ;;  %v3775_v9 = vld [vmem:[#allocation2 + $0xd0] sm:$0xff] }
 0x1ad   :  { %2051 = vst.msk [vmem:[#allocation2 + $0xa0] sm:$0xff] %vm27_vm4, %v3720_v20 }
 0x1ae   :  { %2050 = vst.msk [vmem:[#allocation2 + $0x98] sm:$0xff] %vm27_vm4, %v3723_v15  ;;  %1042 = vperm.xlu2 %2463, %v3720_v20   ;;  %1047 = vperm.xlu1 %2462, %v3737_v12   ;;  %v3777_v20 = vld [vmem:[#allocation2 + $0xc8] sm:$0xff] }
 0x1af   :  { %4553 = vst [vmem:[#allocation38_spill] sm:$0xff] %v3737_v12 }
 0x1b0   :  { %2052 = vst.msk [vmem:[#allocation2 + $0xa8] sm:$0xff] %vm27_vm4, %v3737_v12  ;;  %v795_v62 = vpop.xlane.xlu0 %794  ;;  %v793_v6 = vpop.xlane.xlu2 %792 }
 0x1b1   :  { %v3750_v15 = vmax.f32 %v3745_v61, %v795_v62  ;;  %v3753_v13 = vmax.f32 %v3747_v14, %v793_v6  ;;  %4558 = vst [vmem:[#allocation43_spill] sm:$0xff] %v3755_v55  ;;  %v2658_v62 = vld [vmem:[%s4449_s2 + $0x78] sm:$0xff] }
 0x1b2   :  { %4560 = vst [vmem:[#allocation45_spill] sm:$0xff] %v3775_v9 }
 0x1b3   :  { %4556 = vst [vmem:[#allocation41_spill] sm:$0xff] %v3750_v15  ;;  %v797_v12 = vpop.xlane.xlu1 %796  ;;  %1052 = vperm.xlu0 %2461, %v3753_v13  }
 0x1b4   :  { %4557 = vst [vmem:[#allocation42_spill] sm:$0xff] %v3753_v13  ;;  %v3767_v6 = vmax.f32 %v3755_v55, %v797_v12  ;;  %v2657_v12 = vld [vmem:[%s4449_s2 + $0x70] sm:$0xff]  ;;  %v1660_v55 = vpack.c.bf16 %v2658_v62, %v2658_v62 }
 0x1b5   :  { %2054 = vst.msk [vmem:[#allocation2 + $0xb8] sm:$0xff] %vm27_vm4, %v3750_v15 }
 0x1b6   :  { %2053 = vst.msk [vmem:[#allocation2 + $0xb0] sm:$0xff] %vm27_vm4, %v3753_v13  ;;  %1057 = vperm.xlu2 %2463, %v3750_v15   ;;  %1062 = vperm.xlu1 %2462, %v3767_v6   ;;  %v1659_v13 = vpack.c.bf16 %v2657_v12, %v2657_v12  ;;  %v2660_v12 = vld [vmem:[%s4449_s2 + $0x68] sm:$0xff] }
 0x1b7   :  { %4559 = vst [vmem:[#allocation44_spill] sm:$0xff] %v3767_v6  ;;  %v1658_v21 = vpack.c.bf16 %v2660_v12, %v2660_v12  ;;  %v1756_v12 = vunpack.c.l.b16 %v1660_v55  ;;  %v2661_v55 = vld [vmem:[%s4449_s2 + $0x50] sm:$0xff] }
 0x1b8   :  { %2055 = vst.msk [vmem:[#allocation2 + $0xc0] sm:$0xff] %vm27_vm4, %v3767_v6  ;;  %v801_v61 = vpop.xlane.xlu0 %800  ;;  %v799_v14 = vpop.xlane.xlu2 %798  ;;  %v1755_v23 = vunpack.c.l.b16 %v1659_v13  ;;  %v1655_v13 = vpack.c.bf16 %v2661_v55, %v2661_v55 }
 0x1b9   :  { %4561 = vst [vmem:[#allocation46_spill] sm:$0xff] %v3777_v20  ;;  %v3786_v15 = vmax.f32 %v3775_v9, %v801_v61  ;;  %v3789_v6 = vmax.f32 %v3777_v20, %v799_v14  ;;  %v3817_v14 = vld [vmem:[#allocation2 + $0xe8] sm:$0xff]  ;;  %v3819_v9 = vld [vmem:[#allocation2 + $0xe0] sm:$0xff]  ;;  %v1754_v20 = vunpack.c.l.b16 %v1658_v21  ;;  %v3833_v21 = vld [vmem:[#allocation2 + $0xf0] sm:$0xff] }
 0x1ba   :  { %4564 = vst [vmem:[#allocation49_spill] sm:$0xff] %v3791_v33  ;;  %v1751_v55 = vunpack.c.l.b16 %v1655_v13 }
 0x1bb   :  { %4562 = vst [vmem:[#allocation47_spill] sm:$0xff] %v3786_v15  ;;  %v803_v61 = vpop.xlane.xlu1 %802  ;;  %1067 = vperm.xlu0 %2461, %v3789_v6  }
 0x1bc   :  { %4563 = vst [vmem:[#allocation48_spill] sm:$0xff] %v3789_v6  ;;  %v3809_v45 = vmax.f32 %v3791_v33, %v803_v61  ;;  %v1764_v61 = vpack.c.b16 %v1756_v12, %v1755_v23  ;;  %v2663_v23 = vld [vmem:[%s4449_s2 + $0x40] sm:$0xff] }
 0x1bd   :  { %2057 = vst.msk [vmem:[#allocation2 + $0xd0] sm:$0xff] %vm27_vm4, %v3786_v15 }
 0x1be   :  { %2056 = vst.msk [vmem:[#allocation2 + $0xc8] sm:$0xff] %vm27_vm4, %v3789_v6  ;;  %1072 = vperm.xlu2 %2463, %v3786_v15   ;;  %1077 = vperm.xlu1 %2462, %v3809_v45   ;;  %v1753_v6 = vunpack.c.l.b16 %v1657_v54  ;;  %v2662_v15 = vld [vmem:[%s4449_s2 + $0x58] sm:$0xff] }
 0x1bf   :  { %4565 = vst [vmem:[#allocation50_spill] sm:$0xff] %v3809_v45  ;;  %1773 = vmatpush.bf16.msra.mxu0 %v1764_v61  ;;  %2442 = vmatpush.bf16.msra.mxu2 %v1764_v61 }
 0x1c0   :  { %2058 = vst.msk [vmem:[#allocation2 + $0xd8] sm:$0xff] %vm27_vm4, %v3809_v45  ;;  %v807_v62 = vpop.xlane.xlu0 %806  ;;  %v805_v33 = vpop.xlane.xlu2 %804  ;;  %v1763_v4 = vpack.c.b16 %v1754_v20, %v1753_v6  ;;  %v1656_v45 = vpack.c.bf16 %v2662_v15, %v2662_v15  ;;  %v1653_v20 = vpack.c.bf16 %v2663_v23, %v2663_v23  ;;  %v2664_v6 = vld [vmem:[%s4449_s2 + $0x48] sm:$0xff] }
 0x1c1   :  { %4566 = vst [vmem:[#allocation51_spill] sm:$0xff] %v3817_v14  ;;  %v3828_v11 = vmax.f32 %v3817_v14, %v807_v62  ;;  %v3831_v54 = vmax.f32 %v3819_v9, %v805_v33  ;;  %v1654_v15 = vpack.c.bf16 %v2664_v6, %v2664_v6  ;;  %v3859_v62 = vld [vmem:[#allocation2 + $0xf8] sm:$0xff]  ;;  %v2666_v6 = vld [vmem:[%s4449_s2 + $0x28] sm:$0xff] }
 0x1c2   :  { %4567 = vst [vmem:[#allocation52_spill] sm:$0xff] %v3819_v9  ;;  %v1752_v23 = vunpack.c.l.b16 %v1656_v45  ;;  %v1749_v33 = vunpack.c.l.b16 %v1653_v20  ;;  %v2667_v20 = vld [vmem:[%s4449_s2 + $0x30] sm:$0xff] }
 0x1c3   :  { %4568 = vst [vmem:[#allocation53_spill] sm:$0xff] %v3828_v11  ;;  %v809_v12 = vpop.xlane.xlu1 %808  ;;  %1082 = vperm.xlu0 %2461, %v3831_v54   ;;  %1774 = vmatpush.bf16.msra.mxu0 %v1763_v4  ;;  %v1750_v14 = vunpack.c.l.b16 %v1654_v15 }
 0x1c4   :  { %4569 = vst [vmem:[#allocation54_spill] sm:$0xff] %v3831_v54  ;;  %v3851_v61 = vmax.f32 %v3833_v21, %v809_v12  ;;  %2443 = vmatpush.bf16.msra.mxu2 %v1763_v4  ;;  %v1762_v12 = vpack.c.b16 %v1752_v23, %v1751_v55  ;;  %v2665_v4 = vld [vmem:[%s4449_s2 + $0x20] sm:$0xff] }
 0x1c5   :  { %4570 = vst [vmem:[#allocation55_spill] sm:$0xff] %v3833_v21  ;;  %v1761_v9 = vpack.c.b16 %v1750_v14, %v1749_v33  ;;  %v1649_v13 = vpack.c.bf16 %v2665_v4, %v2665_v4  ;;  %v1651_v14 = vpack.c.bf16 %v2667_v20, %v2667_v20  ;;  %v2669_v20 = vld [vmem:[%s4449_s2] sm:$0xff] }
 0x1c6   :  { %2060 = vst.msk [vmem:[#allocation2 + $0xe8] sm:$0xff] %vm27_vm4, %v3828_v11  ;;  %1087 = vperm.xlu2 %2463, %v3828_v11   ;;  %1092 = vperm.xlu1 %2462, %v3851_v61   ;;  %v1650_v11 = vpack.c.bf16 %v2666_v6, %v2666_v6  ;;  %v1645_v21 = vpack.c.bf16 %v2669_v20, %v2669_v20 }
 0x1c7   :  { %2059 = vst.msk [vmem:[#allocation2 + $0xe0] sm:$0xff] %vm27_vm4, %v3831_v54  ;;  %1775 = vmatpush.bf16.msra.mxu0 %v1762_v12  ;;  %v1747_v33 = vunpack.c.l.b16 %v1651_v14  ;;  %v1745_v23 = vunpack.c.l.b16 %v1649_v13 }
 0x1c8   :  { %4571 = vst [vmem:[#allocation56_spill] sm:$0xff] %v3851_v61  ;;  %v811_v54 = vpop.xlane.xlu2 %810  ;;  %2444 = vmatpush.bf16.msra.mxu2 %v1762_v12  ;;  %v1746_v12 = vunpack.c.l.b16 %v1650_v11  ;;  %v2672_v11 = vld [vmem:[%s4449_s2 + $0x8] sm:$0xff] }
 0x1c9   :  { %2061 = vst.msk [vmem:[#allocation2 + $0xf0] sm:$0xff] %vm27_vm4, %v3851_v61  ;;  %v3862_v45 = vmax.f32 %v3859_v62, %v811_v54  ;;  %v2668_v54 = vld [vmem:[%s4449_s2 + $0x38] sm:$0xff]  ;;  %v1646_v13 = vpack.c.bf16 %v2672_v11, %v2672_v11 }
 0x1ca   :  { %4572 = vst [vmem:[#allocation57_spill] sm:$0xff] %v3859_v62  ;;  %v1652_v15 = vpack.c.bf16 %v2668_v54, %v2668_v54  ;;  %v1759_v61 = vpack.c.b16 %v1746_v12, %v1745_v23  ;;  %v2670_v54 = vld [vmem:[%s4449_s2 + $0x10] sm:$0xff] }
 0x1cb   :  { %2062 = vst.msk [vmem:[#allocation2 + $0xf8] sm:$0xff] %vm27_vm4, %v3862_v45  ;;  %1776 = vmatpush.bf16.msra.mxu0 %v1761_v9  ;;  %v1647_v62 = vpack.c.bf16 %v2670_v54, %v2670_v54  ;;  %v1742_v23 = vunpack.c.l.b16 %v1646_v13 }
 0x1cc   :  { %2445 = vmatpush.bf16.msra.mxu2 %v1761_v9  ;;  %v1748_v55 = vunpack.c.l.b16 %v1652_v15  ;;  %v2671_v9 = vld [vmem:[%s4449_s2 + $0x18] sm:$0xff] }
 0x1cd   :  { %v1648_v14 = vpack.c.bf16 %v2671_v9, %v2671_v9  ;;  %v1743_v15 = vunpack.c.l.b16 %v1647_v62 }
 0x1ce   :  { %v1760_v4 = vpack.c.b16 %v1748_v55, %v1747_v33  ;;  %v1741_v55 = vunpack.c.l.b16 %v1645_v21  ;;  %v2673_v21 = vld [vmem:[%s4449_s2 + $0xf0] sm:$0xff] }
 0x1cf   :  { %v1744_v33 = vunpack.c.l.b16 %v1648_v14  ;;  %v2674_v14 = vld [vmem:[%s4449_s2 + $0xf8] sm:$0xff] }
 0x1d0   :  { %v953_v6 = vpop.permute.xlu2 %952  ;;  %1777 = vmatpush.bf16.msra.mxu0 %v1760_v4  ;;  %2446 = vmatpush.bf16.msra.mxu2 %v1760_v4  ;;  %v1757_v54 = vpack.c.b16 %v1742_v23, %v1741_v55  ;;  %v1676_v13 = vpack.c.bf16 %v2674_v14, %v2674_v14 }
 0x1d1   :  { %v1758_v12 = vpack.c.b16 %v1744_v33, %v1743_v15  ;;  %v1102_v9 = vsub.f32 %v3119_v63, %v953_v6  ;;  %v4573_v63 = vld [vmem:[#allocation8_spill] sm:$0xff] }
 0x1d3   :  { %v1136_v59 = vmul.f32 1.442695, %v1102_v9 }
 0x1d4   :  { %1778 = vmatpush.bf16.msra.mxu0 %v1759_v61  ;;  %2447 = vmatpush.bf16.msra.mxu2 %v1759_v61  ;;  %v1675_v61 = vpack.c.bf16 %v2673_v21, %v2673_v21 }
 0x1d5   :  { %2465 = vpow2.f32 %v1136_v59  ;;  %v2675_v59 = vld [vmem:[%s4449_s2 + $0xe0] sm:$0xff] }
 0x1d6   :  { %v1673_v15 = vpack.c.bf16 %v2675_v59, %v2675_v59 }
 0x1d8   :  { %v958_v20 = vpop.permute.xlu2 %957  ;;  %1779 = vmatpush.bf16.msra.mxu0 %v1758_v12  ;;  %2448 = vmatpush.bf16.msra.mxu2 %v1758_v12  ;;  %v1898_v21 = vunpack.c.l.b16 %v1673_v15  ;;  %v2680_v15 = vld [vmem:[%s4449_s2 + $0xc8] sm:$0xff] }
 0x1d9   :  { %v1103_v9 = vsub.f32 %v3163_v48, %v958_v20  ;;  %v2678_v48 = vld [vmem:[%s4449_s2 + $0xd8] sm:$0xff] }
 0x1da   :  { %v1672_v20 = vpack.c.bf16 %v2678_v48, %v2678_v48 }
 0x1dc   :  { %1780 = vmatpush.bf16.msra.mxu0 %v1757_v54  ;;  %2449 = vmatpush.bf16.msra.mxu2 %v1757_v54  ;;  %v3907_v54 = vpop.eup %2465 }
 0x1e0   :  { %v968_v40 = vpop.permute.xlu2 %967 }
 0x1e7   :  { %v948_v11 = vpop.permute.xlu1 %947 }
 0x1e8   :  { %v943_v4 = vpop.permute.xlu0 %942  ;;  %v1101_v62 = vsub.f32 %v3122_v3, %v948_v11  ;;  %v2676_v3 = vld [vmem:[%s4449_s2 + $0xe8] sm:$0xff]  ;;  %v3905_v12 = vpop.permute.xlu2 %982  ;;  %v1900_v11 = vunpack.c.l.b16 %v1675_v61 }
 0x1e9   :  { %v1100_v6 = vsub.f32 %v4573_v63, %v943_v4  ;;  %v1674_v33 = vpack.c.bf16 %v2676_v3, %v2676_v3  ;;  %v1901_v4 = vunpack.c.l.b16 %v1676_v13  ;;  %v2679_v13 = vld [vmem:[%s4449_s2 + $0xc0] sm:$0xff] }
 0x1ea   :  { %v1134_v55 = vmul.f32 1.442695, %v1101_v62 }
 0x1eb   :  { %v1132_v23 = vmul.f32 1.442695, %v1100_v6  ;;  %v1899_v14 = vunpack.c.l.b16 %v1674_v33  ;;  %v1909_v59 = vpack.c.b16 %v1901_v4, %v1900_v11  ;;  %v2677_v6 = vld [vmem:[%s4449_s2 + $0xd0] sm:$0xff]  ;;  %v1670_v33 = vpack.c.bf16 %v2680_v15, %v2680_v15 }
 0x1ec   :  { %2467 = vpow2.f32 %v1134_v55  ;;  %v1671_v36 = vpack.c.bf16 %v2677_v6, %v2677_v6  ;;  %v1138_v55 = vmul.f32 1.442695, %v1103_v9  ;;  %v1105_v4 = vsub.f32 %v3157_v57, %v968_v40  ;;  %v2681_v57 = vld [vmem:[%s4449_s2 + $0xb0] sm:$0xff] }
 0x1ed   :  { %2469 = vpow2.f32 %v1132_v23  ;;  %1264 = vadd.xlane.f32.xlu0 %v3907_v54  ;;  %v1908_v62 = vpack.c.b16 %v1899_v14, %v1898_v21  ;;  %1918 = vmatpush.bf16.msra.mxu1 %v1909_v59  ;;  %v1897_v6 = vunpack.c.l.b16 %v1672_v20  ;;  %v1895_v15 = vunpack.c.l.b16 %v1670_v33 }
 0x1ee   :  { %2450 = vmatpush.bf16.msra.mxu3 %v1909_v59  ;;  %v1896_v59 = vunpack.c.l.b16 %v1671_v36  ;;  %v1667_v40 = vpack.c.bf16 %v2681_v57, %v2681_v57  ;;  %v2682_v36 = vld [vmem:[%s4449_s2 + $0xb8] sm:$0xff]  ;;  %v1108_v20 = vsub.f32 %v3196_v2, %v3905_v12 }
 0x1ef   :  { %v963_v63 = vpop.permute.xlu1 %962 }
 0x1f0   :  { %v1104_v3 = vsub.f32 %v3160_v56, %v963_v63  ;;  %v1669_v56 = vpack.c.bf16 %v2679_v13, %v2679_v13  ;;  %v3925_v14 = vpop.permute.xlu2 %997  ;;  %v1907_v18 = vpack.c.b16 %v1897_v6, %v1896_v59 }
 0x1f1   :  { %1919 = vmatpush.bf16.msra.mxu1 %v1908_v62 }
 0x1f2   :  { %v2468_v61 = vpop.eup %2467  ;;  %v1140_v23 = vmul.f32 1.442695, %v1104_v3  ;;  %2451 = vmatpush.bf16.msra.mxu3 %v1908_v62  ;;  %v1894_v13 = vunpack.c.l.b16 %v1669_v56  ;;  %v1142_v3 = vmul.f32 1.442695, %v1105_v4  ;;  %v1668_v62 = vpack.c.bf16 %v2682_v36, %v2682_v36  ;;  %v2684_v4 = vld [vmem:[%s4449_s2 + $0xa8] sm:$0xff]  ;;  %v2685_v36 = vld [vmem:[%s4449_s2 + $0x90] sm:$0xff] }
 0x1f3   :  { %v2470_v11 = vpop.eup %2469  ;;  %1262 = vadd.xlane.f32.xlu1 %v2468_v61  ;;  %v1614_v21 = vpack.c.bf16 %v2468_v61, %v2468_v61 }
 0x1f4   :  { %2471 = vpow2.f32 %v1140_v23  ;;  %1260 = vadd.xlane.f32.xlu2 %v2470_v11  ;;  %v1613_v9 = vpack.c.bf16 %v2470_v11, %v2470_v11  ;;  %v1906_v11 = vpack.c.b16 %v1895_v15, %v1894_v13  ;;  %v1893_v12 = vunpack.c.l.b16 %v1668_v62 }
 0x1f5   :  { %2473 = vpow2.f32 %v1138_v55  ;;  %v1694_v63 = vunpack.c.l.b16 %v1614_v21  ;;  %1920 = vmatpush.bf16.msra.mxu1 %v1907_v18  ;;  %v1666_v21 = vpack.c.bf16 %v2684_v4, %v2684_v4 }
 0x1f6   :  { %v1693_v48 = vunpack.c.l.b16 %v1613_v9  ;;  %2452 = vmatpush.bf16.msra.mxu3 %v1907_v18  ;;  %2475 = vpow2.f32 %v1142_v3  ;;  %v1892_v18 = vunpack.c.l.b16 %v1667_v40  ;;  %v1663_v40 = vpack.c.bf16 %v2685_v36, %v2685_v36 }
 0x1f7   :  { %v978_v39 = vpop.permute.xlu0 %977  ;;  %v1891_v6 = vunpack.c.l.b16 %v1666_v21 }
 0x1f8   :  { %v1107_v55 = vsub.f32 %v3199_v1, %v978_v39  ;;  %v973_v61 = vpop.permute.xlu1 %972  ;;  %v1709_v23 = vpack.c.b16 %v1694_v63, %v1693_v48  ;;  %v2683_v1 = vld [vmem:[%s4449_s2 + $0xa0] sm:$0xff]  ;;  %v3946_v48 = vpop.permute.xlu2 %1012  ;;  %v1905_v15 = vpack.c.b16 %v1893_v12, %v1892_v18  ;;  %v1888_v18 = vunpack.c.l.b16 %v1663_v40 }
 0x1f9   :  { %v1106_v56 = vsub.f32 %v3202_v5, %v973_v61  ;;  %v1665_v39 = vpack.c.bf16 %v2683_v1, %v2683_v1  ;;  %v1148_v5 = vmul.f32 1.442695, %v1108_v20  ;;  %1921 = vmatpush.bf16.msra.mxu1 %v1906_v11 }
 0x1fa   :  { %v3937_v33 = vpop.eup %2471  ;;  %v1146_v9 = vmul.f32 1.442695, %v1107_v55  ;;  %1781 = vmatmul.bf16.vlgmr.msra.gmra.mxu0 %v1709_v23  ;;  %2453 = vmatpush.bf16.msra.mxu3 %v1906_v11  ;;  %v2686_v11 = vld [vmem:[%s4449_s2 + $0x98] sm:$0xff] }
 0x1fb   :  { %v2474_v63 = vpop.eup %2473  ;;  %v1144_v2 = vmul.f32 1.442695, %v1106_v56  ;;  %1268 = vadd.xlane.f32.xlu1 %v3937_v33  ;;  %v1890_v59 = vunpack.c.l.b16 %v1665_v39  ;;  %v1664_v62 = vpack.c.bf16 %v2686_v11, %v2686_v11  ;;  %v2687_v56 = vld [vmem:[%s4449_s2 + $0x80] sm:$0xff]  ;;  %v2688_v39 = vld [vmem:[%s4449_s2 + $0x88] sm:$0xff] }
 0x1fc   :  { %2477 = vpow2.f32 %v1146_v9  ;;  %1266 = vadd.xlane.f32.xlu2 %v2474_v63  ;;  %v1616_v55 = vpack.c.bf16 %v2474_v63, %v2474_v63  ;;  %v3949_v23 = vpop.eup %2475  ;;  %v1661_v1 = vpack.c.bf16 %v2687_v56, %v2687_v56  ;;  %v1662_v4 = vpack.c.bf16 %v2688_v39, %v2688_v39 }
 0x1fd   :  { %2479 = vpow2.f32 %v1144_v2  ;;  %v1904_v61 = vpack.c.b16 %v1891_v6, %v1890_v59  ;;  %1922 = vmatpush.bf16.msra.mxu1 %v1905_v15  ;;  %v1615_v9 = vpack.c.bf16 %v3907_v54, %v3907_v54  ;;  %v1889_v12 = vunpack.c.l.b16 %v1664_v62 }
 0x1fe   :  { %2481 = vpow2.f32 %v1148_v5  ;;  %2454 = vmatpush.bf16.msra.mxu3 %v1905_v15  ;;  %v1696_v5 = vunpack.c.l.b16 %v1616_v55  ;;  %v1886_v59 = vunpack.c.l.b16 %v1661_v1  ;;  %v1887_v6 = vunpack.c.l.b16 %v1662_v4 }
 0x1ff   :  { %v993_v13 = vpop.permute.xlu0 %992  ;;  %v1695_v54 = vunpack.c.l.b16 %v1615_v9  ;;  %v1114_v39 = vsub.f32 %v3273_v10, %v3946_v48 }
 0x200   :  { %v1110_v57 = vsub.f32 %v3239_v49, %v993_v13  ;;  %v988_v3 = vpop.permute.xlu1 %987  ;;  %v1902_v11 = vpack.c.b16 %v1887_v6, %v1886_v59 }
 0x201   :  { %v1109_v20 = vsub.f32 %v3244_v41, %v988_v3  ;;  %v1111_v41 = vsub.f32 %v3236_v47, %v3925_v14  ;;  %1923 = vmatpush.bf16.msra.mxu1 %v1904_v61  ;;  %v1903_v14 = vpack.c.b16 %v1889_v12, %v1888_v18  ;;  %v1710_v36 = vpack.c.b16 %v1696_v5, %v1695_v54 }
 0x202   :  { %v3958_v49 = vpop.eup %2477  ;;  %v1152_v21 = vmul.f32 1.442695, %v1110_v57  ;;  %2455 = vmatpush.bf16.msra.mxu3 %v1904_v61  ;;  %v1160_v9 = vmul.f32 1.442695, %v1114_v39  ;;  %v1617_v5 = vpack.c.bf16 %v3937_v33, %v3937_v33  ;;  %v1618_v54 = vpack.c.bf16 %v3949_v23, %v3949_v23 }
 0x203   :  { %v3968_v63 = vpop.eup %2479  ;;  %v1150_v2 = vmul.f32 1.442695, %v1109_v20  ;;  %1274 = vadd.xlane.f32.xlu1 %v3958_v49  ;;  %v1154_v15 = vmul.f32 1.442695, %v1111_v41  ;;  %v1028_v20 = vpop.permute.xlu2 %1027  ;;  %v1620_v39 = vpack.c.bf16 %v3958_v49, %v3958_v49 }
 0x204   :  { %2483 = vpow2.f32 %v1152_v21  ;;  %1270 = vadd.xlane.f32.xlu2 %v3949_v23  ;;  %1272 = vadd.xlane.f32.xlu0 %v3968_v63  ;;  %v2482_v13 = vpop.eup %2481  ;;  %v1697_v33 = vunpack.c.l.b16 %v1617_v5 }
 0x205   :  { %2485 = vpow2.f32 %v1150_v2  ;;  %1924 = vmatpush.bf16.msra.mxu1 %v1903_v14  ;;  %v1621_v61 = vpack.c.bf16 %v2482_v13, %v2482_v13 }
 0x206   :  { %2456 = vmatpush.bf16.msra.mxu3 %v1903_v14  ;;  %2487 = vpow2.f32 %v1154_v15  ;;  %v1698_v15 = vunpack.c.l.b16 %v1618_v54 }
 0x207   :  { %v1008_v47 = vpop.permute.xlu0 %1007  ;;  %v1701_v4 = vunpack.c.l.b16 %v1621_v61 }
 0x208   :  { %v1113_v57 = vsub.f32 %v3276_v24, %v1008_v47  ;;  %v1003_v3 = vpop.permute.xlu1 %1002  ;;  %v1711_v23 = vpack.c.b16 %v1698_v15, %v1697_v33 }
 0x209   :  { %v1112_v55 = vsub.f32 %v3280_v46, %v1003_v3  ;;  %1925 = vmatpush.bf16.msra.mxu1 %v1902_v11  ;;  %v1117_v46 = vsub.f32 %v3312_v19, %v1028_v20 }
 0x20a   :  { %v2484_v40 = vpop.eup %2483  ;;  %v1158_v62 = vmul.f32 1.442695, %v1113_v57  ;;  %1786 = vmatmul.bf16.gmra.mxu0 %v1710_v36  ;;  %2457 = vmatpush.bf16.msra.mxu3 %v1902_v11 }
 0x20b   :  { %v2486_v56 = vpop.eup %2485  ;;  %v1156_v1 = vmul.f32 1.442695, %v1112_v55  ;;  %1280 = vadd.xlane.f32.xlu1 %v2484_v40  ;;  %v1166_v12 = vmul.f32 1.442695, %v1117_v46  ;;  %v1043_v19 = vpop.permute.xlu2 %1042  ;;  %v1623_v57 = vpack.c.bf16 %v2484_v40, %v2484_v40  ;;  %v1619_v46 = vpack.c.bf16 %v3968_v63, %v3968_v63 }
 0x20c   :  { %2489 = vpow2.f32 %v1158_v62  ;;  %1276 = vadd.xlane.f32.xlu2 %v2482_v13  ;;  %1278 = vadd.xlane.f32.xlu0 %v2486_v56  ;;  %v1622_v24 = vpack.c.bf16 %v2486_v56, %v2486_v56  ;;  %v2488_v18 = vpop.eup %2487  ;;  %v1120_v61 = vsub.f32 %v3330_v16, %v1043_v19 }
 0x20d   :  { %2491 = vpow2.f32 %v1156_v1  ;;  %v1624_v11 = vpack.c.bf16 %v2488_v18, %v2488_v18  ;;  %v1699_v54 = vunpack.c.l.b16 %v1619_v46 }
 0x20e   :  { %v1702_v21 = vunpack.c.l.b16 %v1622_v24  ;;  %2493 = vpow2.f32 %v1160_v9  ;;  %v1172_v16 = vmul.f32 1.442695, %v1120_v61 }
 0x20f   :  { %v1704_v1 = vunpack.c.l.b16 %v1624_v11 }
 0x210   :  { %v1018_v41 = vpop.permute.xlu1 %1017  ;;  %v1713_v2 = vpack.c.b16 %v1702_v21, %v1701_v4 }
 0x211   :  { %v1115_v10 = vsub.f32 %v3298_v17, %v1018_v41 }
 0x212   :  { %v3983_v48 = vpop.eup %2489  ;;  %1801 = vmatmul.bf16.vlgmr.msra.gmra.mxu2 %v1713_v2 }
 0x213   :  { %v3987_v59 = vpop.eup %2491  ;;  %v1162_v6 = vmul.f32 1.442695, %v1115_v10  ;;  %1286 = vadd.xlane.f32.xlu1 %v3983_v48  ;;  %v1058_v56 = vpop.permute.xlu2 %1057 }
 0x214   :  { %1282 = vadd.xlane.f32.xlu2 %v2488_v18  ;;  %1284 = vadd.xlane.f32.xlu0 %v3987_v59  ;;  %v3993_v36 = vpop.eup %2493  ;;  %v1123_v63 = vsub.f32 %v3356_v34, %v1058_v56  ;;  %v1626_v34 = vpack.c.bf16 %v3983_v48, %v3983_v48 }
 0x215   :  { %2495 = vpow2.f32 %v1162_v6  ;;  %v1023_v17 = vpop.permute.xlu0 %1022 }
 0x216   :  { %2497 = vpow2.f32 %v1166_v12  ;;  %v1116_v13 = vsub.f32 %v3315_v25, %v1023_v17  ;;  %v1703_v25 = vunpack.c.l.b16 %v1623_v57  ;;  %v1178_v15 = vmul.f32 1.442695, %v1123_v63 }
 0x218   :  { %v1164_v47 = vmul.f32 1.442695, %v1116_v13  ;;  %v1033_v14 = vpop.permute.xlu1 %1032  ;;  %v1714_v41 = vpack.c.b16 %v1704_v1, %v1703_v25 }
 0x219   :  { %v1118_v3 = vsub.f32 %v3322_v7, %v1033_v14 }
 0x21a   :  { %2499 = vpow2.f32 %v1164_v47  ;;  %1791 = vmatmul.bf16.gmra.mxu0 %v1711_v23  ;;  %v1625_v23 = vpack.c.bf16 %v3987_v59, %v3987_v59 }
 0x21b   :  { %v3995_v20 = vpop.eup %2495  ;;  %v1168_v55 = vmul.f32 1.442695, %v1118_v3  ;;  %v1073_v33 = vpop.permute.xlu2 %1072 }
 0x21c   :  { %v2498_v62 = vpop.eup %2497  ;;  %1288 = vadd.xlane.f32.xlu2 %v3993_v36  ;;  %1290 = vadd.xlane.f32.xlu0 %v3995_v20  ;;  %v1705_v59 = vunpack.c.l.b16 %v1625_v23 }
 0x21d   :  { %2501 = vpow2.f32 %v1168_v55  ;;  %v1038_v40 = vpop.permute.xlu0 %1037  ;;  %v1630_v24 = vpack.c.bf16 %v2498_v62, %v2498_v62  ;;  %v1126_v55 = vsub.f32 %v3388_v42, %v1073_v33 }
 0x21e   :  { %v1119_v7 = vsub.f32 %v3333_v44, %v1038_v40  ;;  %v1700_v44 = vunpack.c.l.b16 %v1620_v39 }
 0x21f   :  { %v1839_v49 = vunpack.c.l.b16 %v1630_v24  ;;  %v1184_v40 = vmul.f32 1.442695, %v1126_v55 }
 0x220   :  { %v2500_v4 = vpop.eup %2499  ;;  %v1170_v21 = vmul.f32 1.442695, %v1119_v7  ;;  %v1048_v9 = vpop.permute.xlu1 %1047  ;;  %v1712_v17 = vpack.c.b16 %v1700_v44, %v1699_v54 }
 0x221   :  { %v1121_v2 = vsub.f32 %v3340_v30, %v1048_v9  ;;  %1292 = vadd.xlane.f32.xlu1 %v2500_v4  ;;  %v1629_v5 = vpack.c.bf16 %v2500_v4, %v2500_v4 }
 0x222   :  { %2503 = vpow2.f32 %v1170_v21  ;;  %1806 = vmatmul.bf16.gmra.mxu2 %v1714_v41 }
 0x223   :  { %v2502_v18 = vpop.eup %2501  ;;  %v1174_v10 = vmul.f32 1.442695, %v1121_v2  ;;  %v1838_v12 = vunpack.c.l.b16 %v1629_v5  ;;  %2505 = vpow2.f32 %v1172_v16  ;;  %v1088_v24 = vpop.permute.xlu2 %1087 }
 0x224   :  { %1294 = vadd.xlane.f32.xlu2 %v2498_v62  ;;  %1296 = vadd.xlane.f32.xlu0 %v2502_v18  ;;  %v1706_v62 = vunpack.c.l.b16 %v1626_v34  ;;  %v1631_v25 = vpack.c.bf16 %v2502_v18, %v2502_v18  ;;  %v1129_v9 = vsub.f32 %v3420_v8, %v1088_v24  ;;  %v4576_v24 = vsub.f32 %v3471_v31, %v3485_v53  ;;  %v1198_v31 = vld [vmem:[#allocation3 + $0x10] sm:$0xff] }
 0x225   :  { %2507 = vpow2.f32 %v1174_v10  ;;  %v1053_v19 = vpop.permute.xlu0 %1052  ;;  %v1854_v6 = vpack.c.b16 %v1839_v49, %v1838_v12  ;;  %v1628_v49 = vpack.c.bf16 %v3995_v20, %v3995_v20  ;;  %v4578_v53 = vsub.f32 %v3515_v22, %v3530_v26  ;;  %v4580_v22 = vld [vmem:[#allocation10_spill] sm:$0xff]  ;;  %v4581_v26 = vld [vmem:[#allocation12_spill] sm:$0xff] }
 0x226   :  { %v1122_v30 = vsub.f32 %v3359_v35, %v1053_v19  ;;  %v1715_v39 = vpack.c.b16 %v1706_v62, %v1705_v59  ;;  %v1190_v18 = vmul.f32 1.442695, %v1129_v9  ;;  %v1627_v19 = vpack.c.bf16 %v3993_v36, %v3993_v36 }
 0x227   :  { %1926 = vmatmul.bf16.vlgmr.msra.gmra.mxu1 %v1854_v6 }
 0x228   :  { %v2504_v13 = vpop.eup %2503  ;;  %v1176_v47 = vmul.f32 1.442695, %v1122_v30  ;;  %v1063_v14 = vpop.permute.xlu1 %1062  ;;  %v1707_v20 = vunpack.c.l.b16 %v1627_v19 }
 0x229   :  { %v1124_v57 = vsub.f32 %v3370_v38, %v1063_v14  ;;  %1298 = vadd.xlane.f32.xlu1 %v2504_v13  ;;  %v4013_v3 = vpop.eup %2505  ;;  %v1632_v38 = vpack.c.bf16 %v2504_v13, %v2504_v13 }
 0x22a   :  { %2509 = vpow2.f32 %v1176_v47  ;;  %1796 = vmatmul.bf16.gmra.mxu0 %v1712_v17  ;;  %v1708_v17 = vunpack.c.l.b16 %v1628_v49 }
 0x22b   :  { %v4015_v35 = vpop.eup %2507  ;;  %v1180_v11 = vmul.f32 1.442695, %v1124_v57  ;;  %2511 = vpow2.f32 %v1178_v15  ;;  %v1841_v46 = vunpack.c.l.b16 %v1632_v38  ;;  %v1633_v15 = vpack.c.bf16 %v4013_v3, %v4013_v3 }
 0x22c   :  { %1300 = vadd.xlane.f32.xlu2 %v4013_v3  ;;  %1302 = vadd.xlane.f32.xlu0 %v4015_v35  ;;  %v1716_v36 = vpack.c.b16 %v1708_v17, %v1707_v20 }
 0x22d   :  { %2513 = vpow2.f32 %v1180_v11  ;;  %v1068_v48 = vpop.permute.xlu0 %1067  ;;  %v1842_v57 = vunpack.c.l.b16 %v1633_v15 }
 0x22e   :  { %v1125_v61 = vsub.f32 %v3391_v52, %v1068_v48  ;;  %v1840_v52 = vunpack.c.l.b16 %v1631_v25 }
 0x230   :  { %v4021_v56 = vpop.eup %2509  ;;  %v1182_v7 = vmul.f32 1.442695, %v1125_v61  ;;  %v1078_v1 = vpop.permute.xlu1 %1077  ;;  %v1855_v2 = vpack.c.b16 %v1841_v46, %v1840_v52  ;;  %v4574_v61 = vsub.f32 %v3475_v58, %v3490_v43  ;;  %v4577_v58 = vsub.f32 %v3511_v37, %v3525_v27 }
 0x231   :  { %v1127_v42 = vsub.f32 %v3404_v28, %v1078_v1  ;;  %1304 = vadd.xlane.f32.xlu1 %v4021_v56  ;;  %v4025_v4 = vpop.eup %2511  ;;  %v1635_v3 = vpack.c.bf16 %v4021_v56, %v4021_v56  ;;  %v882_v52 = vmul.f32 1.442695, %v4578_v53  ;;  %v4579_v27 = vsub.f32 %v3550_v51, %v3564_v60  ;;  %v4583_v51 = vld [vmem:[#allocation6_spill] sm:$0xff]  ;;  %v4584_v60 = vld [vmem:[#allocation7_spill] sm:$0xff] }
 0x232   :  { %2515 = vpow2.f32 %v1182_v7  ;;  %1811 = vmatmul.bf16.gmra.mxu2 %v1715_v39  ;;  %v1636_v38 = vpack.c.bf16 %v4025_v4, %v4025_v4  ;;  %v876_v25 = vmul.f32 1.442695, %v4574_v61  ;;  %v4575_v7 = vsub.f32 %v3469_v0, %v3482_v32  ;;  %v4592_v61 = vld [vmem:[#allocation9_spill] sm:$0xff] }
 0x233   :  { %v2514_v16 = vpop.eup %2513  ;;  %v1186_v21 = vmul.f32 1.442695, %v1127_v42  ;;  %2517 = vpow2.f32 %v1184_v40  ;;  %v1844_v40 = vunpack.c.l.b16 %v1635_v3  ;;  %v878_v42 = vmul.f32 1.442695, %v4576_v24  ;;  %v4596_v24 = vld [vmem:[#allocation23_spill] sm:$0xff] }
 0x234   :  { %1306 = vadd.xlane.f32.xlu2 %v4025_v4  ;;  %1308 = vadd.xlane.f32.xlu0 %v2514_v16  ;;  %v1637_v5 = vpack.c.bf16 %v2514_v16, %v2514_v16  ;;  %v880_v1 = vmul.f32 1.442695, %v4575_v7  ;;  %v1845_v39 = vunpack.c.l.b16 %v1636_v38  ;;  %v884_v43 = vmul.f32 1.442695, %v4577_v58 }
 0x235   :  { %2519 = vpow2.f32 %v1186_v21  ;;  %v1083_v41 = vpop.permute.xlu0 %1082 }
 0x236   :  { %v1128_v28 = vsub.f32 %v3423_v29, %v1083_v41  ;;  %v1846_v30 = vunpack.c.l.b16 %v1637_v5  ;;  %v1857_v56 = vpack.c.b16 %v1845_v39, %v1844_v40  ;;  %v4595_v39 = vld [vmem:[#allocation20_spill] sm:$0xff] }
 0x237   :  { %1931 = vmatmul.bf16.gmra.mxu1 %v1855_v2 }
 0x238   :  { %v2516_v44 = vpop.eup %2515  ;;  %v1188_v10 = vmul.f32 1.442695, %v1128_v28  ;;  %v1093_v12 = vpop.permute.xlu1 %1092  ;;  %v890_v28 = vmul.f32 1.442695, %v4579_v27 }
 0x239   :  { %v1130_v54 = vsub.f32 %v3434_v50, %v1093_v12  ;;  %1310 = vadd.xlane.f32.xlu1 %v2516_v44  ;;  %v1638_v8 = vpack.c.bf16 %v2516_v44, %v2516_v44  ;;  %v2518_v63 = vpop.eup %2517  ;;  %v1634_v50 = vpack.c.bf16 %v4015_v35, %v4015_v35  ;;  %v1197_v44 = vld [vmem:[#allocation3 + $0x8] sm:$0xff]  ;;  %v4582_v12 = vsub.f32 %v4580_v22, %v4581_v26 }
 0x23a   :  { %2521 = vpow2.f32 %v1188_v10  ;;  %v1639_v35 = vpack.c.bf16 %v2518_v63, %v2518_v63  ;;  %v1196_v10 = vld [vmem:[#allocation3] sm:$0xff] }
 0x23b   :  { %v2520_v6 = vpop.eup %2519  ;;  %v1192_v29 = vmul.f32 1.442695, %v1130_v54  ;;  %v1847_v33 = vunpack.c.l.b16 %v1638_v8  ;;  %2523 = vpow2.f32 %v1190_v18  ;;  %v1843_v14 = vunpack.c.l.b16 %v1634_v50  ;;  %v4587_v50 = vld [vmem:[#allocation17_spill] sm:$0xff] }
 0x23c   :  { %1312 = vadd.xlane.f32.xlu2 %v2518_v63  ;;  %1314 = vadd.xlane.f32.xlu0 %v2520_v6  ;;  %v1640_v55 = vpack.c.bf16 %v2520_v6, %v2520_v6  ;;  %v1848_v62 = vunpack.c.l.b16 %v1639_v35  ;;  %v888_v49 = vmul.f32 1.442695, %v4582_v12  ;;  %v4604_v12 = vld [vmem:[#allocation28_spill] sm:$0xff] }
 0x23d   :  { %2525 = vpow2.f32 %v1192_v29  ;;  %v1858_v13 = vpack.c.b16 %v1847_v33, %v1846_v30  ;;  %v1856_v11 = vpack.c.b16 %v1843_v14, %v1842_v57  ;;  %v4585_v30 = vsub.f32 %v4583_v51, %v4584_v60  ;;  %v1199_v14 = vld [vmem:[#allocation3 + $0x18] sm:$0xff]  ;;  %v4590_v57 = vld [vmem:[#allocation18_spill] sm:$0xff]  ;;  %v1204_v51 = vld [vmem:[#allocation3 + $0x40] sm:$0xff] }
 0x23e   :  { %v1849_v59 = vunpack.c.l.b16 %v1640_v55  ;;  %2527 = vpow2.f32 %v876_v25  ;;  %v4593_v25 = vld [vmem:[#allocation11_spill] sm:$0xff]  ;;  %v1205_v60 = vld [vmem:[#allocation3 + $0x48] sm:$0xff] }
 0x23f   :  { %1946 = vmatmul.bf16.vlgmr.msra.gmra.mxu3 %v1858_v13  ;;  %2529 = vpow2.f32 %v880_v1  ;;  %v886_v33 = vmul.f32 1.442695, %v4585_v30  ;;  %v4586_v13 = vld [vmem:[#allocation14_spill] sm:$0xff]  ;;  %v4594_v40 = vsub.f32 %v4592_v61, %v4593_v25  ;;  %v4607_v30 = vld [vmem:[#allocation25_spill] sm:$0xff] }
 0x240   :  { %v2522_v47 = vpop.eup %2521  ;;  %v1859_v48 = vpack.c.b16 %v1849_v59, %v1848_v62  ;;  %2531 = vpow2.f32 %v878_v42  ;;  %v4588_v20 = vsub.f32 %v4586_v13, %v4587_v50  ;;  %v4597_v42 = vsub.f32 %v4595_v39, %v4596_v24  ;;  %v1207_v39 = vld [vmem:[#allocation3 + $0x58] sm:$0xff]  ;;  %v1208_v24 = vld [vmem:[#allocation3 + $0x60] sm:$0xff] }
 0x241   :  { %1316 = vadd.xlane.f32.xlu1 %v2522_v47  ;;  %v2524_v23 = vpop.eup %2523  ;;  %v1641_v46 = vpack.c.bf16 %v2522_v47, %v2522_v47  ;;  %2533 = vpow2.f32 %v884_v43  ;;  %v1200_v47 = vld [vmem:[#allocation3 + $0x20] sm:$0xff]  ;;  %v892_v7 = vmul.f32 1.442695, %v4594_v40  ;;  %v1201_v43 = vld [vmem:[#allocation3 + $0x28] sm:$0xff] }
 0x242   :  { %1816 = vmatmul.bf16.gmra.mxu2 %v1716_v36  ;;  %v1642_v4 = vpack.c.bf16 %v2524_v23, %v2524_v23  ;;  %2535 = vpow2.f32 %v882_v52  ;;  %v896_v15 = vmul.f32 1.442695, %v4588_v20 }
 0x243   :  { %v4039_v34 = vpop.eup %2525  ;;  %v1850_v0 = vunpack.c.l.b16 %v1641_v46  ;;  %2537 = vpow2.f32 %v890_v28 }
 0x244   :  { %1318 = vadd.xlane.f32.xlu2 %v2524_v23  ;;  %1320 = vadd.xlane.f32.xlu0 %v4039_v34  ;;  %v2528_v32 = vpop.eup %2527  ;;  %v1851_v16 = vunpack.c.l.b16 %v1642_v4  ;;  %2539 = vpow2.f32 %v888_v49  ;;  %v4589_v23 = vld [vmem:[#allocation15_spill] sm:$0xff]  ;;  %v1203_v4 = vld [vmem:[#allocation3 + $0x38] sm:$0xff]  ;;  %v4605_v49 = vld [vmem:[#allocation30_spill] sm:$0xff] }
 0x245   :  { %v4059_v21 = vpop.eup %2529  ;;  %v1228_v8 = vmul.f32 %v2528_v32, %v1196_v10  ;;  %2541 = vpow2.f32 %v886_v33  ;;  %v4608_v33 = vld [vmem:[#allocation26_spill] sm:$0xff] }
 0x246   :  { %v1860_v9 = vpack.c.b16 %v1851_v16, %v1850_v0  ;;  %v2532_v41 = vpop.eup %2531  ;;  %v1230_v2 = vmul.f32 %v4059_v21, %v1198_v31  ;;  %2543 = vpow2.f32 %v896_v15  ;;  %v1202_v0 = vld [vmem:[#allocation3 + $0x30] sm:$0xff]  ;;  %v4599_v16 = vld [vmem:[#allocation24_spill] sm:$0xff] }
 0x247   :  { %1936 = vmatmul.bf16.gmra.mxu1 %v1856_v11  ;;  %v2534_v18 = vpop.eup %2533  ;;  %v1229_v54 = vmul.f32 %v2532_v41, %v1197_v44  ;;  %v4591_v11 = vsub.f32 %v4589_v23, %v4590_v57  ;;  %v4602_v44 = vld [vmem:[#allocation16_spill] sm:$0xff]  ;;  %v4610_v57 = vld [vmem:[#allocation19_spill] sm:$0xff] }
 0x248   :  { %v2536_v19 = vpop.eup %2535  ;;  %v1232_v35 = vmul.f32 %v2534_v18, %v1200_v47 }
 0x249   :  { %v2538_v36 = vpop.eup %2537  ;;  %v894_v55 = vmul.f32 1.442695, %v4591_v11  ;;  %v1231_v59 = vmul.f32 %v2536_v19, %v1199_v14  ;;  %v4611_v11 = vld [vmem:[#allocation22_spill] sm:$0xff] }
 0x24a   :  { %v1235_v52 = vmul.f32 %v2538_v36, %v1203_v4 }
 0x24b   :  { %2545 = vpow2.f32 %v894_v55  ;;  %v4612_v55 = vsub.f32 %v4610_v57, %v4611_v11 }
 0x24c   :  { %2547 = vpow2.f32 %v892_v7  ;;  %v1209_v7 = vld [vmem:[#allocation3 + $0x68] sm:$0xff] }
 0x24f   :  { %1951 = vmatmul.bf16.gmra.mxu3 %v1859_v48  ;;  %v2540_v48 = vpop.eup %2539 }
 0x250   :  { %v4090_v46 = vpop.eup %2541  ;;  %v1234_v27 = vmul.f32 %v2540_v48, %v1202_v0 }
 0x251   :  { %v2544_v58 = vpop.eup %2543 }
 0x257   :  { %1941 = vmatmul.bf16.gmra.mxu1 %v1857_v56  ;;  %v902_v56 = vmul.f32 1.442695, %v4597_v42  ;;  %v4616_v42 = vld [vmem:[#allocation31_spill] sm:$0xff] }
 0x258   :  { %1097 = vperm.xlu0 %2461, %v3862_v45  }
 0x259   :  { %2549 = vpow2.f32 %v902_v56  ;;  %v4617_v56 = vld [vmem:[#allocation32_spill] sm:$0xff] }
 0x25a   :  { %v4618_v4 = vsub.f32 %v4616_v42, %v4617_v56 }
 0x25c   :  { %1423 = vperm.xlu2 %2463, %v2528_v32   ;;  %v4598_v32 = vld [vmem:[#allocation21_spill] sm:$0xff] }
 0x25d   :  { %v4600_v31 = vsub.f32 %v4598_v32, %v4599_v16 }
 0x25f   :  { %1956 = vmatmul.bf16.gmra.mxu3 %v1860_v9  ;;  %v900_v53 = vmul.f32 1.442695, %v4600_v31  ;;  %v1233_v9 = vmul.f32 %v4090_v46, %v1201_v43 }
 0x260   :  { %1428 = vperm.xlu0 %2461, %v2532_v41   ;;  %v1265_v37 = vpop.xlane.xlu0 %1264 }
 0x261   :  { %v1326_v5 = vadd.f32 %v1265_v37, %v1230_v2  ;;  %v2546_v2 = vpop.eup %2545  ;;  %2551 = vpow2.f32 %v900_v53 }
 0x262   :  { %v1237_v14 = vmul.f32 %v2546_v2, %v1205_v60 }
 0x263   :  { %1359 = vst.msk [vmem:[#allocation3 + $0x10] sm:$0xff] %vm27_vm4, %v1326_v5  ;;  %v4601_v5 = vld [vmem:[#allocation13_spill] sm:$0xff] }
 0x264   :  { %1443 = vperm.xlu2 %2463, %v2534_v18   ;;  %v4603_v18 = vsub.f32 %v4601_v5, %v4602_v44  ;;  %v4622_v5 = vld [vmem:[#allocation40_spill] sm:$0xff]  ;;  %v4623_v44 = vld [vmem:[#allocation42_spill] sm:$0xff] }
 0x266   :  { %v1263_v63 = vpop.xlane.xlu1 %1262  ;;  %v898_v10 = vmul.f32 1.442695, %v4603_v18  ;;  %v4624_v18 = vsub.f32 %v4622_v5, %v4623_v44  ;;  %v1216_v44 = vld [vmem:[#allocation3 + $0xa0] sm:$0xff] }
 0x267   :  { %v1261_v6 = vpop.xlane.xlu2 %1260  ;;  %v1325_v29 = vadd.f32 %v1263_v63, %v1229_v54  ;;  %v4606_v54 = vsub.f32 %v4604_v12, %v4605_v49  ;;  %v1210_v49 = vld [vmem:[#allocation3 + $0x70] sm:$0xff] }
 0x268   :  { %v1324_v17 = vadd.f32 %v1261_v6, %v1228_v8  ;;  %1438 = vperm.xlu0 %2461, %v2536_v19   ;;  %v4104_v19 = vpop.eup %2547  ;;  %v1206_v6 = vld [vmem:[#allocation3 + $0x50] sm:$0xff]  ;;  %2553 = vpow2.f32 %v898_v10  ;;  %v920_v10 = vmul.f32 1.442695, %v4624_v18 }
 0x269   :  { %1358 = vst.msk [vmem:[#allocation3 + $0x8] sm:$0xff] %vm27_vm4, %v1325_v29  ;;  %v908_v8 = vmul.f32 1.442695, %v4606_v54  ;;  %v2550_v29 = vpop.eup %2549  ;;  %v1238_v50 = vmul.f32 %v2544_v58, %v1206_v6  ;;  %v1236_v20 = vmul.f32 %v4104_v19, %v1204_v51  ;;  %v1211_v54 = vld [vmem:[#allocation3 + $0x78] sm:$0xff] }
 0x26a   :  { %1357 = vst.msk [vmem:[#allocation3] sm:$0xff] %vm27_vm4, %v1324_v17  ;;  %v4609_v17 = vsub.f32 %v4607_v30, %v4608_v33  ;;  %v2552_v47 = vpop.eup %2551  ;;  %v1241_v43 = vmul.f32 %v2550_v29, %v1209_v7 }
 0x26b   :  { %2555 = vpow2.f32 %v908_v8  ;;  %v1240_v53 = vmul.f32 %v2552_v47, %v1208_v24  ;;  %v4625_v8 = vld [vmem:[#allocation37_spill] sm:$0xff] }
 0x26c   :  { %1458 = vperm.xlu2 %2463, %v2538_v36   ;;  %v906_v13 = vmul.f32 1.442695, %v4609_v17  ;;  %v4628_v17 = vld [vmem:[#allocation33_spill] sm:$0xff] }
 0x26e   :  { %v1269_v62 = vpop.xlane.xlu1 %1268  ;;  %2557 = vpow2.f32 %v906_v13  ;;  %v4119_v40 = vpop.eup %2553  ;;  %v4629_v13 = vld [vmem:[#allocation35_spill] sm:$0xff] }
 0x26f   :  { %v1267_v3 = vpop.xlane.xlu2 %1266  ;;  %v1328_v38 = vadd.f32 %v1269_v62, %v1232_v35  ;;  %v904_v35 = vmul.f32 1.442695, %v4612_v55  ;;  %v1239_v0 = vmul.f32 %v4119_v40, %v1207_v39 }
 0x270   :  { %v1327_v1 = vadd.f32 %v1267_v3, %v1231_v59  ;;  %1453 = vperm.xlu0 %2461, %v2540_v48   ;;  %v4613_v48 = vld [vmem:[#allocation34_spill] sm:$0xff]  ;;  %v4614_v3 = vld [vmem:[#allocation36_spill] sm:$0xff] }
 0x271   :  { %1361 = vst.msk [vmem:[#allocation3 + $0x20] sm:$0xff] %vm27_vm4, %v1328_v38  ;;  %v4615_v38 = vsub.f32 %v4613_v48, %v4614_v3  ;;  %2559 = vpow2.f32 %v904_v35  ;;  %v1213_v48 = vld [vmem:[#allocation3 + $0x88] sm:$0xff] }
 0x272   :  { %1360 = vst.msk [vmem:[#allocation3 + $0x18] sm:$0xff] %vm27_vm4, %v1327_v1  ;;  %v2556_v1 = vpop.eup %2555 }
 0x273   :  { %v914_v61 = vmul.f32 1.442695, %v4615_v38  ;;  %v1214_v38 = vld [vmem:[#allocation3 + $0x90] sm:$0xff] }
 0x274   :  { %1473 = vperm.xlu2 %2463, %v2544_v58   ;;  %v912_v58 = vmul.f32 1.442695, %v4618_v4  ;;  %v2558_v16 = vpop.eup %2557 }
 0x275   :  { %2561 = vpow2.f32 %v914_v61  ;;  %v1243_v33 = vmul.f32 %v2558_v16, %v1211_v54  ;;  %v4634_v61 = vld [vmem:[#allocation43_spill] sm:$0xff] }
 0x276   :  { %v1275_v41 = vpop.xlane.xlu1 %1274  ;;  %2563 = vpow2.f32 %v912_v58 }
 0x277   :  { %v1271_v37 = vpop.xlane.xlu2 %1270  ;;  %v1331_v28 = vadd.f32 %v1275_v41, %v1235_v52  ;;  %v1273_v26 = vpop.xlane.xlu0 %1272  ;;  %v4620_v41 = vld [vmem:[#allocation29_spill] sm:$0xff] }
 0x278   :  { %v1329_v22 = vadd.f32 %v1271_v37, %v1233_v9  ;;  %1468 = vperm.xlu0 %2461, %v2546_v2   ;;  %v1330_v63 = vadd.f32 %v1273_v26, %v1234_v27  ;;  %v4619_v9 = vld [vmem:[#allocation27_spill] sm:$0xff]  ;;  %v4134_v26 = vpop.eup %2559 }
 0x279   :  { %1364 = vst.msk [vmem:[#allocation3 + $0x38] sm:$0xff] %vm27_vm4, %v1331_v28  ;;  %v4621_v2 = vsub.f32 %v4619_v9, %v4620_v41  ;;  %v1242_v51 = vmul.f32 %v4134_v26, %v1210_v49  ;;  %v4641_v9 = vld [vmem:[#allocation54_spill] sm:$0xff] }
 0x27a   :  { %1362 = vst.msk [vmem:[#allocation3 + $0x28] sm:$0xff] %vm27_vm4, %v1329_v22  ;;  %v4644_v49 = vld [vmem:[#allocation50_spill] sm:$0xff] }
 0x27b   :  { %1363 = vst.msk [vmem:[#allocation3 + $0x30] sm:$0xff] %vm27_vm4, %v1330_v63  ;;  %v910_v37 = vmul.f32 1.442695, %v4621_v2  ;;  %v2562_v12 = vpop.eup %2561  ;;  %v4626_v63 = vld [vmem:[#allocation38_spill] sm:$0xff] }
 0x27c   :  { %1488 = vperm.xlu2 %2463, %v2550_v29   ;;  %v4627_v6 = vsub.f32 %v4625_v8, %v4626_v63  ;;  %v2564_v60 = vpop.eup %2563  ;;  %v4646_v63 = vld [vmem:[#allocation57_spill] sm:$0xff] }
 0x27d   :  { %2565 = vpow2.f32 %v910_v37  ;;  %v1246_v58 = vmul.f32 %v2564_v60, %v1214_v38 }
 0x27e   :  { %v1281_v15 = vpop.xlane.xlu1 %1280  ;;  %v918_v29 = vmul.f32 1.442695, %v4627_v6  ;;  %2567 = vpow2.f32 %v920_v10  ;;  %v1217_v10 = vld [vmem:[#allocation3 + $0xa8] sm:$0xff]  ;;  %v875_v6 = vsub.f32 %v4646_v63, %v3862_v45 }
 0x27f   :  { %v1277_v36 = vpop.xlane.xlu2 %1276  ;;  %v1334_v23 = vadd.f32 %v1281_v15, %v1238_v50  ;;  %v1279_v62 = vpop.xlane.xlu0 %1278  ;;  %v4630_v50 = vsub.f32 %v4628_v17, %v4629_v13  ;;  %v4648_v17 = vld [vmem:[#allocation47_spill] sm:$0xff] }
 0x280   :  { %v1332_v59 = vadd.f32 %v1277_v36, %v1236_v20  ;;  %1483 = vperm.xlu0 %2461, %v2552_v47   ;;  %v1333_v25 = vadd.f32 %v1279_v62, %v1237_v14  ;;  %v1212_v36 = vld [vmem:[#allocation3 + $0x80] sm:$0xff]  ;;  %2569 = vpow2.f32 %v918_v29  ;;  %v4631_v14 = vld [vmem:[#allocation46_spill] sm:$0xff] }
 0x281   :  { %1367 = vst.msk [vmem:[#allocation3 + $0x50] sm:$0xff] %vm27_vm4, %v1334_v23  ;;  %v916_v20 = vmul.f32 1.442695, %v4630_v50  ;;  %v4632_v23 = vld [vmem:[#allocation48_spill] sm:$0xff]  ;;  %v1244_v62 = vmul.f32 %v2556_v1, %v1212_v36  ;;  %v938_v36 = vmul.f32 1.442695, %v875_v6 }
 0x282   :  { %1365 = vst.msk [vmem:[#allocation3 + $0x40] sm:$0xff] %vm27_vm4, %v1332_v59  ;;  %v4633_v57 = vsub.f32 %v4631_v14, %v4632_v23  ;;  %v2071_v6 = vld [vmem:[#allocation3 + $0x28] sm:$0xff] }
 0x283   :  { %1366 = vst.msk [vmem:[#allocation3 + $0x48] sm:$0xff] %vm27_vm4, %v1333_v25  ;;  %v4148_v35 = vpop.eup %2565  ;;  %2571 = vpow2.f32 %v916_v20  ;;  %v4635_v25 = vld [vmem:[#allocation44_spill] sm:$0xff] }
 0x284   :  { %1503 = vperm.xlu2 %2463, %v2556_v1   ;;  %v926_v11 = vmul.f32 1.442695, %v4633_v57  ;;  %v2568_v59 = vpop.eup %2567  ;;  %v4636_v7 = vsub.f32 %v4634_v61, %v4635_v25  ;;  %v1245_v42 = vmul.f32 %v4148_v35, %v1213_v48  ;;  %v4638_v1 = vld [vmem:[#allocation41_spill] sm:$0xff]  ;;  %v4650_v48 = vld [vmem:[#allocation55_spill] sm:$0xff] }
 0x286   :  { %v1287_v32 = vpop.xlane.xlu1 %1286  ;;  %v924_v39 = vmul.f32 1.442695, %v4636_v7  ;;  %2573 = vpow2.f32 %v926_v11  ;;  %v2570_v56 = vpop.eup %2569  ;;  %v1219_v11 = vld [vmem:[#allocation3 + $0xb8] sm:$0xff] }
 0x287   :  { %v1283_v31 = vpop.xlane.xlu2 %1282  ;;  %v1337_v52 = vadd.f32 %v1287_v32, %v1241_v43  ;;  %v1285_v28 = vpop.xlane.xlu0 %1284  ;;  %v4637_v43 = vld [vmem:[#allocation39_spill] sm:$0xff] }
 0x288   :  { %v1335_v27 = vadd.f32 %v1283_v31, %v1239_v0  ;;  %1498 = vperm.xlu0 %2461, %v2558_v16   ;;  %v1336_v22 = vadd.f32 %v1285_v28, %v1240_v53  ;;  %v4639_v0 = vsub.f32 %v4637_v43, %v4638_v1  ;;  %v1215_v53 = vld [vmem:[#allocation3 + $0x98] sm:$0xff]  ;;  %2575 = vpow2.f32 %v924_v39 }
 0x289   :  { %1370 = vst.msk [vmem:[#allocation3 + $0x68] sm:$0xff] %vm27_vm4, %v1337_v52  ;;  %v4640_v52 = vld [vmem:[#allocation52_spill] sm:$0xff]  ;;  %v1247_v5 = vmul.f32 %v2562_v12, %v1215_v53 }
 0x28a   :  { %1368 = vst.msk [vmem:[#allocation3 + $0x58] sm:$0xff] %vm27_vm4, %v1335_v27  ;;  %v922_v32 = vmul.f32 1.442695, %v4639_v0  ;;  %v4642_v41 = vsub.f32 %v4640_v52, %v4641_v9  ;;  %v4163_v27 = vpop.eup %2571  ;;  %v1221_v0 = vld [vmem:[#allocation3 + $0xc8] sm:$0xff]  ;;  %v1222_v9 = vld [vmem:[#allocation3 + $0xd0] sm:$0xff] }
 0x28b   :  { %1369 = vst.msk [vmem:[#allocation3 + $0x60] sm:$0xff] %vm27_vm4, %v1336_v22  ;;  %v4643_v22 = vld [vmem:[#allocation49_spill] sm:$0xff] }
 0x28c   :  { %1518 = vperm.xlu2 %2463, %v2562_v12   ;;  %v932_v2 = vmul.f32 1.442695, %v4642_v41  ;;  %v2574_v28 = vpop.eup %2573  ;;  %2577 = vpow2.f32 %v922_v32  ;;  %v4645_v54 = vsub.f32 %v4643_v22, %v4644_v49 }
 0x28d   :  { %v1253_v52 = vmul.f32 %v2574_v28, %v1221_v0 }
 0x28e   :  { %v930_v8 = vmul.f32 1.442695, %v4645_v54  ;;  %2579 = vpow2.f32 %v932_v2  ;;  %v1223_v2 = vld [vmem:[#allocation3 + $0xd8] sm:$0xff] }
 0x28f   :  { %v1289_v30 = vpop.xlane.xlu2 %1288  ;;  %v1291_v47 = vpop.xlane.xlu0 %1290 }
 0x290   :  { %v1338_v15 = vadd.f32 %v1289_v30, %v1242_v51  ;;  %1513 = vperm.xlu0 %2461, %v2564_v60   ;;  %v1339_v55 = vadd.f32 %v1291_v47, %v1243_v33  ;;  %v1248_v51 = vmul.f32 %v4163_v27, %v1216_v44  ;;  %v2576_v60 = vpop.eup %2575  ;;  %v1249_v30 = vmul.f32 %v2570_v56, %v1217_v10  ;;  %v4647_v33 = vld [vmem:[#allocation45_spill] sm:$0xff]  ;;  %v1218_v47 = vld [vmem:[#allocation3 + $0xb0] sm:$0xff]  ;;  %v2067_v44 = vld [vmem:[#allocation3 + $0x8] sm:$0xff] }
 0x291   :  { %v4649_v13 = vsub.f32 %v4647_v33, %v4648_v17  ;;  %2581 = vpow2.f32 %v930_v8  ;;  %v1250_v57 = vmul.f32 %v2568_v59, %v1218_v47 }
 0x292   :  { %1371 = vst.msk [vmem:[#allocation3 + $0x70] sm:$0xff] %vm27_vm4, %v1338_v15  ;;  %v4177_v45 = vpop.eup %2577 }
 0x293   :  { %1372 = vst.msk [vmem:[#allocation3 + $0x78] sm:$0xff] %vm27_vm4, %v1339_v55  ;;  %v928_v50 = vmul.f32 1.442695, %v4649_v13  ;;  %v1251_v7 = vmul.f32 %v4177_v45, %v1219_v11  ;;  %v2070_v13 = vld [vmem:[#allocation3 + $0x20] sm:$0xff]  ;;  %v2073_v11 = vld [vmem:[#allocation3 + $0x38] sm:$0xff] }
 0x294   :  { %1533 = vperm.xlu2 %2463, %v2568_v59   ;;  %v1293_v3 = vpop.xlane.xlu1 %1292  ;;  %v2580_v23 = vpop.eup %2579  ;;  %v4654_v59 = vld [vmem:[#allocation53_spill] sm:$0xff] }
 0x295   :  { %v1340_v24 = vadd.f32 %v1293_v3, %v1244_v62  ;;  %2583 = vpow2.f32 %v928_v50  ;;  %v1220_v62 = vld [vmem:[#allocation3 + $0xc0] sm:$0xff]  ;;  %v4651_v3 = vld [vmem:[#allocation56_spill] sm:$0xff] }
 0x296   :  { %v4652_v38 = vsub.f32 %v4650_v48, %v4651_v3  ;;  %2585 = vpow2.f32 %v938_v36  ;;  %v2077_v48 = vld [vmem:[#allocation3 + $0x58] sm:$0xff] }
 0x297   :  { %1373 = vst.msk [vmem:[#allocation3 + $0x80] sm:$0xff] %vm27_vm4, %v1340_v24  ;;  %v1295_v4 = vpop.xlane.xlu2 %1294  ;;  %v1297_v31 = vpop.xlane.xlu0 %1296 }
 0x298   :  { %v1341_v16 = vadd.f32 %v1295_v4, %v1245_v42  ;;  %1528 = vperm.xlu0 %2461, %v2570_v56   ;;  %v1342_v37 = vadd.f32 %v1297_v31, %v1246_v58  ;;  %v936_v61 = vmul.f32 1.442695, %v4652_v38  ;;  %v2582_v39 = vpop.eup %2581  ;;  %v1252_v42 = vmul.f32 %v2576_v60, %v1220_v62  ;;  %v4653_v56 = vld [vmem:[#allocation51_spill] sm:$0xff] }
 0x299   :  { %v4655_v4 = vsub.f32 %v4653_v56, %v4654_v59  ;;  %v2068_v31 = vld [vmem:[#allocation3 + $0x10] sm:$0xff]  ;;  %v1255_v22 = vmul.f32 %v2582_v39, %v1223_v2 }
 0x29a   :  { %1374 = vst.msk [vmem:[#allocation3 + $0x88] sm:$0xff] %vm27_vm4, %v1341_v16  ;;  %2587 = vpow2.f32 %v936_v61  ;;  %v2076_v38 = vld [vmem:[#allocation3 + $0x50] sm:$0xff] }
 0x29b   :  { %1375 = vst.msk [vmem:[#allocation3 + $0x90] sm:$0xff] %vm27_vm4, %v1342_v37  ;;  %v934_v58 = vmul.f32 1.442695, %v4655_v4  ;;  %v4189_v16 = vpop.eup %2583  ;;  %v2079_v4 = vld [vmem:[#allocation3 + $0x68] sm:$0xff] }
 0x29c   :  { %1548 = vperm.xlu2 %2463, %v2574_v28   ;;  %v1299_v18 = vpop.xlane.xlu1 %1298  ;;  %v4192_v53 = vpop.eup %2585  ;;  %v1224_v28 = vld [vmem:[#allocation3 + $0xe0] sm:$0xff] }
 0x29d   :  { %v1343_v29 = vadd.f32 %v1299_v18, %v1247_v5  ;;  %2589 = vpow2.f32 %v934_v58  ;;  %v1254_v5 = vmul.f32 %v4189_v16, %v1222_v9 }
 0x29e   :  { %2591 = vrcp.f32 %v2068_v31  ;;  %v1643_v31 = vpack.c.bf16 %v4039_v34, %v4039_v34 }
 0x29f   :  { %1376 = vst.msk [vmem:[#allocation3 + $0x98] sm:$0xff] %vm27_vm4, %v1343_v29  ;;  %v1301_v12 = vpop.xlane.xlu2 %1300  ;;  %v1303_v15 = vpop.xlane.xlu0 %1302  ;;  %2593 = vrcp.f32 %v2067_v44 }
 0x2a0   :  { %v1344_v20 = vadd.f32 %v1301_v12, %v1248_v51  ;;  %1543 = vperm.xlu0 %2461, %v2576_v60   ;;  %v1345_v14 = vadd.f32 %v1303_v15, %v1249_v30  ;;  %v2588_v18 = vpop.eup %2587  ;;  %v1256_v51 = vmul.f32 %v2580_v23, %v1224_v28  ;;  %v1225_v60 = vld [vmem:[#allocation3 + $0xe8] sm:$0xff]  ;;  %v1226_v30 = vld [vmem:[#allocation3 + $0xf0] sm:$0xff]  ;;  %2595 = vrcp.f32 %v2071_v6 }
 0x2a1   :  { %v1258_v15 = vmul.f32 %v2588_v18, %v1226_v30  ;;  %2597 = vrcp.f32 %v2070_v13  ;;  %v2083_v0 = vld [vmem:[#allocation3 + $0x88] sm:$0xff] }
 0x2a2   :  { %1377 = vst.msk [vmem:[#allocation3 + $0xa0] sm:$0xff] %vm27_vm4, %v1344_v20 }
 0x2a3   :  { %1378 = vst.msk [vmem:[#allocation3 + $0xa8] sm:$0xff] %vm27_vm4, %v1345_v14  ;;  %v4198_v63 = vpop.eup %2589 }
 0x2a4   :  { %1563 = vperm.xlu2 %2463, %v2580_v23   ;;  %v1305_v55 = vpop.xlane.xlu1 %1304  ;;  %v2592_v29 = vpop.eup %2591  ;;  %v1257_v17 = vmul.f32 %v4198_v63, %v1225_v60  ;;  %v2074_v23 = vld [vmem:[#allocation3 + $0x40] sm:$0xff] }
 0x2a5   :  { %v1346_v25 = vadd.f32 %v1305_v55, %v1250_v57  ;;  %v2594_v50 = vpop.eup %2593  ;;  %2599 = vrcp.f32 %v2074_v23 }
 0x2a6   :  { %v2596_v57 = vpop.eup %2595  ;;  %2601 = vrcp.f32 %v2073_v11  ;;  %v2085_v34 = vld [vmem:[#allocation3 + $0x98] sm:$0xff] }
 0x2a7   :  { %1379 = vst.msk [vmem:[#allocation3 + $0xb0] sm:$0xff] %vm27_vm4, %v1346_v25  ;;  %v1307_v24 = vpop.xlane.xlu2 %1306  ;;  %v1309_v1 = vpop.xlane.xlu0 %1308  ;;  %2603 = vrcp.f32 %v2077_v48 }
 0x2a8   :  { %v1347_v43 = vadd.f32 %v1307_v24, %v1251_v7  ;;  %1558 = vperm.xlu0 %2461, %v2582_v39   ;;  %v1348_v32 = vadd.f32 %v1309_v1, %v1252_v42  ;;  %v2598_v55 = vpop.eup %2597  ;;  %2605 = vrcp.f32 %v2076_v38  ;;  %v2080_v39 = vld [vmem:[#allocation3 + $0x70] sm:$0xff]  ;;  %v4656_v42 = vld [vmem:[#allocation5_spill] sm:$0xff] }
 0x2a9   :  { %2607 = vrcp.f32 %v2080_v39 }
 0x2aa   :  { %1380 = vst.msk [vmem:[#allocation3 + $0xb8] sm:$0xff] %vm27_vm4, %v1347_v43 }
 0x2ab   :  { %1381 = vst.msk [vmem:[#allocation3 + $0xc0] sm:$0xff] %vm27_vm4, %v1348_v32  ;;  %v2600_v3 = vpop.eup %2599 }
 0x2ac   :  { %1578 = vperm.xlu2 %2463, %v4192_v53   ;;  %v1311_v41 = vpop.xlane.xlu1 %1310  ;;  %v2602_v61 = vpop.eup %2601 }
 0x2ad   :  { %v1349_v37 = vadd.f32 %v1311_v41, %v1253_v52  ;;  %v2604_v24 = vpop.eup %2603  ;;  %v2082_v41 = vld [vmem:[#allocation3 + $0x80] sm:$0xff] }
 0x2ae   :  { %v2606_v58 = vpop.eup %2605 }
 0x2af   :  { %1382 = vst.msk [vmem:[#allocation3 + $0xc8] sm:$0xff] %vm27_vm4, %v1349_v37  ;;  %v1313_v10 = vpop.xlane.xlu2 %1312  ;;  %v1315_v54 = vpop.xlane.xlu0 %1314 }
 0x2b0   :  { %v1350_v49 = vadd.f32 %v1313_v10, %v1254_v5  ;;  %1573 = vperm.xlu0 %2461, %v2588_v18   ;;  %v1351_v8 = vadd.f32 %v1315_v54, %v1255_v22  ;;  %v2608_v32 = vpop.eup %2607  ;;  %v1852_v5 = vunpack.c.l.b16 %v1643_v31  ;;  %v1927_v18 = vpop.f32.mrf.mxu1 }
 0x2b2   :  { %1383 = vst.msk [vmem:[#allocation3 + $0xd0] sm:$0xff] %vm27_vm4, %v1350_v49  ;;  %v2086_v49 = vld [vmem:[#allocation3 + $0xa0] sm:$0xff] }
 0x2b3   :  { %1384 = vst.msk [vmem:[#allocation3 + $0xd8] sm:$0xff] %vm27_vm4, %v1351_v8 }
 0x2b4   :  { %2174 = vperm.xlu2 %2463, %v2592_v29   ;;  %v1317_v12 = vpop.xlane.xlu1 %1316  ;;  %v2089_v29 = vld [vmem:[#allocation3 + $0xb8] sm:$0xff] }
 0x2b5   :  { %v1352_v33 = vadd.f32 %v1317_v12, %v1256_v51  ;;  %v2088_v12 = vld [vmem:[#allocation3 + $0xb0] sm:$0xff] }
 0x2b7   :  { %1385 = vst.msk [vmem:[#allocation3 + $0xe0] sm:$0xff] %vm27_vm4, %v1352_v33  ;;  %v1319_v20 = vpop.xlane.xlu2 %1318  ;;  %v1321_v36 = vpop.xlane.xlu0 %1320 }
 0x2b8   :  { %v1353_v47 = vadd.f32 %v1319_v20, %v1257_v17  ;;  %2169 = vperm.xlu0 %2461, %v2594_v50   ;;  %v1354_v14 = vadd.f32 %v1321_v36, %v1258_v15  ;;  %v4225_v60 = vpop.f32.mrf.mxu1  ;;  %v2091_v36 = vld [vmem:[#allocation3 + $0xc8] sm:$0xff] }
 0x2b9   :  { %v2092_v50 = vld [vmem:[#allocation3 + $0xd0] sm:$0xff] }
 0x2ba   :  { %1386 = vst.msk [vmem:[#allocation3 + $0xe8] sm:$0xff] %vm27_vm4, %v1353_v47 }
 0x2bb   :  { %1387 = vst.msk [vmem:[#allocation3 + $0xf0] sm:$0xff] %vm27_vm4, %v1354_v14 }
 0x2bc   :  { %2189 = vperm.xlu2 %2463, %v2596_v57  }
 0x2bf   :  { %v4206_v62 = vpop.permute.xlu2 %1423 }
 0x2c0   :  { %2184 = vperm.xlu0 %2461, %v2598_v55   ;;  %v4231_v47 = vpop.f32.mrf.mxu1  ;;  %v2094_v55 = vld [vmem:[#allocation3 + $0xe0] sm:$0xff] }
 0x2c1   :  { %v2095_v57 = vld [vmem:[#allocation3 + $0xe8] sm:$0xff] }
 0x2c4   :  { %2204 = vperm.xlu2 %2463, %v2600_v3  }
 0x2c7   :  { %v4208_v25 = vpop.permute.xlu2 %1443 }
 0x2c8   :  { %2199 = vperm.xlu0 %2461, %v2602_v61   ;;  %v4237_v3 = vpop.f32.mrf.mxu1 }
 0x2ca   :  { %v1098_v7 = vpop.permute.xlu0 %1097 }
 0x2cb   :  { %v1131_v56 = vsub.f32 %v4656_v42, %v1098_v7 }
 0x2cc   :  { %2219 = vperm.xlu2 %2463, %v2604_v24  }
 0x2cd   :  { %v1194_v59 = vmul.f32 1.442695, %v1131_v56 }
 0x2cf   :  { %2609 = vpow2.f32 %v1194_v59  ;;  %v4211_v43 = vpop.permute.xlu2 %1458 }
 0x2d0   :  { %2214 = vperm.xlu0 %2461, %v2606_v58   ;;  %2611 = vrcp.f32 %v2079_v4  ;;  %v4244_v39 = vpop.f32.mrf.mxu1 }
 0x2d1   :  { %2613 = vrcp.f32 %v2083_v0 }
 0x2d2   :  { %v4213_v1 = vpop.permute.xlu0 %1428  ;;  %2615 = vrcp.f32 %v2082_v41  ;;  %v2066_v41 = vld [vmem:[#allocation3] sm:$0xff] }
 0x2d3   :  { %2617 = vrcp.f32 %v2086_v49 }
 0x2d4   :  { %2234 = vperm.xlu2 %2463, %v2608_v32   ;;  %2619 = vrcp.f32 %v2085_v34 }
 0x2d5   :  { %v2610_v52 = vpop.eup %2609  ;;  %2621 = vrcp.f32 %v2089_v29  ;;  %v4279_v29 = vpop.f32.mrf.mxu0 }
 0x2d6   :  { %1322 = vadd.xlane.f32.xlu1 %v2610_v52  ;;  %v1644_v9 = vpack.c.bf16 %v2610_v52, %v2610_v52  ;;  %v2612_v2 = vpop.eup %2611  ;;  %2623 = vrcp.f32 %v2088_v12 }
 0x2d7   :  { %v4217_v37 = vpop.permute.xlu2 %1473  ;;  %v2614_v54 = vpop.eup %2613  ;;  %2625 = vrcp.f32 %v2092_v50 }
 0x2d8   :  { %2229 = vperm.xlu0 %2461, %v2612_v2   ;;  %v1853_v44 = vunpack.c.l.b16 %v1644_v9  ;;  %v2616_v28 = vpop.eup %2615  ;;  %2627 = vrcp.f32 %v2091_v36  ;;  %v1939_v59 = vpop.f32.mrf.mxu1  ;;  %v2084_v36 = vld [vmem:[#allocation3 + $0x90] sm:$0xff] }
 0x2d9   :  { %v2618_v51 = vpop.eup %2617  ;;  %2629 = vrcp.f32 %v2095_v57 }
 0x2da   :  { %v4219_v10 = vpop.permute.xlu0 %1438  ;;  %v1861_v22 = vpack.c.b16 %v1853_v44, %v1852_v5  ;;  %v2620_v30 = vpop.eup %2619  ;;  %2631 = vrcp.f32 %v2094_v55  ;;  %v2072_v44 = vld [vmem:[#allocation3 + $0x30] sm:$0xff] }
 0x2db   :  { %v2622_v15 = vpop.eup %2621  ;;  %2633 = vrcp.f32 %v2066_v41  ;;  %v4299_v41 = vpop.f32.mrf.mxu2 }
 0x2dc   :  { %2249 = vperm.xlu2 %2463, %v2614_v54   ;;  %1961 = vmatmul.bf16.gmra.mxu3 %v1861_v22  ;;  %v2624_v14 = vpop.eup %2623 }
 0x2dd   :  { %v2626_v11 = vpop.eup %2625  ;;  %v1784_v50 = vpop.f32.mrf.mxu0 }
 0x2de   :  { %v2628_v48 = vpop.eup %2627 }
 0x2df   :  { %v4221_v8 = vpop.permute.xlu2 %1488  ;;  %v2630_v61 = vpop.eup %2629 }
 0x2e0   :  { %2244 = vperm.xlu0 %2461, %v2616_v28   ;;  %v2632_v7 = vpop.eup %2631 }
 0x2e1   :  { %v2634_v2 = vpop.eup %2633 }
 0x2e2   :  { %v4223_v6 = vpop.permute.xlu0 %1453 }
 0x2e4   :  { %2264 = vperm.xlu2 %2463, %v2618_v51   ;;  %v2078_v51 = vld [vmem:[#allocation3 + $0x60] sm:$0xff] }
 0x2e7   :  { %v1504_v33 = vpop.permute.xlu2 %1503 }
 0x2e8   :  { %v1597_v17 = vmul.f32 0.0, %v1504_v33  ;;  %2259 = vperm.xlu0 %2461, %v2620_v30   ;;  %v2081_v33 = vld [vmem:[#allocation3 + $0x78] sm:$0xff] }
 0x2ea   :  { %v4227_v13 = vpop.permute.xlu0 %1468  ;;  %v4229_v20 = vadd.f32 %v1927_v18, %v1597_v17 }
 0x2ec   :  { %2279 = vperm.xlu2 %2463, %v2622_v15  }
 0x2ef   :  { %1433 = vperm.xlu1 %2462, %v4059_v21   ;;  %v4241_v21 = vpop.f32.mrf.mxu3 }
 0x2f0   :  { %2274 = vperm.xlu0 %2461, %v2624_v14  }
 0x2f2   :  { %v4234_v23 = vpop.permute.xlu0 %1483 }
 0x2f4   :  { %2294 = vperm.xlu2 %2463, %v2626_v11   ;;  %v4287_v11 = vpop.f32.mrf.mxu0 }
 0x2f7   :  { %1448 = vperm.xlu1 %2462, %v4090_v46   ;;  %v4249_v46 = vpop.f32.mrf.mxu3 }
 0x2f8   :  { %2289 = vperm.xlu0 %2461, %v2628_v48  }
 0x2fa   :  { %v4239_v38 = vpop.permute.xlu0 %1498 }
 0x2fc   :  { %2309 = vperm.xlu2 %2463, %v2630_v61   ;;  %v2087_v61 = vld [vmem:[#allocation3 + $0xa8] sm:$0xff] }
 0x2ff   :  { %1463 = vperm.xlu1 %2462, %v4104_v19   ;;  %v4254_v58 = vpop.f32.mrf.mxu3 }
 0x300   :  { %2304 = vperm.xlu0 %2461, %v2632_v7  }
 0x302   :  { %v4246_v24 = vpop.permute.xlu0 %1513 }
 0x307   :  { %1478 = vperm.xlu1 %2462, %v4119_v40   ;;  %v1954_v31 = vpop.f32.mrf.mxu3  ;;  %v4262_v40 = vpop.permute.xlu2 %1518 }
 0x30a   :  { %v1529_v42 = vpop.permute.xlu0 %1528 }
 0x30b   :  { %v1602_v56 = vmul.f32 0.0, %v1529_v42 }
 0x30d   :  { %v4251_v4 = vadd.f32 %v1939_v59, %v1602_v56  ;;  %v4297_v59 = vpop.f32.mrf.mxu0 }
 0x30f   :  { %1493 = vperm.xlu1 %2462, %v4134_v26   ;;  %v4265_v9 = vpop.permute.xlu2 %1533 }
 0x312   :  { %v4256_v0 = vpop.permute.xlu0 %1543 }
 0x317   :  { %1508 = vperm.xlu1 %2462, %v4148_v35   ;;  %v4268_v26 = vpop.permute.xlu2 %1548  ;;  %v2069_v35 = vld [vmem:[#allocation3 + $0x18] sm:$0xff] }
 0x318   :  { %2635 = vrcp.f32 %v2069_v35 }
 0x319   :  { %2637 = vrcp.f32 %v2072_v44  ;;  %v2093_v44 = vld [vmem:[#allocation3 + $0xd8] sm:$0xff] }
 0x31a   :  { %v1559_v19 = vpop.permute.xlu0 %1558 }
 0x31b   :  { %v1608_v32 = vmul.f32 0.0, %v1559_v19 }
 0x31d   :  { %v4259_v52 = vadd.f32 %v1954_v31, %v1608_v32  ;;  %v2090_v32 = vld [vmem:[#allocation3 + $0xc0] sm:$0xff] }
 0x31e   :  { %v2636_v18 = vpop.eup %2635 }
 0x31f   :  { %4657 = vst [vmem:[#allocation8_spill] sm:$0xff] %v4259_v52  ;;  %1523 = vperm.xlu1 %2462, %v4163_v27   ;;  %v4271_v5 = vpop.permute.xlu2 %1563  ;;  %v1227_v27 = vld [vmem:[#allocation3 + $0xf8] sm:$0xff]  ;;  %v2638_v54 = vpop.eup %2637 }
 0x322   :  { %v4291_v48 = vpop.permute.xlu0 %1573 }
 0x323   :  { %4658 = vst [vmem:[#allocation10_spill] sm:$0xff] %v4291_v48  ;;  %v1588_v48 = vmul.f32 0.0, %v4211_v43 }
 0x327   :  { %1538 = vperm.xlu1 %2462, %v4177_v45   ;;  %v1259_v45 = vmul.f32 %v4192_v53, %v1227_v27  ;;  %v1792_v27 = vpop.f32.mrf.mxu0 }
 0x32a   :  { %v2170_v19 = vpop.permute.xlu0 %2169 }
 0x32f   :  { %1553 = vperm.xlu1 %2462, %v4189_v16   ;;  %v4274_v16 = vpop.permute.xlu2 %1578 }
 0x337   :  { %1568 = vperm.xlu1 %2462, %v4198_v63   ;;  %v2075_v63 = vld [vmem:[#allocation3 + $0x48] sm:$0xff]  ;;  %v4277_v34 = vpop.permute.xlu2 %2174 }
 0x338   :  { %2639 = vrcp.f32 %v2075_v63 }
 0x33e   :  { %v2640_v12 = vpop.eup %2639 }
 0x33f   :  { %2164 = vperm.xlu1 %2462, %v2634_v2   ;;  %v4281_v30 = vpop.permute.xlu2 %2189 }
 0x347   :  { %2179 = vperm.xlu1 %2462, %v2636_v18   ;;  %v4285_v57 = vpop.permute.xlu2 %2204 }
 0x349   :  { %v1323_v22 = vpop.xlane.xlu1 %1322 }
 0x34a   :  { %v1355_v49 = vadd.f32 %v1323_v22, %v1259_v45  ;;  %v2185_v45 = vpop.permute.xlu0 %2184 }
 0x34c   :  { %1388 = vst.msk [vmem:[#allocation3 + $0xf8] sm:$0xff] %vm27_vm4, %v1355_v49  ;;  %v4307_v49 = vpop.f32.mrf.mxu2 }
 0x34f   :  { %2194 = vperm.xlu1 %2462, %v2638_v54   ;;  %v4293_v42 = vpop.permute.xlu2 %2219  ;;  %v2096_v54 = vld [vmem:[#allocation3 + $0xf0] sm:$0xff] }
 0x353   :  { %v2097_v28 = vld [vmem:[#allocation3 + $0xf8] sm:$0xff] }
 0x354   :  { %2641 = vrcp.f32 %v2097_v28 }
 0x355   :  { %2643 = vrcp.f32 %v2078_v51  ;;  %v4309_v51 = vpop.f32.mrf.mxu0 }
 0x356   :  { %2645 = vrcp.f32 %v2081_v33 }
 0x357   :  { %2209 = vperm.xlu1 %2462, %v2640_v12   ;;  %2647 = vrcp.f32 %v2084_v36  ;;  %v4303_v2 = vpop.permute.xlu2 %2234  ;;  %v1582_v12 = vmul.f32 0.0, %v4213_v1  ;;  %v1807_v36 = vpop.f32.mrf.mxu2  ;;  %v4319_v1 = vld [vmem:[%s4451_s5] ss:$0 sm:$0xff] }
 0x358   :  { %2649 = vrcp.f32 %v2087_v61  ;;  %4659 = vst [vmem:[#allocation12_spill] sm:$0xff] %v4303_v2  ;;  %v1585_v2 = vmul.f32 0.0, %v4208_v25 }
 0x359   :  { %2651 = vrcp.f32 %v2090_v32 }
 0x35a   :  { %v2642_v53 = vpop.eup %2641  ;;  %2653 = vrcp.f32 %v2093_v44 }
 0x35b   :  { %2319 = vperm.xlu0 %2461, %v2642_v53   ;;  %v2644_v17 = vpop.eup %2643  ;;  %2655 = vrcp.f32 %v2096_v54  ;;  %v2200_v53 = vpop.permute.xlu0 %2199 }
 0x35c   :  { %v2646_v14 = vpop.eup %2645 }
 0x35d   :  { %v2648_v7 = vpop.eup %2647 }
 0x35e   :  { %v2650_v31 = vpop.eup %2649 }
 0x35f   :  { %2224 = vperm.xlu1 %2462, %v2644_v17   ;;  %v2652_v18 = vpop.eup %2651  ;;  %v2250_v63 = vpop.permute.xlu2 %2249 }
 0x360   :  { %v2654_v28 = vpop.eup %2653 }
 0x361   :  { %v4283_v15 = vpop.permute.xlu1 %1433 }
 0x367   :  { %2239 = vperm.xlu1 %2462, %v2646_v14   ;;  %v1968_v14 = vadd.f32 %v1784_v50, %v1582_v12  ;;  %v2265_v44 = vpop.permute.xlu2 %2264 }
 0x369   :  { %v4289_v55 = vpop.permute.xlu1 %1448  ;;  %v2323_v32 = vmul.f32 %v2170_v19, %v1968_v14  ;;  %v1971_v19 = vadd.f32 %v1792_v27, %v1585_v2  ;;  %v4325_v14 = vpop.f32.mrf.mxu2 }
 0x36b   :  { %v2326_v25 = vmul.f32 %v2185_v45, %v1971_v19 }
 0x36f   :  { %2254 = vperm.xlu1 %2462, %v2648_v7   ;;  %v2656_v7 = vpop.eup %2655 }
 0x371   :  { %v4295_v56 = vpop.permute.xlu1 %1463  ;;  %v4332_v43 = vpop.f32.mrf.mxu2 }
 0x377   :  { %2269 = vperm.xlu1 %2462, %v2650_v31  }
 0x379   :  { %v4301_v35 = vpop.permute.xlu1 %1478 }
 0x37f   :  { %2284 = vperm.xlu1 %2462, %v2652_v18   ;;  %v4313_v18 = vpop.f32.mrf.mxu0 }
 0x381   :  { %v4305_v22 = vpop.permute.xlu1 %1493 }
 0x387   :  { %2299 = vperm.xlu1 %2462, %v2654_v28   ;;  %v4321_v28 = vpop.f32.mrf.mxu1  ;;  %v1799_v27 = vpop.f32.mrf.mxu0 }
 0x388   :  { %v1974_v52 = vadd.f32 %v1799_v27, %v1588_v48 }
 0x389   :  { %v1509_v33 = vpop.permute.xlu1 %1508 }
 0x38a   :  { %v1598_v17 = vmul.f32 0.0, %v1509_v33  ;;  %v2215_v33 = vpop.permute.xlu0 %2214  ;;  %v2329_v19 = vmul.f32 %v2200_v53, %v1974_v52 }
 0x38c   :  { %v1984_v61 = vadd.f32 %v4225_v60, %v1598_v17 }
 0x38e   :  { %v2339_v31 = vmul.f32 %v2250_v63, %v1984_v61 }
 0x38f   :  { %2314 = vperm.xlu1 %2462, %v2656_v7  }
 0x390   :  { %v2355_v54 = vadd.f32 %v2339_v31, %v2323_v32  ;;  %v2280_v31 = vpop.permute.xlu2 %2279 }
 0x391   :  { %v1524_v50 = vpop.permute.xlu1 %1523 }
 0x392   :  { %v2371_v12 = vmul.f32 0.5, %v2355_v54  ;;  %v1601_v60 = vmul.f32 0.0, %v1524_v50  ;;  %v2230_v45 = vpop.permute.xlu0 %2229 }
 0x394   :  { %v2391_v63 = vadd.f32 %v4319_v1, %v2371_v12  ;;  %v1987_v17 = vadd.f32 %v4244_v39, %v1601_v60  ;;  %v1944_v12 = vpop.f32.mrf.mxu1 }
 0x396   :  { %v2407_v61 = vmax.f32 %v2391_v63, 0.0  ;;  %v2342_v7 = vmul.f32 %v2265_v44, %v1987_v17  ;;  %v1591_v17 = vmul.f32 0.0, %v4217_v37 }
 0x398   :  { %2423 = vst [vmem:[%s4452_s6 + $0x8] sm:$0xff] %v2407_v61  ;;  %v2358_v32 = vadd.f32 %v2342_v7, %v2326_v25  ;;  %v4338_v61 = vpop.f32.mrf.mxu3 }
 0x399   :  { %v1539_v54 = vpop.permute.xlu1 %1538 }
 0x39a   :  { %v2374_v50 = vmul.f32 0.5, %v2358_v32  ;;  %v1604_v2 = vmul.f32 0.0, %v1539_v54  ;;  %v2295_v54 = vpop.permute.xlu2 %2294  ;;  %v2245_v37 = vpop.permute.xlu0 %2244 }
 0x39c   :  { %v2394_v39 = vadd.f32 %v4319_v1, %v2374_v50  ;;  %v1990_v60 = vadd.f32 %v1944_v12, %v1604_v2  ;;  %v1977_v50 = vadd.f32 %v1807_v36, %v1591_v17  ;;  %v1594_v12 = vmul.f32 0.0, %v4221_v8 }
 0x39d   :  { %v1581_v17 = vmul.f32 0.0, %v4206_v62 }
 0x39e   :  { %v2410_v44 = vmax.f32 %v2394_v39, 0.0  ;;  %v2345_v63 = vmul.f32 %v2280_v31, %v1990_v60  ;;  %v2332_v31 = vmul.f32 %v2215_v33, %v1977_v50 }
 0x39f   :  { %v1967_v50 = vadd.f32 %v4279_v29, %v1581_v17  ;;  %v1587_v17 = vmul.f32 0.0, %v4223_v6  ;;  %v1590_v6 = vmul.f32 0.0, %v4227_v13 }
 0x3a0   :  { %2426 = vst [vmem:[%s4452_s6 + $0x20] sm:$0xff] %v2410_v44  ;;  %v2361_v25 = vadd.f32 %v2345_v63, %v2329_v19  ;;  %v1814_v63 = vpop.f32.mrf.mxu2  ;;  %v1959_v36 = vpop.f32.mrf.mxu3 }
 0x3a1   :  { %v1554_v7 = vpop.permute.xlu1 %1553 }
 0x3a2   :  { %v2377_v48 = vmul.f32 0.5, %v2361_v25  ;;  %v1607_v32 = vmul.f32 0.0, %v1554_v7  ;;  %v1980_v25 = vadd.f32 %v1814_v63, %v1594_v12  ;;  %v2310_v7 = vpop.permute.xlu2 %2309  ;;  %v1600_v12 = vmul.f32 0.0, %v4262_v40 }
 0x3a4   :  { %v2397_v52 = vadd.f32 %v4319_v1, %v2377_v48  ;;  %v1993_v53 = vadd.f32 %v4254_v58, %v1607_v32  ;;  %v2335_v48 = vmul.f32 %v2230_v45, %v1980_v25  ;;  %v1603_v25 = vmul.f32 0.0, %v4265_v9 }
 0x3a5   :  { %v1606_v9 = vmul.f32 0.0, %v4268_v26  ;;  %v1593_v26 = vmul.f32 0.0, %v4234_v23 }
 0x3a6   :  { %v2413_v2 = vmax.f32 %v2397_v52, 0.0  ;;  %v2348_v27 = vmul.f32 %v2295_v54, %v1993_v53  ;;  %v2260_v52 = vpop.permute.xlu0 %2259 }
 0x3a8   :  { %2429 = vst [vmem:[%s4452_s6 + $0x38] sm:$0xff] %v2413_v2  ;;  %v2364_v39 = vadd.f32 %v2348_v27, %v2332_v31  ;;  %v2338_v31 = vmul.f32 %v2245_v37, %v4229_v20  ;;  %v1584_v27 = vmul.f32 0.0, %v4219_v10  ;;  %v4378_v13 = vpop.f32.mrf.mxu3 }
 0x3a9   :  { %v1569_v60 = vpop.permute.xlu1 %1568 }
 0x3aa   :  { %v2380_v19 = vmul.f32 0.5, %v2364_v39  ;;  %v1610_v44 = vmul.f32 0.0, %v1569_v60  ;;  %v1970_v20 = vadd.f32 %v4297_v59, %v1584_v27  ;;  %v1973_v59 = vadd.f32 %v4313_v18, %v1587_v17 }
 0x3ab   :  { %v1976_v18 = vadd.f32 %v4307_v49, %v1590_v6 }
 0x3ac   :  { %v2400_v58 = vadd.f32 %v4319_v1, %v2380_v19  ;;  %v1996_v33 = vadd.f32 %v1959_v36, %v1610_v44  ;;  %v1986_v44 = vadd.f32 %v4237_v3, %v1600_v12 }
 0x3ae   :  { %v2416_v32 = vmax.f32 %v2400_v58, 0.0  ;;  %v2351_v8 = vmul.f32 %v2310_v7, %v1996_v33  ;;  %v2341_v63 = vmul.f32 %v2260_v52, %v1986_v44  ;;  %v2275_v40 = vpop.permute.xlu0 %2274  ;;  %v1989_v33 = vadd.f32 %v4321_v28, %v1603_v25 }
 0x3af   :  { %v1992_v28 = vadd.f32 %v4249_v46, %v1606_v9  ;;  %v4385_v46 = vpop.f32.mrf.mxu2 }
 0x3b0   :  { %2432 = vst [vmem:[%s4452_s6 + $0x50] sm:$0xff] %v2416_v32  ;;  %v2367_v54 = vadd.f32 %v2351_v8, %v2335_v48  ;;  %v2344_v32 = vmul.f32 %v2275_v40, %v1989_v33  ;;  %v1612_v40 = vmul.f32 0.0, %v4274_v16 }
 0x3b1   :  { %v2165_v53 = vpop.permute.xlu1 %2164 }
 0x3b2   :  { %v2383_v62 = vmul.f32 0.5, %v2367_v54  ;;  %v2322_v2 = vmul.f32 %v2165_v53, %v1967_v50 }
 0x3b4   :  { %v2403_v45 = vadd.f32 %v4319_v1, %v2383_v62  ;;  %v2354_v39 = vadd.f32 %v2338_v31, %v2322_v2 }
 0x3b6   :  { %v2419_v60 = vmax.f32 %v2403_v45, 0.0  ;;  %v2370_v19 = vmul.f32 0.5, %v2354_v39  ;;  %v2290_v52 = vpop.permute.xlu0 %2289  ;;  %v1609_v45 = vmul.f32 0.0, %v4271_v5  ;;  %v1596_v5 = vmul.f32 0.0, %v4239_v38 }
 0x3b7   :  { %v2347_v2 = vmul.f32 %v2290_v52, %v1992_v28 }
 0x3b8   :  { %2435 = vst [vmem:[%s4452_s6 + $0x68] sm:$0xff] %v2419_v60  ;;  %v2390_v29 = vadd.f32 %v4319_v1, %v2370_v19  ;;  %v1995_v49 = vadd.f32 %v4338_v61, %v1609_v45  ;;  %v1819_v61 = vpop.f32.mrf.mxu2 }
 0x3b9   :  { %v2180_v37 = vpop.permute.xlu1 %2179 }
 0x3ba   :  { %v2406_v10 = vmax.f32 %v2390_v29, 0.0  ;;  %v2325_v36 = vmul.f32 %v2180_v37, %v1970_v20  ;;  %v1979_v29 = vadd.f32 %v4332_v43, %v1593_v26 }
 0x3bc   :  { %2422 = vst [vmem:[%s4452_s6] sm:$0xff] %v2406_v10  ;;  %v2357_v3 = vadd.f32 %v2341_v63, %v2325_v36  ;;  %v1964_v36 = vpop.f32.mrf.mxu3 }
 0x3be   :  { %v2373_v58 = vmul.f32 0.5, %v2357_v3  ;;  %v2305_v19 = vpop.permute.xlu0 %2304  ;;  %v1998_v3 = vadd.f32 %v1964_v36, %v1612_v40 }
 0x3bf   :  { %v2350_v37 = vmul.f32 %v2305_v19, %v1995_v49 }
 0x3c0   :  { %v2393_v7 = vadd.f32 %v4319_v1, %v2373_v58  ;;  %v1982_v58 = vadd.f32 %v1819_v61, %v1596_v5  ;;  %v4662_v61 = vld [vmem:[#allocation12_spill] sm:$0xff] }
 0x3c1   :  { %v2195_v48 = vpop.permute.xlu1 %2194 }
 0x3c2   :  { %v2409_v8 = vmax.f32 %v2393_v7, 0.0  ;;  %v2328_v54 = vmul.f32 %v2195_v48, %v1973_v59  ;;  %v1583_v7 = vmul.f32 0.0, %v4283_v15  ;;  %v1586_v15 = vmul.f32 0.0, %v4289_v55 }
 0x3c4   :  { %2425 = vst [vmem:[%s4452_s6 + $0x18] sm:$0xff] %v2409_v8  ;;  %v2360_v50 = vadd.f32 %v2344_v32, %v2328_v54  ;;  %v1599_v32 = vmul.f32 0.0, %v4246_v24  ;;  %v1969_v8 = vadd.f32 %v4287_v11, %v1583_v7 }
 0x3c6   :  { %v2376_v53 = vmul.f32 0.5, %v2360_v50  ;;  %v1985_v9 = vadd.f32 %v4231_v47, %v1599_v32  ;;  %v1589_v47 = vmul.f32 0.0, %v4295_v56 }
 0x3c8   :  { %v2396_v31 = vadd.f32 %v4319_v1, %v2376_v53  ;;  %v2324_v53 = vmul.f32 %v4277_v34, %v1969_v8  ;;  %v1605_v34 = vmul.f32 0.0, %v4256_v0 }
 0x3c9   :  { %v2210_v62 = vpop.permute.xlu1 %2209 }
 0x3ca   :  { %v2412_v27 = vmax.f32 %v2396_v31, 0.0  ;;  %v2331_v12 = vmul.f32 %v2210_v62, %v1976_v18  ;;  %v1972_v31 = vadd.f32 %v4309_v51, %v1586_v15  ;;  %v1975_v51 = vadd.f32 %v4299_v41, %v1589_v47 }
 0x3cc   :  { %2428 = vst [vmem:[%s4452_s6 + $0x30] sm:$0xff] %v2412_v27  ;;  %v2363_v39 = vadd.f32 %v2347_v2, %v2331_v12  ;;  %v2327_v55 = vmul.f32 %v4281_v30, %v1972_v31 }
 0x3cd   :  { %v2320_v25 = vpop.permute.xlu0 %2319 }
 0x3ce   :  { %v2379_v60 = vmul.f32 0.5, %v2363_v39  ;;  %v2353_v59 = vmul.f32 %v2320_v25, %v1998_v3  ;;  %v1991_v39 = vadd.f32 %v4241_v21, %v1605_v34  ;;  %v1595_v21 = vmul.f32 0.0, %v4305_v22 }
 0x3d0   :  { %v2399_v44 = vadd.f32 %v4319_v1, %v2379_v60  ;;  %v1592_v60 = vmul.f32 0.0, %v4301_v35 }
 0x3d1   :  { %v2225_v20 = vpop.permute.xlu1 %2224 }
 0x3d2   :  { %v2415_v23 = vmax.f32 %v2399_v44, 0.0  ;;  %v2334_v63 = vmul.f32 %v2225_v20, %v1979_v29  ;;  %v1978_v49 = vadd.f32 %v4325_v14, %v1592_v60  ;;  %v1981_v14 = vadd.f32 %v4385_v46, %v1595_v21 }
 0x3d4   :  { %2431 = vst [vmem:[%s4452_s6 + $0x48] sm:$0xff] %v2415_v23  ;;  %v2366_v10 = vadd.f32 %v2350_v37, %v2334_v63  ;;  %v2333_v35 = vmul.f32 %v4293_v42, %v1978_v49  ;;  %v4660_v37 = vld [vmem:[#allocation8_spill] sm:$0xff]  ;;  %v4661_v63 = vld [vmem:[#allocation10_spill] sm:$0xff]  ;;  %v2336_v42 = vmul.f32 %v4662_v61, %v1981_v14 }
 0x3d5   :  { %v1611_v5 = vmul.f32 0.0, %v4661_v63 }
 0x3d6   :  { %v2382_v17 = vmul.f32 0.5, %v2366_v10 }
 0x3d7   :  { %v1997_v36 = vadd.f32 %v4378_v13, %v1611_v5 }
 0x3d8   :  { %v2402_v43 = vadd.f32 %v4319_v1, %v2382_v17 }
 0x3d9   :  { %v2240_v33 = vpop.permute.xlu1 %2239 }
 0x3da   :  { %v2418_v38 = vmax.f32 %v2402_v43, 0.0  ;;  %v2337_v48 = vmul.f32 %v2240_v33, %v1982_v58 }
 0x3dc   :  { %2434 = vst [vmem:[%s4452_s6 + $0x60] sm:$0xff] %v2418_v38  ;;  %v2369_v16 = vadd.f32 %v2353_v59, %v2337_v48 }
 0x3de   :  { %v2385_v54 = vmul.f32 0.5, %v2369_v16 }
 0x3e0   :  { %v2405_v6 = vadd.f32 %v4319_v1, %v2385_v54 }
 0x3e1   :  { %v2255_v50 = vpop.permute.xlu1 %2254 }
 0x3e2   :  { %v2421_v52 = vmax.f32 %v2405_v6, 0.0  ;;  %v2340_v28 = vmul.f32 %v2255_v50, %v1985_v9 }
 0x3e4   :  { %2437 = vst [vmem:[%s4452_s6 + $0x78] sm:$0xff] %v2421_v52  ;;  %v2356_v24 = vadd.f32 %v2340_v28, %v2324_v53 }
 0x3e6   :  { %v2372_v11 = vmul.f32 0.5, %v2356_v24 }
 0x3e8   :  { %v2392_v18 = vadd.f32 %v4319_v1, %v2372_v11 }
 0x3e9   :  { %v2270_v62 = vpop.permute.xlu1 %2269 }
 0x3ea   :  { %v2408_v2 = vmax.f32 %v2392_v18, 0.0  ;;  %v2343_v27 = vmul.f32 %v2270_v62, %v4251_v4  ;;  %v2330_v4 = vmul.f32 %v4285_v57, %v1975_v51 }
 0x3ec   :  { %2424 = vst [vmem:[%s4452_s6 + $0x10] sm:$0xff] %v2408_v2  ;;  %v2359_v12 = vadd.f32 %v2343_v27, %v2327_v55 }
 0x3ee   :  { %v2375_v26 = vmul.f32 0.5, %v2359_v12 }
 0x3f0   :  { %v2395_v45 = vadd.f32 %v4319_v1, %v2375_v26 }
 0x3f1   :  { %v2285_v56 = vpop.permute.xlu1 %2284 }
 0x3f2   :  { %v2411_v30 = vmax.f32 %v2395_v45, 0.0  ;;  %v2346_v19 = vmul.f32 %v2285_v56, %v1991_v39 }
 0x3f4   :  { %2427 = vst [vmem:[%s4452_s6 + $0x28] sm:$0xff] %v2411_v30  ;;  %v2362_v0 = vadd.f32 %v2346_v19, %v2330_v4 }
 0x3f6   :  { %v2378_v41 = vmul.f32 0.5, %v2362_v0 }
 0x3f8   :  { %v2398_v44 = vadd.f32 %v4319_v1, %v2378_v41 }
 0x3f9   :  { %v2300_v29 = vpop.permute.xlu1 %2299 }
 0x3fa   :  { %v2414_v20 = vmax.f32 %v2398_v44, 0.0  ;;  %v2349_v23 = vmul.f32 %v2300_v29, %v4660_v37 }
 0x3fc   :  { %2430 = vst [vmem:[%s4452_s6 + $0x40] sm:$0xff] %v2414_v20  ;;  %v2365_v57 = vadd.f32 %v2349_v23, %v2333_v35 }
 0x3fe   :  { %v2381_v10 = vmul.f32 0.5, %v2365_v57 }
 0x400   :  { %v2401_v40 = vadd.f32 %v4319_v1, %v2381_v10 }
 0x401   :  { %v2315_v22 = vpop.permute.xlu1 %2314 }
 0x402   :  { %v2417_v17 = vmax.f32 %v2401_v40, 0.0  ;;  %v2352_v25 = vmul.f32 %v2315_v22, %v1997_v36 }
 0x404   :  { %2433 = vst [vmem:[%s4452_s6 + $0x58] sm:$0xff] %v2417_v17  ;;  %v2368_v3 = vadd.f32 %v2352_v25, %v2336_v42 }
 0x406   :  { %v2384_v43 = vmul.f32 0.5, %v2368_v3 }
 0x408   :  { %v2404_v58 = vadd.f32 %v4319_v1, %v2384_v43 }
 0x40a   :  { %v2420_v33 = vmax.f32 %v2404_v58, 0.0 }
 0x40c   :  { %2436 = vst [vmem:[%s4452_s6 + $0x70] sm:$0xff] %v2420_v33 }

</bundles_post_ra>
